<compile_context>
chip_gen: v5e
topology: v5e:2x2
jax: 0.10.0
libtpu: 0.0.40
codegen_flags: <defaults>
</compile_context>

<pallas_src>
import jax
import jax.numpy as jnp
from jax.experimental import pallas as pl
from jax.experimental.pallas import tpu as pltpu


# ----------------------------- model config ---------------------------------
class CFG:
    deterministic = True      # actions = argmax of the categorical logits
    self_info_len = 8
    self_info_dim = 16
    num_heads = 2
    rr_qkv_in_dim = 16
    rr_att_dim = 16
    ri_qkv_in_dim = 16
    ri_att_dim = 16
    cnn_out_dim = 192
    n_actions = 36


OUT_W = 128                     # lane-dense output slab width
NA = CFG.n_actions
C1_OUT = 8 * 8 * 8              # conv1: 8 ch, 8x8 spatial (16x16, k3, s2, p1)
C2_OUT = CFG.cnn_out_dim        # conv2: 12 ch, 4x4 spatial
MLP_IN = (CFG.cnn_out_dim + CFG.self_info_dim
          + 2 * CFG.rr_att_dim + 2 * CFG.ri_att_dim)      # 272

# --------------------- packed weight-slab static layout ----------------------
_W_SHAPES = {
    'se1_w': (CFG.self_info_len, 16),
    'se2_w': (16, CFG.self_info_dim),
    'prr_w': (CFG.self_info_len, CFG.rr_qkv_in_dim),
    'pri_w': (CFG.self_info_len, CFG.ri_qkv_in_dim),
    'na_wq': (CFG.rr_qkv_in_dim, CFG.rr_att_dim),
    'na_wk': (CFG.rr_qkv_in_dim, CFG.rr_att_dim),
    'na_wv': (CFG.rr_qkv_in_dim, CFG.rr_att_dim),
    'na_wo': (CFG.rr_att_dim, CFG.rr_att_dim),
    'na_ws': (CFG.rr_qkv_in_dim, CFG.rr_att_dim),
    'ia_wq': (CFG.ri_qkv_in_dim, CFG.ri_att_dim),
    'ia_wk': (CFG.ri_qkv_in_dim, CFG.ri_att_dim),
    'ia_wv': (CFG.ri_qkv_in_dim, CFG.ri_att_dim),
    'ia_wo': (CFG.ri_att_dim, CFG.ri_att_dim),
    'ia_ws': (CFG.ri_qkv_in_dim, CFG.ri_att_dim),
    'mlp1_w': (MLP_IN, 64),
    'mlp2_w': (64, 192),
    'act_w': (192, 32),
    'out_w': (32, OUT_W),       # padded: real logits live in the first 36 cols
}
_B_COLS = {
    'se1_b': 16, 'se2_b': CFG.self_info_dim,
    'conv1_db': C1_OUT, 'conv2_db': C2_OUT,
    'prr_b': CFG.rr_qkv_in_dim, 'pri_b': CFG.ri_qkv_in_dim,
    'na_bq': CFG.rr_att_dim, 'na_bk': CFG.rr_att_dim, 'na_bv': CFG.rr_att_dim,
    'na_bo': CFG.rr_att_dim, 'na_bs': CFG.rr_att_dim,
    'ia_bq': CFG.ri_att_dim, 'ia_bk': CFG.ri_att_dim, 'ia_bv': CFG.ri_att_dim,
    'ia_bo': CFG.ri_att_dim, 'ia_bs': CFG.ri_att_dim,
    'mlp1_b': 64, 'mlp2_b': 192, 'act_b': 32, 'out_b': OUT_W,
}

WPAD = max(c for _, c in _W_SHAPES.values())      # 192
BPAD = max(_B_COLS.values())                      # 512
W_PACK_ORDER = tuple(_W_SHAPES)
B_PACK_ORDER = tuple(_B_COLS)


def _round8(n):
    return (n + 7) // 8 * 8


W_LAYOUT = {}
_r = 0
for _name in W_PACK_ORDER:
    _rows, _cols = _W_SHAPES[_name]
    W_LAYOUT[_name] = (_r, _rows, _cols)           # 8-aligned row base
    _r += _round8(_rows)
W_SLAB_ROWS = _round8(_r)                          # 760

B_LAYOUT = {_n: (_i, _B_COLS[_n]) for _i, _n in enumerate(B_PACK_ORDER)}
B_SLAB_ROWS = _round8(len(B_PACK_ORDER))           # 24

# mlp1 row-block offsets for the concat-free partial matmuls
_MLP1_WIDTHS = (CFG.cnn_out_dim, CFG.self_info_dim, CFG.rr_att_dim,
                CFG.rr_att_dim, CFG.ri_att_dim, CFG.ri_att_dim)
MLP1_OFFS = []
_o = 0
for _w in _MLP1_WIDTHS:
    MLP1_OFFS.append(_o)
    _o += _w
MLP1_OFFS = tuple(MLP1_OFFS)                       # (0, 192, 208, 224, 240, 256)


# --------------------------- fused forward kernel ----------------------------
def _fused_kernel(self_ref, grid_ref, nbr_ref, nmask_ref, int_ref, imask_ref,
                  conv1_hbm, conv2_hbm, w_ref, b_ref,
                  out_ref, c1_buf, c2_buf, dma_sem):
    f32 = jnp.float32
    minus_inf = jnp.float32(-3.0e38)

    # --- start the big conv-weight DMAs; hide them behind the attention path ---
    cp1 = pltpu.make_async_copy(conv1_hbm, c1_buf, dma_sem.at[0])
    cp2 = pltpu.make_async_copy(conv2_hbm, c2_buf, dma_sem.at[1])
    cp1.start()
    cp2.start()

    def get_w(name):
        r0, rows, cols = W_LAYOUT[name]
        return w_ref[r0:r0 + rows, 0:cols]

    def w_rows(name, off, width):
        r0, _, cols = W_LAYOUT[name]
        return w_ref[r0 + off:r0 + off + width, 0:cols]

    def get_b(name):
        i, cols = B_LAYOUT[name]
        return b_ref[i:i + 1, 0:cols]

    def leaky(y):
        return jnp.maximum(y, 0.01 * y)            # LeakyReLU(0.01)

    def lin(x, wname, bname, act=True):
        y = jnp.dot(x, get_w(wname), preferred_element_type=f32) + get_b(bname)
        return leaky(y) if act else y

    self_info = self_ref[...]                      # (B, self_info_len)
    B = self_info.shape[0]
    H = CFG.num_heads

    # ---- self encoder: Linear+LeakyReLU x2 ----
    self_v = lin(lin(self_info, 'se1_w', 'se1_b'), 'se2_w', 'se2_b')   # (B, 16)

    # ---- shared attention selectors (built once; both MHAs have identical dims) ----
    BN = nbr_ref.shape[0]
    N = BN // B
    A = CFG.rr_att_dim
    dh = A // H
    scale = 1.0 / (dh ** 0.5)

    r_bn = jax.lax.broadcasted_iota(jnp.int32, (BN, B), 0)
    c_bN = jax.lax.broadcasted_iota(jnp.int32, (BN, B), 1) * N
    expand = ((r_bn >= c_bN) & (r_bn < c_bN + N)).astype(f32)          # (BN, B)
    r_bN = jax.lax.broadcasted_iota(jnp.int32, (B, BN), 0) * N
    c_bn = jax.lax.broadcasted_iota(jnp.int32, (B, BN), 1)
    pool = ((c_bn >= r_bN) & (c_bn < r_bN + N)).astype(f32)            # (B, BN)
    a_i = jax.lax.broadcasted_iota(jnp.int32, (A, H), 0)
    h_d = jax.lax.broadcasted_iota(jnp.int32, (A, H), 1) * dh
    head_sum = ((a_i >= h_d) & (a_i < h_d + dh)).astype(f32) * scale   # (A, H)
    h_d2 = jax.lax.broadcasted_iota(jnp.int32, (H, A), 0) * dh
    a_i2 = jax.lax.broadcasted_iota(jnp.int32, (H, A), 1)
    head_exp = ((a_i2 >= h_d2) & (a_i2 < h_d2 + dh)).astype(f32)       # (H, A)
    rows_iota = jax.lax.broadcasted_iota(jnp.int32, (BN, 1), 0)        # (BN, 1)

    # ---- masked multi-head attention (2-D matmuls, no scratch, no ref loops) ----
    def mha(q, kv_ref, mask_ref, prefix):
        kv = kv_ref[...]                           # (BN, D), batch-major rows
        mask = mask_ref[...]                       # (BN, 1), 1 = valid

        Q = lin(q, prefix + 'wq', prefix + 'bq', act=False)            # (B, A)
        K = lin(kv, prefix + 'wk', prefix + 'bk', act=False)           # (BN, A)
        V = lin(kv, prefix + 'wv', prefix + 'bv', act=False)           # (BN, A)

        q_rep = jnp.dot(expand, Q, preferred_element_type=f32)         # (BN, A)
        scores = jnp.dot(q_rep * K, head_sum,
                         preferred_element_type=f32)                   # (BN, H)
        scores = jnp.where(mask > 0.0, scores, jnp.float32(-1e9))

        # exact per-(batch, head) max over the N keys, all in registers (VPU only)
        m_rep = jnp.zeros_like(scores)
        for b in range(B):                         # static unroll, B is tiny
            in_b = (rows_iota >= b * N) & (rows_iota < (b + 1) * N)
            m_b = jnp.max(jnp.where(in_b, scores, minus_inf),
                          axis=0, keepdims=True)                       # (1, H)
            m_rep = m_rep + jnp.where(in_b, m_b, 0.0)

        e = jnp.exp(scores - m_rep)                                    # (BN, H)
        denom = jnp.dot(pool, e, preferred_element_type=f32)           # (B, H)
        inv = 1.0 / denom                          # exact; off the MXU chain
        p_att = e * jnp.dot(expand, inv, preferred_element_type=f32)   # (BN, H)
        p_lanes = jnp.dot(p_att, head_exp, preferred_element_type=f32) # (BN, A)
        ally_pre = jnp.dot(pool, p_lanes * V, preferred_element_type=f32)  # (B, A)

        ally = lin(ally_pre, prefix + 'wo', prefix + 'bo', act=False)
        # TODO(synk): the reference Multi_Head_Attention "self_feats" branch is
        # not in the provided source; modeled as a learned linear projection of
        # the (already projected) query, matching the att_dim output width.
        selfp = lin(q, prefix + 'ws', prefix + 'bs', act=False)
        return ally, selfp

    q_r = lin(self_info, 'prr_w', 'prr_b', act=False)
    ally, self_a = mha(q_r, nbr_ref, nmask_ref, 'na_')
    q_i = lin(self_info, 'pri_w', 'pri_b', act=False)
    enemy, self_e = mha(q_i, int_ref, imask_ref, 'ia_')

    # ---- FOV encoder: convs folded into dense bf16 matmuls (NCHW-flatten) ----
    cp1.wait()
    cp2.wait()
    g_bf = grid_ref[...].astype(jnp.bfloat16)                          # (B, 1024)
    c1 = leaky(jnp.dot(g_bf, c1_buf[...], preferred_element_type=f32)
               + get_b('conv1_db'))                                    # (B, 512)
    grid_v = leaky(jnp.dot(c1.astype(jnp.bfloat16), c2_buf[...],
                           preferred_element_type=f32)
                   + get_b('conv2_db'))                                # (B, 192)

    # ---- trunk MLP: concat folded into 6 partial matmuls (no VMEM slab) ----
    feats = (grid_v, self_v, ally, self_a, enemy, self_e)
    acc = jnp.zeros((B, 64), f32)
    for val, off, width in zip(feats, MLP1_OFFS, _MLP1_WIDTHS):
        acc = acc + jnp.dot(val, w_rows('mlp1_w', off, width),
                            preferred_element_type=f32)
    h = leaky(acc + get_b('mlp1_b'))                                   # (B, 64)
    h = lin(h, 'mlp2_w', 'mlp2_b')                                     # (B, 192)
    actf = lin(h, 'act_w', 'act_b')                                    # (B, 32)

    # ---- categorical head on a 128-wide lane-dense slab ----
    full = lin(actf, 'out_w', 'out_b', act=False)                      # (B, 128)
    col = jax.lax.broadcasted_iota(jnp.int32, full.shape, 1)
    valid = col < NA
    lg = jnp.where(valid, full, minus_inf)
    mlg = jnp.max(lg, axis=-1, keepdims=True)
    z = lg - mlg
    ez = jnp.where(valid, jnp.exp(z), 0.0)
    lse = jnp.log(jnp.sum(ez, axis=-1, keepdims=True))
    logp = z - lse
    act_idx = jnp.min(jnp.where(lg >= mlg, col, NA),
                      axis=-1, keepdims=True)                          # (B, 1)
    alp = jnp.sum(jnp.where(col == act_idx, logp, 0.0),
                  axis=-1, keepdims=True)                              # (B, 1)

    slab = jnp.where(valid, full, 0.0)
    slab = jnp.where(col == NA, act_idx.astype(f32), slab)
    slab = jnp.where(col == NA + 1, alp, slab)
    out_ref[...] = slab                    # ONE unmasked (B, 128) store


# ------------------------ conv -> dense operator (init) ----------------------
def conv_to_dense(w, H, W, stride, pad):
    """Fold a PyTorch Conv2d into a dense operator on NCHW-flattened maps.

    w: (Cout, Cin, kh, kw).  Returns M of shape (Cin*H*W, Cout*Ho*Wo) such that
    flatten_CHW(conv2d(x)) == flatten_CHW(x) @ M, plus (Ho, Wo).
    """
    Cout, Cin, kh, kw = w.shape
    Ho = (H + 2 * pad - kh) // stride + 1
    Wo = (W + 2 * pad - kw) // stride + 1
    ki = jnp.arange(H)[:, None] - (stride * jnp.arange(Ho)[None, :] - pad)   # (H, Ho)
    kj = jnp.arange(W)[:, None] - (stride * jnp.arange(Wo)[None, :] - pad)   # (W, Wo)
    vi = (ki >= 0) & (ki < kh)
    vj = (kj >= 0) & (kj < kw)
    ki_c = jnp.clip(ki, 0, kh - 1)
    kj_c = jnp.clip(kj, 0, kw - 1)
    wt = jnp.transpose(w, (1, 0, 2, 3))                                      # (Cin, Cout, kh, kw)
    idx_i = ki_c[:, None, :, None]                                           # (H, 1, Ho, 1)
    idx_j = kj_c[None, :, None, :]                                           # (1, W, 1, Wo)
    T = wt[:, :, idx_i, idx_j]                                               # (Cin, Cout, H, W, Ho, Wo)
    valid = (vi[:, None, :, None] & vj[None, :, None, :]).astype(w.dtype)    # (H, W, Ho, Wo)
    T = T * valid[None, None]
    T = jnp.transpose(T, (0, 2, 3, 1, 4, 5))                                 # (Cin, H, W, Cout, Ho, Wo)
    return T.reshape(Cin * H * W, Cout * Ho * Wo), Ho, Wo


# ------------------------------ parameters -----------------------------------
def _init_linear(key, d_in, d_out, scale=0.1):
    kw, kb = jax.random.split(key)
    return (scale * jax.random.normal(kw, (d_in, d_out), jnp.float32),
            scale * jax.random.normal(kb, (1, d_out), jnp.float32))


def _init_mha(key, d_in, att_dim, prefix):
    ks = jax.random.split(key, 5)
    p = {}
    p[prefix + 'wq'], p[prefix + 'bq'] = _init_linear(ks[0], d_in, att_dim)
    p[prefix + 'wk'], p[prefix + 'bk'] = _init_linear(ks[1], d_in, att_dim)
    p[prefix + 'wv'], p[prefix + 'bv'] = _init_linear(ks[2], d_in, att_dim)
    p[prefix + 'wo'], p[prefix + 'bo'] = _init_linear(ks[3], att_dim, att_dim)
    p[prefix + 'ws'], p[prefix + 'bs'] = _init_linear(ks[4], d_in, att_dim)
    return p


def init_params(key):
    ks = jax.random.split(key, 16)
    p = {}
    # FOV_AUX_encoder (assumed): two strided 3x3 convs ending at 12*4*4 = 192
    c1w = 0.1 * jax.random.normal(ks[0], (8, 4, 3, 3), jnp.float32)
    c1b = 0.1 * jax.random.normal(ks[1], (8,), jnp.float32)
    c2w = 0.1 * jax.random.normal(ks[2], (12, 8, 3, 3), jnp.float32)
    c2b = 0.1 * jax.random.normal(ks[3], (12,), jnp.float32)
    m1, h1, w1 = conv_to_dense(c1w, 16, 16, stride=2, pad=1)   # (1024, 512), 8x8
    m2, h2, w2 = conv_to_dense(c2w, h1, w1, stride=2, pad=1)   # (512, 192),  4x4
    p['conv1_dw'] = m1
    p['conv1_db'] = jnp.repeat(c1b, h1 * w1)[None, :]          # (1, 512)
    p['conv2_dw'] = m2
    p['conv2_db'] = jnp.repeat(c2b, h2 * w2)[None, :]          # (1, 192)
    # self encoder
    p['se1_w'], p['se1_b'] = _init_linear(ks[4], CFG.self_info_len, 16)
    p['se2_w'], p['se2_b'] = _init_linear(ks[5], 16, CFG.self_info_dim)
    # query projections
    p['prr_w'], p['prr_b'] = _init_linear(ks[6], CFG.self_info_len, CFG.rr_qkv_in_dim)
    p['pri_w'], p['pri_b'] = _init_linear(ks[7], CFG.self_info_len, CFG.ri_qkv_in_dim)
    # attentions
    p.update(_init_mha(ks[8], CFG.rr_qkv_in_dim, CFG.rr_att_dim, 'na_'))
    p.update(_init_mha(ks[9], CFG.ri_qkv_in_dim, CFG.ri_att_dim, 'ia_'))
    # trunk mlp
    p['mlp1_w'], p['mlp1_b'] = _init_linear(ks[10], MLP_IN, 64)
    p['mlp2_w'], p['mlp2_b'] = _init_linear(ks[11], 64, 192)
    # actor head
    p['act_w'], p['act_b'] = _init_linear(ks[12], 192, 32)
    p['out_w'], p['out_b'] = _init_linear(ks[13], 32, CFG.n_actions)
    return p


def pack_params(p):
    """Pack ~40 tiny tensors into 2 f32 slabs + 2 bf16 conv operators."""
    w_slab = jnp.zeros((W_SLAB_ROWS, WPAD), jnp.float32)
    for name in W_PACK_ORDER:
        r0, _, _ = W_LAYOUT[name]
        mat = p[name]
        w_slab = w_slab.at[r0:r0 + mat.shape[0], 0:mat.shape[1]].set(mat)
    b_slab = jnp.zeros((B_SLAB_ROWS, BPAD), jnp.float32)
    for name in B_PACK_ORDER:
        i, _ = B_LAYOUT[name]
        vec = p[name].reshape(-1)
        b_slab = b_slab.at[i, 0:vec.shape[0]].set(vec)
    return {'conv1_dw': p['conv1_dw'].astype(jnp.bfloat16),
            'conv2_dw': p['conv2_dw'].astype(jnp.bfloat16),
            'w_slab': w_slab,
            'b_slab': b_slab}


# ------------------------------ forward pass ----------------------------------
def robot_actor_forward(packed, self_info, grid_map, neighbor_info, neighbor_mask,
                        inter_info, inter_mask, robot_actor_hidden):
    B = self_info.shape[0]
    Nn = neighbor_info.shape[1]
    Ni = inter_info.shape[1]
    assert Nn == Ni, "fused kernel shares one selector set; Nn must equal Ni"

    # Contiguous (free) flattens only; everything else happens in the kernel.
    grid_flat = grid_map.reshape(B, -1)                 # NCHW flatten -> (B, 1024)
    nbr2 = neighbor_info.reshape(B * Nn, -1)            # (B*Nn, D)
    nmask2 = neighbor_mask.reshape(B * Nn, 1)
    int2 = inter_info.reshape(B * Ni, -1)
    imask2 = inter_mask.reshape(B * Ni, 1)

    inputs = (self_info, grid_flat, nbr2, nmask2, int2, imask2,
              packed['conv1_dw'], packed['conv2_dw'],
              packed['w_slab'], packed['b_slab'])

    vmem = pl.BlockSpec(memory_space=pltpu.MemorySpace.VMEM)
    hbm = pl.BlockSpec(memory_space=pl.ANY)             # conv weights: manual DMA

    out = pl.pallas_call(
        _fused_kernel,
        out_shape=jax.ShapeDtypeStruct((B, OUT_W), jnp.float32),
        in_specs=[vmem] * 6 + [hbm, hbm, vmem, vmem],
        out_specs=vmem,
        scratch_shapes=[
            pltpu.VMEM(packed['conv1_dw'].shape, jnp.bfloat16),   # conv1 operator
            pltpu.VMEM(packed['conv2_dw'].shape, jnp.bfloat16),   # conv2 operator
            pltpu.SemaphoreType.DMA((2,)),
        ],
    )(*inputs)

    logits = out[:, :NA]
    actions = out[:, NA:NA + 1].astype(jnp.int32)       # deterministic -> argmax
    action_log_probs = out[:, NA + 1:NA + 2]
    return actions, action_log_probs, robot_actor_hidden, logits


# ---------------------------------- main --------------------------------------
if __name__ == "__main__":
    key = jax.random.PRNGKey(0)
    kp, k1, k2, k3, k4, k5, k6 = jax.random.split(key, 7)

    params = init_params(jax.random.PRNGKey(42))
    packed = pack_params(params)

    B, N_nb, N_in = 2, 4, 4
    self_info = jax.random.normal(k1, (B, CFG.self_info_len), jnp.float32)
    grid_map = jax.random.normal(k2, (B, 4, 16, 16), jnp.float32)
    neighbor_info = jax.random.normal(k3, (B, N_nb, CFG.rr_qkv_in_dim), jnp.float32)
    neighbor_mask = (jax.random.uniform(k4, (B, N_nb)) > 0.3).astype(jnp.float32)
    inter_info = jax.random.normal(k5, (B, N_in, CFG.ri_qkv_in_dim), jnp.float32)
    inter_mask = (jax.random.uniform(k6, (B, N_in)) > 0.3).astype(jnp.float32)
    robot_actor_hidden = jnp.zeros((B, 64), jnp.float32)

    fwd = jax.jit(robot_actor_forward)
    actions, action_log_probs, hidden, logits = fwd(
        packed, self_info, grid_map, neighbor_info, neighbor_mask,
        inter_info, inter_mask, robot_actor_hidden)
    jax.block_until_ready((actions, action_log_probs, hidden, logits))

    assert actions.shape == (B, 1)
    assert action_log_probs.shape == (B, 1)
    assert logits.shape == (B, CFG.n_actions)
    assert hidden.shape == (B, 64)
    assert bool(jnp.all(jnp.isfinite(logits)))
    assert bool(jnp.all((actions >= 0) & (actions < CFG.n_actions)))
    print("KERNEL_OK")
</pallas_src>

<mosaic_0001>
module attributes {stable_mosaic.version = 11 : i64} {
  func.func @_fused_kernel(%arg0: memref<2x8xf32, #tpu.memory_space<vmem>>, %arg1: memref<2x1024xf32, #tpu.memory_space<vmem>>, %arg2: memref<8x16xf32, #tpu.memory_space<vmem>>, %arg3: memref<8x1xf32, #tpu.memory_space<vmem>>, %arg4: memref<8x16xf32, #tpu.memory_space<vmem>>, %arg5: memref<8x1xf32, #tpu.memory_space<vmem>>, %arg6: memref<1024x512xbf16, #tpu.memory_space<any>>, %arg7: memref<512x192xbf16, #tpu.memory_space<any>>, %arg8: memref<760x192xf32, #tpu.memory_space<vmem>>, %arg9: memref<24x512xf32, #tpu.memory_space<vmem>>, %arg10: memref<2x128xf32, #tpu.memory_space<vmem>>, %arg11: memref<1024x512xbf16, #tpu.memory_space<vmem>>, %arg12: memref<512x192xbf16, #tpu.memory_space<vmem>>, %arg13: memref<2x!tpu.dma_semaphore, #tpu.memory_space<semaphore_mem>>) attributes {dimension_semantics = [], scalar_prefetch = 0 : i64, scratch_operands = 3 : i64, tpu.core_type = #tpu.core_type<tc>} {
    %c0_i32 = arith.constant 0 : i32
    %0 = tpu.memref_slice %arg13[%c0_i32] : memref<2x!tpu.dma_semaphore, #tpu.memory_space<semaphore_mem>> -> memref<1x!tpu.dma_semaphore, #tpu.memory_space<semaphore_mem>>
    %1 = tpu.memref_squeeze %0 : memref<1x!tpu.dma_semaphore, #tpu.memory_space<semaphore_mem>> -> memref<!tpu.dma_semaphore, #tpu.memory_space<semaphore_mem>>
    tpu.enqueue_dma source(%arg6 : memref<1024x512xbf16, #tpu.memory_space<any>>) target(%arg11 : memref<1024x512xbf16, #tpu.memory_space<vmem>>) target_semaphore(%1 : memref<!tpu.dma_semaphore, #tpu.memory_space<semaphore_mem>>)
    %c1_i32 = arith.constant 1 : i32
    %2 = tpu.memref_slice %arg13[%c1_i32] : memref<2x!tpu.dma_semaphore, #tpu.memory_space<semaphore_mem>> -> memref<1x!tpu.dma_semaphore, #tpu.memory_space<semaphore_mem>>
    %3 = tpu.memref_squeeze %2 : memref<1x!tpu.dma_semaphore, #tpu.memory_space<semaphore_mem>> -> memref<!tpu.dma_semaphore, #tpu.memory_space<semaphore_mem>>
    tpu.enqueue_dma source(%arg7 : memref<512x192xbf16, #tpu.memory_space<any>>) target(%arg12 : memref<512x192xbf16, #tpu.memory_space<vmem>>) target_semaphore(%3 : memref<!tpu.dma_semaphore, #tpu.memory_space<semaphore_mem>>)
    %c0 = arith.constant 0 : index
    %c0_0 = arith.constant 0 : index
    %4 = vector.load %arg0[%c0, %c0_0] : memref<2x8xf32, #tpu.memory_space<vmem>>, vector<2x8xf32>
    %c0_1 = arith.constant 0 : index
    %c0_2 = arith.constant 0 : index
    %5 = vector.load %arg8[%c0_1, %c0_2] : memref<760x192xf32, #tpu.memory_space<vmem>>, vector<8x16xf32>
    %cst = arith.constant dense<0.000000e+00> : vector<2x16xf32>
    %6 = tpu.matmul %4, %5, %cst {dimension_numbers = #tpu.dot_dimension_numbers<[1], [0], [0], [1], [0, 0, 1, 1], [], []>} : vector<2x8xf32>, vector<8x16xf32>, vector<2x16xf32> -> vector<2x16xf32>
    %c0_3 = arith.constant 0 : index
    %c0_4 = arith.constant 0 : index
    %7 = vector.load %arg9[%c0_3, %c0_4] : memref<24x512xf32, #tpu.memory_space<vmem>>, vector<1x16xf32>
    %8 = vector.broadcast %7 : vector<1x16xf32> to vector<2x16xf32>
    %9 = arith.addf %6, %8 : vector<2x16xf32>
    %cst_5 = arith.constant 0.00999999977 : f32
    %10 = vector.broadcast %cst_5 : f32 to vector<2x16xf32>
    %11 = arith.mulf %10, %9 : vector<2x16xf32>
    %12 = arith.maximumf %9, %11 : vector<2x16xf32>
    %c8 = arith.constant 8 : index
    %c0_6 = arith.constant 0 : index
    %13 = vector.load %arg8[%c8, %c0_6] : memref<760x192xf32, #tpu.memory_space<vmem>>, vector<16x16xf32>
    %cst_7 = arith.constant dense<0.000000e+00> : vector<2x16xf32>
    %14 = tpu.matmul %12, %13, %cst_7 {dimension_numbers = #tpu.dot_dimension_numbers<[1], [0], [0], [1], [0, 0, 1, 1], [], []>} : vector<2x16xf32>, vector<16x16xf32>, vector<2x16xf32> -> vector<2x16xf32>
    %c1 = arith.constant 1 : index
    %c0_8 = arith.constant 0 : index
    %15 = vector.load %arg9[%c1, %c0_8] : memref<24x512xf32, #tpu.memory_space<vmem>>, vector<1x16xf32>
    %16 = vector.broadcast %15 : vector<1x16xf32> to vector<2x16xf32>
    %17 = arith.addf %14, %16 : vector<2x16xf32>
    %cst_9 = arith.constant 0.00999999977 : f32
    %18 = vector.broadcast %cst_9 : f32 to vector<2x16xf32>
    %19 = arith.mulf %18, %17 : vector<2x16xf32>
    %20 = arith.maximumf %17, %19 : vector<2x16xf32>
    %21 = tpu.iota {dimensions = array<i32: 0>} : vector<8x2xi32>
    %22 = tpu.iota {dimensions = array<i32: 1>} : vector<8x2xi32>
    %c4_i32 = arith.constant 4 : i32
    %23 = vector.broadcast %c4_i32 : i32 to vector<8x2xi32>
    %24 = arith.muli %22, %23 : vector<8x2xi32>
    %25 = arith.cmpi sge, %21, %24 : vector<8x2xi32>
    %c4_i32_10 = arith.constant 4 : i32
    %26 = vector.broadcast %c4_i32_10 : i32 to vector<8x2xi32>
    %27 = arith.addi %24, %26 : vector<8x2xi32>
    %28 = arith.cmpi slt, %21, %27 : vector<8x2xi32>
    %29 = arith.andi %25, %28 : vector<8x2xi1>
    %30 = arith.extui %29 : vector<8x2xi1> to vector<8x2xi32>
    %31 = arith.sitofp %30 : vector<8x2xi32> to vector<8x2xf32>
    %32 = tpu.iota {dimensions = array<i32: 0>} : vector<2x8xi32>
    %c4_i32_11 = arith.constant 4 : i32
    %33 = vector.broadcast %c4_i32_11 : i32 to vector<2x8xi32>
    %34 = arith.muli %32, %33 : vector<2x8xi32>
    %35 = tpu.iota {dimensions = array<i32: 1>} : vector<2x8xi32>
    %36 = arith.cmpi sge, %35, %34 : vector<2x8xi32>
    %c4_i32_12 = arith.constant 4 : i32
    %37 = vector.broadcast %c4_i32_12 : i32 to vector<2x8xi32>
    %38 = arith.addi %34, %37 : vector<2x8xi32>
    %39 = arith.cmpi slt, %35, %38 : vector<2x8xi32>
    %40 = arith.andi %36, %39 : vector<2x8xi1>
    %41 = arith.extui %40 : vector<2x8xi1> to vector<2x8xi32>
    %42 = arith.sitofp %41 : vector<2x8xi32> to vector<2x8xf32>
    %43 = tpu.iota {dimensions = array<i32: 0>} : vector<16x2xi32>
    %44 = tpu.iota {dimensions = array<i32: 1>} : vector<16x2xi32>
    %c8_i32 = arith.constant 8 : i32
    %45 = vector.broadcast %c8_i32 : i32 to vector<16x2xi32>
    %46 = arith.muli %44, %45 : vector<16x2xi32>
    %47 = arith.cmpi sge, %43, %46 : vector<16x2xi32>
    %c8_i32_13 = arith.constant 8 : i32
    %48 = vector.broadcast %c8_i32_13 : i32 to vector<16x2xi32>
    %49 = arith.addi %46, %48 : vector<16x2xi32>
    %50 = arith.cmpi slt, %43, %49 : vector<16x2xi32>
    %51 = arith.andi %47, %50 : vector<16x2xi1>
    %52 = arith.extui %51 : vector<16x2xi1> to vector<16x2xi32>
    %53 = arith.sitofp %52 : vector<16x2xi32> to vector<16x2xf32>
    %cst_14 = arith.constant 0.353553385 : f32
    %54 = vector.broadcast %cst_14 : f32 to vector<16x2xf32>
    %55 = arith.mulf %53, %54 : vector<16x2xf32>
    %56 = tpu.iota {dimensions = array<i32: 0>} : vector<2x16xi32>
    %c8_i32_15 = arith.constant 8 : i32
    %57 = vector.broadcast %c8_i32_15 : i32 to vector<2x16xi32>
    %58 = arith.muli %56, %57 : vector<2x16xi32>
    %59 = tpu.iota {dimensions = array<i32: 1>} : vector<2x16xi32>
    %60 = arith.cmpi sge, %59, %58 : vector<2x16xi32>
    %c8_i32_16 = arith.constant 8 : i32
    %61 = vector.broadcast %c8_i32_16 : i32 to vector<2x16xi32>
    %62 = arith.addi %58, %61 : vector<2x16xi32>
    %63 = arith.cmpi slt, %59, %62 : vector<2x16xi32>
    %64 = arith.andi %60, %63 : vector<2x16xi1>
    %65 = arith.extui %64 : vector<2x16xi1> to vector<2x16xi32>
    %66 = arith.sitofp %65 : vector<2x16xi32> to vector<2x16xf32>
    %67 = tpu.iota {dimensions = array<i32: 0>} : vector<8x1xi32>
    %c24 = arith.constant 24 : index
    %c0_17 = arith.constant 0 : index
    %68 = vector.load %arg8[%c24, %c0_17] : memref<760x192xf32, #tpu.memory_space<vmem>>, vector<8x16xf32>
    %cst_18 = arith.constant dense<0.000000e+00> : vector<2x16xf32>
    %69 = tpu.matmul %4, %68, %cst_18 {dimension_numbers = #tpu.dot_dimension_numbers<[1], [0], [0], [1], [0, 0, 1, 1], [], []>} : vector<2x8xf32>, vector<8x16xf32>, vector<2x16xf32> -> vector<2x16xf32>
    %c4 = arith.constant 4 : index
    %c0_19 = arith.constant 0 : index
    %70 = vector.load %arg9[%c4, %c0_19] : memref<24x512xf32, #tpu.memory_space<vmem>>, vector<1x16xf32>
    %71 = vector.broadcast %70 : vector<1x16xf32> to vector<2x16xf32>
    %72 = arith.addf %69, %71 : vector<2x16xf32>
    %c0_20 = arith.constant 0 : index
    %c0_21 = arith.constant 0 : index
    %73 = vector.load %arg2[%c0_20, %c0_21] : memref<8x16xf32, #tpu.memory_space<vmem>>, vector<8x16xf32>
    %c0_22 = arith.constant 0 : index
    %c0_23 = arith.constant 0 : index
    %74 = vector.load %arg3[%c0_22, %c0_23] : memref<8x1xf32, #tpu.memory_space<vmem>>, vector<8x1xf32>
    %c40 = arith.constant 40 : index
    %c0_24 = arith.constant 0 : index
    %75 = vector.load %arg8[%c40, %c0_24] : memref<760x192xf32, #tpu.memory_space<vmem>>, vector<16x16xf32>
    %cst_25 = arith.constant dense<0.000000e+00> : vector<2x16xf32>
    %76 = tpu.matmul %72, %75, %cst_25 {dimension_numbers = #tpu.dot_dimension_numbers<[1], [0], [0], [1], [0, 0, 1, 1], [], []>} : vector<2x16xf32>, vector<16x16xf32>, vector<2x16xf32> -> vector<2x16xf32>
    %c6 = arith.constant 6 : index
    %c0_26 = arith.constant 0 : index
    %77 = vector.load %arg9[%c6, %c0_26] : memref<24x512xf32, #tpu.memory_space<vmem>>, vector<1x16xf32>
    %78 = vector.broadcast %77 : vector<1x16xf32> to vector<2x16xf32>
    %79 = arith.addf %76, %78 : vector<2x16xf32>
    %c56 = arith.constant 56 : index
    %c0_27 = arith.constant 0 : index
    %80 = vector.load %arg8[%c56, %c0_27] : memref<760x192xf32, #tpu.memory_space<vmem>>, vector<16x16xf32>
    %cst_28 = arith.constant dense<0.000000e+00> : vector<8x16xf32>
    %81 = tpu.matmul %73, %80, %cst_28 {dimension_numbers = #tpu.dot_dimension_numbers<[1], [0], [0], [1], [0, 0, 1, 1], [], []>} : vector<8x16xf32>, vector<16x16xf32>, vector<8x16xf32> -> vector<8x16xf32>
    %c7 = arith.constant 7 : index
    %c0_29 = arith.constant 0 : index
    %82 = vector.load %arg9[%c7, %c0_29] : memref<24x512xf32, #tpu.memory_space<vmem>>, vector<1x16xf32>
    %83 = vector.broadcast %82 : vector<1x16xf32> to vector<8x16xf32>
    %84 = arith.addf %81, %83 : vector<8x16xf32>
    %c72 = arith.constant 72 : index
    %c0_30 = arith.constant 0 : index
    %85 = vector.load %arg8[%c72, %c0_30] : memref<760x192xf32, #tpu.memory_space<vmem>>, vector<16x16xf32>
    %cst_31 = arith.constant dense<0.000000e+00> : vector<8x16xf32>
    %86 = tpu.matmul %73, %85, %cst_31 {dimension_numbers = #tpu.dot_dimension_numbers<[1], [0], [0], [1], [0, 0, 1, 1], [], []>} : vector<8x16xf32>, vector<16x16xf32>, vector<8x16xf32> -> vector<8x16xf32>
    %c8_32 = arith.constant 8 : index
    %c0_33 = arith.constant 0 : index
    %87 = vector.load %arg9[%c8_32, %c0_33] : memref<24x512xf32, #tpu.memory_space<vmem>>, vector<1x16xf32>
    %88 = vector.broadcast %87 : vector<1x16xf32> to vector<8x16xf32>
    %89 = arith.addf %86, %88 : vector<8x16xf32>
    %cst_34 = arith.constant dense<0.000000e+00> : vector<8x16xf32>
    %90 = tpu.matmul %31, %79, %cst_34 {dimension_numbers = #tpu.dot_dimension_numbers<[1], [0], [0], [1], [0, 0, 1, 1], [], []>} : vector<8x2xf32>, vector<2x16xf32>, vector<8x16xf32> -> vector<8x16xf32>
    %91 = arith.mulf %90, %84 : vector<8x16xf32>
    %cst_35 = arith.constant dense<0.000000e+00> : vector<8x2xf32>
    %92 = tpu.matmul %91, %55, %cst_35 {dimension_numbers = #tpu.dot_dimension_numbers<[1], [0], [0], [1], [0, 0, 1, 1], [], []>} : vector<8x16xf32>, vector<16x2xf32>, vector<8x2xf32> -> vector<8x2xf32>
    %cst_36 = arith.constant 0.000000e+00 : f32
    %93 = vector.broadcast %cst_36 : f32 to vector<8x1xf32>
    %94 = arith.cmpf ogt, %74, %93 : vector<8x1xf32>
    %cst_37 = arith.constant -1.000000e+09 : f32
    %95 = vector.shape_cast %94 : vector<8x1xi1> to vector<8x1xi1>
    %96 = vector.broadcast %95 : vector<8x1xi1> to vector<8x2xi1>
    %97 = vector.broadcast %cst_37 : f32 to vector<8x2xf32>
    %98 = arith.select %96, %92, %97 : vector<8x2xi1>, vector<8x2xf32>
    %cst_38 = arith.constant 0.000000e+00 : f32
    %99 = vector.broadcast %cst_38 : f32 to vector<8x2xf32>
    %c0_i32_39 = arith.constant 0 : i32
    %100 = vector.broadcast %c0_i32_39 : i32 to vector<8x1xi32>
    %101 = arith.cmpi sge, %67, %100 : vector<8x1xi32>
    %c4_i32_40 = arith.constant 4 : i32
    %102 = vector.broadcast %c4_i32_40 : i32 to vector<8x1xi32>
    %103 = arith.cmpi slt, %67, %102 : vector<8x1xi32>
    %104 = arith.andi %101, %103 : vector<8x1xi1>
    %cst_41 = arith.constant -3.000000e+38 : f32
    %105 = vector.shape_cast %104 : vector<8x1xi1> to vector<8x1xi1>
    %106 = vector.broadcast %105 : vector<8x1xi1> to vector<8x2xi1>
    %107 = vector.broadcast %cst_41 : f32 to vector<8x2xf32>
    %108 = arith.select %106, %98, %107 : vector<8x2xi1>, vector<8x2xf32>
    %cst_42 = arith.constant dense<0xFF800000> : vector<2xf32>
    %109 = vector.multi_reduction <maximumf>, %108, %cst_42 [0] : vector<8x2xf32> to vector<2xf32>
    %110 = vector.shape_cast %109 : vector<2xf32> to vector<1x2xf32>
    %cst_43 = arith.constant 0.000000e+00 : f32
    %111 = vector.shape_cast %104 : vector<8x1xi1> to vector<8x1xi1>
    %112 = vector.broadcast %111 : vector<8x1xi1> to vector<8x2xi1>
    %113 = vector.shape_cast %110 : vector<1x2xf32> to vector<1x2xf32>
    %114 = vector.broadcast %113 : vector<1x2xf32> to vector<8x2xf32>
    %115 = vector.broadcast %cst_43 : f32 to vector<8x2xf32>
    %116 = arith.select %112, %114, %115 : vector<8x2xi1>, vector<8x2xf32>
    %117 = arith.addf %99, %116 : vector<8x2xf32>
    %c4_i32_44 = arith.constant 4 : i32
    %118 = vector.broadcast %c4_i32_44 : i32 to vector<8x1xi32>
    %119 = arith.cmpi sge, %67, %118 : vector<8x1xi32>
    %c8_i32_45 = arith.constant 8 : i32
    %120 = vector.broadcast %c8_i32_45 : i32 to vector<8x1xi32>
    %121 = arith.cmpi slt, %67, %120 : vector<8x1xi32>
    %122 = arith.andi %119, %121 : vector<8x1xi1>
    %cst_46 = arith.constant -3.000000e+38 : f32
    %123 = vector.shape_cast %122 : vector<8x1xi1> to vector<8x1xi1>
    %124 = vector.broadcast %123 : vector<8x1xi1> to vector<8x2xi1>
    %125 = vector.broadcast %cst_46 : f32 to vector<8x2xf32>
    %126 = arith.select %124, %98, %125 : vector<8x2xi1>, vector<8x2xf32>
    %cst_47 = arith.constant dense<0xFF800000> : vector<2xf32>
    %127 = vector.multi_reduction <maximumf>, %126, %cst_47 [0] : vector<8x2xf32> to vector<2xf32>
    %128 = vector.shape_cast %127 : vector<2xf32> to vector<1x2xf32>
    %cst_48 = arith.constant 0.000000e+00 : f32
    %129 = vector.shape_cast %122 : vector<8x1xi1> to vector<8x1xi1>
    %130 = vector.broadcast %129 : vector<8x1xi1> to vector<8x2xi1>
    %131 = vector.shape_cast %128 : vector<1x2xf32> to vector<1x2xf32>
    %132 = vector.broadcast %131 : vector<1x2xf32> to vector<8x2xf32>
    %133 = vector.broadcast %cst_48 : f32 to vector<8x2xf32>
    %134 = arith.select %130, %132, %133 : vector<8x2xi1>, vector<8x2xf32>
    %135 = arith.addf %117, %134 : vector<8x2xf32>
    %136 = arith.subf %98, %135 : vector<8x2xf32>
    %137 = math.exp %136 : vector<8x2xf32>
    %cst_49 = arith.constant dense<0.000000e+00> : vector<2x2xf32>
    %138 = tpu.matmul %42, %137, %cst_49 {dimension_numbers = #tpu.dot_dimension_numbers<[1], [0], [0], [1], [0, 0, 1, 1], [], []>} : vector<2x8xf32>, vector<8x2xf32>, vector<2x2xf32> -> vector<2x2xf32>
    %cst_50 = arith.constant 1.000000e+00 : f32
    %139 = vector.broadcast %cst_50 : f32 to vector<2x2xf32>
    %140 = arith.divf %139, %138 : vector<2x2xf32>
    %cst_51 = arith.constant dense<0.000000e+00> : vector<8x2xf32>
    %141 = tpu.matmul %31, %140, %cst_51 {dimension_numbers = #tpu.dot_dimension_numbers<[1], [0], [0], [1], [0, 0, 1, 1], [], []>} : vector<8x2xf32>, vector<2x2xf32>, vector<8x2xf32> -> vector<8x2xf32>
    %142 = arith.mulf %137, %141 : vector<8x2xf32>
    %cst_52 = arith.constant dense<0.000000e+00> : vector<8x16xf32>
    %143 = tpu.matmul %142, %66, %cst_52 {dimension_numbers = #tpu.dot_dimension_numbers<[1], [0], [0], [1], [0, 0, 1, 1], [], []>} : vector<8x2xf32>, vector<2x16xf32>, vector<8x16xf32> -> vector<8x16xf32>
    %144 = arith.mulf %143, %89 : vector<8x16xf32>
    %cst_53 = arith.constant dense<0.000000e+00> : vector<2x16xf32>
    %145 = tpu.matmul %42, %144, %cst_53 {dimension_numbers = #tpu.dot_dimension_numbers<[1], [0], [0], [1], [0, 0, 1, 1], [], []>} : vector<2x8xf32>, vector<8x16xf32>, vector<2x16xf32> -> vector<2x16xf32>
    %c88 = arith.constant 88 : index
    %c0_54 = arith.constant 0 : index
    %146 = vector.load %arg8[%c88, %c0_54] : memref<760x192xf32, #tpu.memory_space<vmem>>, vector<16x16xf32>
    %cst_55 = arith.constant dense<0.000000e+00> : vector<2x16xf32>
    %147 = tpu.matmul %145, %146, %cst_55 {dimension_numbers = #tpu.dot_dimension_numbers<[1], [0], [0], [1], [0, 0, 1, 1], [], []>} : vector<2x16xf32>, vector<16x16xf32>, vector<2x16xf32> -> vector<2x16xf32>
    %c9 = arith.constant 9 : index
    %c0_56 = arith.constant 0 : index
    %148 = vector.load %arg9[%c9, %c0_56] : memref<24x512xf32, #tpu.memory_space<vmem>>, vector<1x16xf32>
    %149 = vector.broadcast %148 : vector<1x16xf32> to vector<2x16xf32>
    %150 = arith.addf %147, %149 : vector<2x16xf32>
    %c104 = arith.constant 104 : index
    %c0_57 = arith.constant 0 : index
    %151 = vector.load %arg8[%c104, %c0_57] : memref<760x192xf32, #tpu.memory_space<vmem>>, vector<16x16xf32>
    %cst_58 = arith.constant dense<0.000000e+00> : vector<2x16xf32>
    %152 = tpu.matmul %72, %151, %cst_58 {dimension_numbers = #tpu.dot_dimension_numbers<[1], [0], [0], [1], [0, 0, 1, 1], [], []>} : vector<2x16xf32>, vector<16x16xf32>, vector<2x16xf32> -> vector<2x16xf32>
    %c10 = arith.constant 10 : index
    %c0_59 = arith.constant 0 : index
    %153 = vector.load %arg9[%c10, %c0_59] : memref<24x512xf32, #tpu.memory_space<vmem>>, vector<1x16xf32>
    %154 = vector.broadcast %153 : vector<1x16xf32> to vector<2x16xf32>
    %155 = arith.addf %152, %154 : vector<2x16xf32>
    %c32 = arith.constant 32 : index
    %c0_60 = arith.constant 0 : index
    %156 = vector.load %arg8[%c32, %c0_60] : memref<760x192xf32, #tpu.memory_space<vmem>>, vector<8x16xf32>
    %cst_61 = arith.constant dense<0.000000e+00> : vector<2x16xf32>
    %157 = tpu.matmul %4, %156, %cst_61 {dimension_numbers = #tpu.dot_dimension_numbers<[1], [0], [0], [1], [0, 0, 1, 1], [], []>} : vector<2x8xf32>, vector<8x16xf32>, vector<2x16xf32> -> vector<2x16xf32>
    %c5 = arith.constant 5 : index
    %c0_62 = arith.constant 0 : index
    %158 = vector.load %arg9[%c5, %c0_62] : memref<24x512xf32, #tpu.memory_space<vmem>>, vector<1x16xf32>
    %159 = vector.broadcast %158 : vector<1x16xf32> to vector<2x16xf32>
    %160 = arith.addf %157, %159 : vector<2x16xf32>
    %c0_63 = arith.constant 0 : index
    %c0_64 = arith.constant 0 : index
    %161 = vector.load %arg4[%c0_63, %c0_64] : memref<8x16xf32, #tpu.memory_space<vmem>>, vector<8x16xf32>
    %c0_65 = arith.constant 0 : index
    %c0_66 = arith.constant 0 : index
    %162 = vector.load %arg5[%c0_65, %c0_66] : memref<8x1xf32, #tpu.memory_space<vmem>>, vector<8x1xf32>
    %c120 = arith.constant 120 : index
    %c0_67 = arith.constant 0 : index
    %163 = vector.load %arg8[%c120, %c0_67] : memref<760x192xf32, #tpu.memory_space<vmem>>, vector<16x16xf32>
    %cst_68 = arith.constant dense<0.000000e+00> : vector<2x16xf32>
    %164 = tpu.matmul %160, %163, %cst_68 {dimension_numbers = #tpu.dot_dimension_numbers<[1], [0], [0], [1], [0, 0, 1, 1], [], []>} : vector<2x16xf32>, vector<16x16xf32>, vector<2x16xf32> -> vector<2x16xf32>
    %c11 = arith.constant 11 : index
    %c0_69 = arith.constant 0 : index
    %165 = vector.load %arg9[%c11, %c0_69] : memref<24x512xf32, #tpu.memory_space<vmem>>, vector<1x16xf32>
    %166 = vector.broadcast %165 : vector<1x16xf32> to vector<2x16xf32>
    %167 = arith.addf %164, %166 : vector<2x16xf32>
    %c136 = arith.constant 136 : index
    %c0_70 = arith.constant 0 : index
    %168 = vector.load %arg8[%c136, %c0_70] : memref<760x192xf32, #tpu.memory_space<vmem>>, vector<16x16xf32>
    %cst_71 = arith.constant dense<0.000000e+00> : vector<8x16xf32>
    %169 = tpu.matmul %161, %168, %cst_71 {dimension_numbers = #tpu.dot_dimension_numbers<[1], [0], [0], [1], [0, 0, 1, 1], [], []>} : vector<8x16xf32>, vector<16x16xf32>, vector<8x16xf32> -> vector<8x16xf32>
    %c12 = arith.constant 12 : index
    %c0_72 = arith.constant 0 : index
    %170 = vector.load %arg9[%c12, %c0_72] : memref<24x512xf32, #tpu.memory_space<vmem>>, vector<1x16xf32>
    %171 = vector.broadcast %170 : vector<1x16xf32> to vector<8x16xf32>
    %172 = arith.addf %169, %171 : vector<8x16xf32>
    %c152 = arith.constant 152 : index
    %c0_73 = arith.constant 0 : index
    %173 = vector.load %arg8[%c152, %c0_73] : memref<760x192xf32, #tpu.memory_space<vmem>>, vector<16x16xf32>
    %cst_74 = arith.constant dense<0.000000e+00> : vector<8x16xf32>
    %174 = tpu.matmul %161, %173, %cst_74 {dimension_numbers = #tpu.dot_dimension_numbers<[1], [0], [0], [1], [0, 0, 1, 1], [], []>} : vector<8x16xf32>, vector<16x16xf32>, vector<8x16xf32> -> vector<8x16xf32>
    %c13 = arith.constant 13 : index
    %c0_75 = arith.constant 0 : index
    %175 = vector.load %arg9[%c13, %c0_75] : memref<24x512xf32, #tpu.memory_space<vmem>>, vector<1x16xf32>
    %176 = vector.broadcast %175 : vector<1x16xf32> to vector<8x16xf32>
    %177 = arith.addf %174, %176 : vector<8x16xf32>
    %cst_76 = arith.constant dense<0.000000e+00> : vector<8x16xf32>
    %178 = tpu.matmul %31, %167, %cst_76 {dimension_numbers = #tpu.dot_dimension_numbers<[1], [0], [0], [1], [0, 0, 1, 1], [], []>} : vector<8x2xf32>, vector<2x16xf32>, vector<8x16xf32> -> vector<8x16xf32>
    %179 = arith.mulf %178, %172 : vector<8x16xf32>
    %cst_77 = arith.constant dense<0.000000e+00> : vector<8x2xf32>
    %180 = tpu.matmul %179, %55, %cst_77 {dimension_numbers = #tpu.dot_dimension_numbers<[1], [0], [0], [1], [0, 0, 1, 1], [], []>} : vector<8x16xf32>, vector<16x2xf32>, vector<8x2xf32> -> vector<8x2xf32>
    %cst_78 = arith.constant 0.000000e+00 : f32
    %181 = vector.broadcast %cst_78 : f32 to vector<8x1xf32>
    %182 = arith.cmpf ogt, %162, %181 : vector<8x1xf32>
    %cst_79 = arith.constant -1.000000e+09 : f32
    %183 = vector.shape_cast %182 : vector<8x1xi1> to vector<8x1xi1>
    %184 = vector.broadcast %183 : vector<8x1xi1> to vector<8x2xi1>
    %185 = vector.broadcast %cst_79 : f32 to vector<8x2xf32>
    %186 = arith.select %184, %180, %185 : vector<8x2xi1>, vector<8x2xf32>
    %cst_80 = arith.constant 0.000000e+00 : f32
    %187 = vector.broadcast %cst_80 : f32 to vector<8x2xf32>
    %c0_i32_81 = arith.constant 0 : i32
    %188 = vector.broadcast %c0_i32_81 : i32 to vector<8x1xi32>
    %189 = arith.cmpi sge, %67, %188 : vector<8x1xi32>
    %c4_i32_82 = arith.constant 4 : i32
    %190 = vector.broadcast %c4_i32_82 : i32 to vector<8x1xi32>
    %191 = arith.cmpi slt, %67, %190 : vector<8x1xi32>
    %192 = arith.andi %189, %191 : vector<8x1xi1>
    %cst_83 = arith.constant -3.000000e+38 : f32
    %193 = vector.shape_cast %192 : vector<8x1xi1> to vector<8x1xi1>
    %194 = vector.broadcast %193 : vector<8x1xi1> to vector<8x2xi1>
    %195 = vector.broadcast %cst_83 : f32 to vector<8x2xf32>
    %196 = arith.select %194, %186, %195 : vector<8x2xi1>, vector<8x2xf32>
    %cst_84 = arith.constant dense<0xFF800000> : vector<2xf32>
    %197 = vector.multi_reduction <maximumf>, %196, %cst_84 [0] : vector<8x2xf32> to vector<2xf32>
    %198 = vector.shape_cast %197 : vector<2xf32> to vector<1x2xf32>
    %cst_85 = arith.constant 0.000000e+00 : f32
    %199 = vector.shape_cast %192 : vector<8x1xi1> to vector<8x1xi1>
    %200 = vector.broadcast %199 : vector<8x1xi1> to vector<8x2xi1>
    %201 = vector.shape_cast %198 : vector<1x2xf32> to vector<1x2xf32>
    %202 = vector.broadcast %201 : vector<1x2xf32> to vector<8x2xf32>
    %203 = vector.broadcast %cst_85 : f32 to vector<8x2xf32>
    %204 = arith.select %200, %202, %203 : vector<8x2xi1>, vector<8x2xf32>
    %205 = arith.addf %187, %204 : vector<8x2xf32>
    %c4_i32_86 = arith.constant 4 : i32
    %206 = vector.broadcast %c4_i32_86 : i32 to vector<8x1xi32>
    %207 = arith.cmpi sge, %67, %206 : vector<8x1xi32>
    %c8_i32_87 = arith.constant 8 : i32
    %208 = vector.broadcast %c8_i32_87 : i32 to vector<8x1xi32>
    %209 = arith.cmpi slt, %67, %208 : vector<8x1xi32>
    %210 = arith.andi %207, %209 : vector<8x1xi1>
    %cst_88 = arith.constant -3.000000e+38 : f32
    %211 = vector.shape_cast %210 : vector<8x1xi1> to vector<8x1xi1>
    %212 = vector.broadcast %211 : vector<8x1xi1> to vector<8x2xi1>
    %213 = vector.broadcast %cst_88 : f32 to vector<8x2xf32>
    %214 = arith.select %212, %186, %213 : vector<8x2xi1>, vector<8x2xf32>
    %cst_89 = arith.constant dense<0xFF800000> : vector<2xf32>
    %215 = vector.multi_reduction <maximumf>, %214, %cst_89 [0] : vector<8x2xf32> to vector<2xf32>
    %216 = vector.shape_cast %215 : vector<2xf32> to vector<1x2xf32>
    %cst_90 = arith.constant 0.000000e+00 : f32
    %217 = vector.shape_cast %210 : vector<8x1xi1> to vector<8x1xi1>
    %218 = vector.broadcast %217 : vector<8x1xi1> to vector<8x2xi1>
    %219 = vector.shape_cast %216 : vector<1x2xf32> to vector<1x2xf32>
    %220 = vector.broadcast %219 : vector<1x2xf32> to vector<8x2xf32>
    %221 = vector.broadcast %cst_90 : f32 to vector<8x2xf32>
    %222 = arith.select %218, %220, %221 : vector<8x2xi1>, vector<8x2xf32>
    %223 = arith.addf %205, %222 : vector<8x2xf32>
    %224 = arith.subf %186, %223 : vector<8x2xf32>
    %225 = math.exp %224 : vector<8x2xf32>
    %cst_91 = arith.constant dense<0.000000e+00> : vector<2x2xf32>
    %226 = tpu.matmul %42, %225, %cst_91 {dimension_numbers = #tpu.dot_dimension_numbers<[1], [0], [0], [1], [0, 0, 1, 1], [], []>} : vector<2x8xf32>, vector<8x2xf32>, vector<2x2xf32> -> vector<2x2xf32>
    %cst_92 = arith.constant 1.000000e+00 : f32
    %227 = vector.broadcast %cst_92 : f32 to vector<2x2xf32>
    %228 = arith.divf %227, %226 : vector<2x2xf32>
    %cst_93 = arith.constant dense<0.000000e+00> : vector<8x2xf32>
    %229 = tpu.matmul %31, %228, %cst_93 {dimension_numbers = #tpu.dot_dimension_numbers<[1], [0], [0], [1], [0, 0, 1, 1], [], []>} : vector<8x2xf32>, vector<2x2xf32>, vector<8x2xf32> -> vector<8x2xf32>
    %230 = arith.mulf %225, %229 : vector<8x2xf32>
    %cst_94 = arith.constant dense<0.000000e+00> : vector<8x16xf32>
    %231 = tpu.matmul %230, %66, %cst_94 {dimension_numbers = #tpu.dot_dimension_numbers<[1], [0], [0], [1], [0, 0, 1, 1], [], []>} : vector<8x2xf32>, vector<2x16xf32>, vector<8x16xf32> -> vector<8x16xf32>
    %232 = arith.mulf %231, %177 : vector<8x16xf32>
    %cst_95 = arith.constant dense<0.000000e+00> : vector<2x16xf32>
    %233 = tpu.matmul %42, %232, %cst_95 {dimension_numbers = #tpu.dot_dimension_numbers<[1], [0], [0], [1], [0, 0, 1, 1], [], []>} : vector<2x8xf32>, vector<8x16xf32>, vector<2x16xf32> -> vector<2x16xf32>
    %c168 = arith.constant 168 : index
    %c0_96 = arith.constant 0 : index
    %234 = vector.load %arg8[%c168, %c0_96] : memref<760x192xf32, #tpu.memory_space<vmem>>, vector<16x16xf32>
    %cst_97 = arith.constant dense<0.000000e+00> : vector<2x16xf32>
    %235 = tpu.matmul %233, %234, %cst_97 {dimension_numbers = #tpu.dot_dimension_numbers<[1], [0], [0], [1], [0, 0, 1, 1], [], []>} : vector<2x16xf32>, vector<16x16xf32>, vector<2x16xf32> -> vector<2x16xf32>
    %c14 = arith.constant 14 : index
    %c0_98 = arith.constant 0 : index
    %236 = vector.load %arg9[%c14, %c0_98] : memref<24x512xf32, #tpu.memory_space<vmem>>, vector<1x16xf32>
    %237 = vector.broadcast %236 : vector<1x16xf32> to vector<2x16xf32>
    %238 = arith.addf %235, %237 : vector<2x16xf32>
    %c184 = arith.constant 184 : index
    %c0_99 = arith.constant 0 : index
    %239 = vector.load %arg8[%c184, %c0_99] : memref<760x192xf32, #tpu.memory_space<vmem>>, vector<16x16xf32>
    %cst_100 = arith.constant dense<0.000000e+00> : vector<2x16xf32>
    %240 = tpu.matmul %160, %239, %cst_100 {dimension_numbers = #tpu.dot_dimension_numbers<[1], [0], [0], [1], [0, 0, 1, 1], [], []>} : vector<2x16xf32>, vector<16x16xf32>, vector<2x16xf32> -> vector<2x16xf32>
    %c15 = arith.constant 15 : index
    %c0_101 = arith.constant 0 : index
    %241 = vector.load %arg9[%c15, %c0_101] : memref<24x512xf32, #tpu.memory_space<vmem>>, vector<1x16xf32>
    %242 = vector.broadcast %241 : vector<1x16xf32> to vector<2x16xf32>
    %243 = arith.addf %240, %242 : vector<2x16xf32>
    %c0_i32_102 = arith.constant 0 : i32
    %244 = tpu.memref_slice %arg13[%c0_i32_102] : memref<2x!tpu.dma_semaphore, #tpu.memory_space<semaphore_mem>> -> memref<1x!tpu.dma_semaphore, #tpu.memory_space<semaphore_mem>>
    %245 = tpu.memref_squeeze %244 : memref<1x!tpu.dma_semaphore, #tpu.memory_space<semaphore_mem>> -> memref<!tpu.dma_semaphore, #tpu.memory_space<semaphore_mem>>
    tpu.wait_dma2 semaphore(%245 : memref<!tpu.dma_semaphore, #tpu.memory_space<semaphore_mem>>) src(%arg6 : memref<1024x512xbf16, #tpu.memory_space<any>>) dst(%arg11 : memref<1024x512xbf16, #tpu.memory_space<vmem>>)
    %c1_i32_103 = arith.constant 1 : i32
    %246 = tpu.memref_slice %arg13[%c1_i32_103] : memref<2x!tpu.dma_semaphore, #tpu.memory_space<semaphore_mem>> -> memref<1x!tpu.dma_semaphore, #tpu.memory_space<semaphore_mem>>
    %247 = tpu.memref_squeeze %246 : memref<1x!tpu.dma_semaphore, #tpu.memory_space<semaphore_mem>> -> memref<!tpu.dma_semaphore, #tpu.memory_space<semaphore_mem>>
    tpu.wait_dma2 semaphore(%247 : memref<!tpu.dma_semaphore, #tpu.memory_space<semaphore_mem>>) src(%arg7 : memref<512x192xbf16, #tpu.memory_space<any>>) dst(%arg12 : memref<512x192xbf16, #tpu.memory_space<vmem>>)
    %c0_104 = arith.constant 0 : index
    %c0_105 = arith.constant 0 : index
    %248 = vector.load %arg1[%c0_104, %c0_105] : memref<2x1024xf32, #tpu.memory_space<vmem>>, vector<2x1024xf32>
    %249 = arith.truncf %248 : vector<2x1024xf32> to vector<2x1024xbf16>
    %c0_106 = arith.constant 0 : index
    %c0_107 = arith.constant 0 : index
    %250 = vector.load %arg11[%c0_106, %c0_107] : memref<1024x512xbf16, #tpu.memory_space<vmem>>, vector<1024x512xbf16>
    %cst_108 = arith.constant dense<0.000000e+00> : vector<2x512xf32>
    %251 = tpu.matmul %249, %250, %cst_108 {dimension_numbers = #tpu.dot_dimension_numbers<[1], [0], [0], [1], [0, 0, 1, 1], [], []>} : vector<2x1024xbf16>, vector<1024x512xbf16>, vector<2x512xf32> -> vector<2x512xf32>
    %c2 = arith.constant 2 : index
    %c0_109 = arith.constant 0 : index
    %252 = vector.load %arg9[%c2, %c0_109] : memref<24x512xf32, #tpu.memory_space<vmem>>, vector<1x512xf32>
    %253 = vector.broadcast %252 : vector<1x512xf32> to vector<2x512xf32>
    %254 = arith.addf %251, %253 : vector<2x512xf32>
    %cst_110 = arith.constant 0.00999999977 : f32
    %255 = vector.broadcast %cst_110 : f32 to vector<2x512xf32>
    %256 = arith.mulf %255, %254 : vector<2x512xf32>
    %257 = arith.maximumf %254, %256 : vector<2x512xf32>
    %258 = arith.truncf %257 : vector<2x512xf32> to vector<2x512xbf16>
    %c0_111 = arith.constant 0 : index
    %c0_112 = arith.constant 0 : index
    %259 = vector.load %arg12[%c0_111, %c0_112] : memref<512x192xbf16, #tpu.memory_space<vmem>>, vector<512x192xbf16>
    %cst_113 = arith.constant dense<0.000000e+00> : vector<2x192xf32>
    %260 = tpu.matmul %258, %259, %cst_113 {dimension_numbers = #tpu.dot_dimension_numbers<[1], [0], [0], [1], [0, 0, 1, 1], [], []>} : vector<2x512xbf16>, vector<512x192xbf16>, vector<2x192xf32> -> vector<2x192xf32>
    %c3 = arith.constant 3 : index
    %c0_114 = arith.constant 0 : index
    %261 = vector.load %arg9[%c3, %c0_114] : memref<24x512xf32, #tpu.memory_space<vmem>>, vector<1x192xf32>
    %262 = vector.broadcast %261 : vector<1x192xf32> to vector<2x192xf32>
    %263 = arith.addf %260, %262 : vector<2x192xf32>
    %cst_115 = arith.constant 0.00999999977 : f32
    %264 = vector.broadcast %cst_115 : f32 to vector<2x192xf32>
    %265 = arith.mulf %264, %263 : vector<2x192xf32>
    %266 = arith.maximumf %263, %265 : vector<2x192xf32>
    %cst_116 = arith.constant 0.000000e+00 : f32
    %267 = vector.broadcast %cst_116 : f32 to vector<2x64xf32>
    %c200 = arith.constant 200 : index
    %c0_117 = arith.constant 0 : index
    %268 = vector.load %arg8[%c200, %c0_117] : memref<760x192xf32, #tpu.memory_space<vmem>>, vector<192x64xf32>
    %cst_118 = arith.constant dense<0.000000e+00> : vector<2x64xf32>
    %269 = tpu.matmul %266, %268, %cst_118 {dimension_numbers = #tpu.dot_dimension_numbers<[1], [0], [0], [1], [0, 0, 1, 1], [], []>} : vector<2x192xf32>, vector<192x64xf32>, vector<2x64xf32> -> vector<2x64xf32>
    %270 = arith.addf %267, %269 : vector<2x64xf32>
    %c392 = arith.constant 392 : index
    %c0_119 = arith.constant 0 : index
    %271 = vector.load %arg8[%c392, %c0_119] : memref<760x192xf32, #tpu.memory_space<vmem>>, vector<16x64xf32>
    %cst_120 = arith.constant dense<0.000000e+00> : vector<2x64xf32>
    %272 = tpu.matmul %20, %271, %cst_120 {dimension_numbers = #tpu.dot_dimension_numbers<[1], [0], [0], [1], [0, 0, 1, 1], [], []>} : vector<2x16xf32>, vector<16x64xf32>, vector<2x64xf32> -> vector<2x64xf32>
    %273 = arith.addf %270, %272 : vector<2x64xf32>
    %c408 = arith.constant 408 : index
    %c0_121 = arith.constant 0 : index
    %274 = vector.load %arg8[%c408, %c0_121] : memref<760x192xf32, #tpu.memory_space<vmem>>, vector<16x64xf32>
    %cst_122 = arith.constant dense<0.000000e+00> : vector<2x64xf32>
    %275 = tpu.matmul %150, %274, %cst_122 {dimension_numbers = #tpu.dot_dimension_numbers<[1], [0], [0], [1], [0, 0, 1, 1], [], []>} : vector<2x16xf32>, vector<16x64xf32>, vector<2x64xf32> -> vector<2x64xf32>
    %276 = arith.addf %273, %275 : vector<2x64xf32>
    %c424 = arith.constant 424 : index
    %c0_123 = arith.constant 0 : index
    %277 = vector.load %arg8[%c424, %c0_123] : memref<760x192xf32, #tpu.memory_space<vmem>>, vector<16x64xf32>
    %cst_124 = arith.constant dense<0.000000e+00> : vector<2x64xf32>
    %278 = tpu.matmul %155, %277, %cst_124 {dimension_numbers = #tpu.dot_dimension_numbers<[1], [0], [0], [1], [0, 0, 1, 1], [], []>} : vector<2x16xf32>, vector<16x64xf32>, vector<2x64xf32> -> vector<2x64xf32>
    %279 = arith.addf %276, %278 : vector<2x64xf32>
    %c440 = arith.constant 440 : index
    %c0_125 = arith.constant 0 : index
    %280 = vector.load %arg8[%c440, %c0_125] : memref<760x192xf32, #tpu.memory_space<vmem>>, vector<16x64xf32>
    %cst_126 = arith.constant dense<0.000000e+00> : vector<2x64xf32>
    %281 = tpu.matmul %238, %280, %cst_126 {dimension_numbers = #tpu.dot_dimension_numbers<[1], [0], [0], [1], [0, 0, 1, 1], [], []>} : vector<2x16xf32>, vector<16x64xf32>, vector<2x64xf32> -> vector<2x64xf32>
    %282 = arith.addf %279, %281 : vector<2x64xf32>
    %c456 = arith.constant 456 : index
    %c0_127 = arith.constant 0 : index
    %283 = vector.load %arg8[%c456, %c0_127] : memref<760x192xf32, #tpu.memory_space<vmem>>, vector<16x64xf32>
    %cst_128 = arith.constant dense<0.000000e+00> : vector<2x64xf32>
    %284 = tpu.matmul %243, %283, %cst_128 {dimension_numbers = #tpu.dot_dimension_numbers<[1], [0], [0], [1], [0, 0, 1, 1], [], []>} : vector<2x16xf32>, vector<16x64xf32>, vector<2x64xf32> -> vector<2x64xf32>
    %285 = arith.addf %282, %284 : vector<2x64xf32>
    %c16 = arith.constant 16 : index
    %c0_129 = arith.constant 0 : index
    %286 = vector.load %arg9[%c16, %c0_129] : memref<24x512xf32, #tpu.memory_space<vmem>>, vector<1x64xf32>
    %287 = vector.broadcast %286 : vector<1x64xf32> to vector<2x64xf32>
    %288 = arith.addf %285, %287 : vector<2x64xf32>
    %cst_130 = arith.constant 0.00999999977 : f32
    %289 = vector.broadcast %cst_130 : f32 to vector<2x64xf32>
    %290 = arith.mulf %289, %288 : vector<2x64xf32>
    %291 = arith.maximumf %288, %290 : vector<2x64xf32>
    %c472 = arith.constant 472 : index
    %c0_131 = arith.constant 0 : index
    %292 = vector.load %arg8[%c472, %c0_131] : memref<760x192xf32, #tpu.memory_space<vmem>>, vector<64x192xf32>
    %cst_132 = arith.constant dense<0.000000e+00> : vector<2x192xf32>
    %293 = tpu.matmul %291, %292, %cst_132 {dimension_numbers = #tpu.dot_dimension_numbers<[1], [0], [0], [1], [0, 0, 1, 1], [], []>} : vector<2x64xf32>, vector<64x192xf32>, vector<2x192xf32> -> vector<2x192xf32>
    %c17 = arith.constant 17 : index
    %c0_133 = arith.constant 0 : index
    %294 = vector.load %arg9[%c17, %c0_133] : memref<24x512xf32, #tpu.memory_space<vmem>>, vector<1x192xf32>
    %295 = vector.broadcast %294 : vector<1x192xf32> to vector<2x192xf32>
    %296 = arith.addf %293, %295 : vector<2x192xf32>
    %cst_134 = arith.constant 0.00999999977 : f32
    %297 = vector.broadcast %cst_134 : f32 to vector<2x192xf32>
    %298 = arith.mulf %297, %296 : vector<2x192xf32>
    %299 = arith.maximumf %296, %298 : vector<2x192xf32>
    %c536 = arith.constant 536 : index
    %c0_135 = arith.constant 0 : index
    %300 = vector.load %arg8[%c536, %c0_135] : memref<760x192xf32, #tpu.memory_space<vmem>>, vector<192x32xf32>
    %cst_136 = arith.constant dense<0.000000e+00> : vector<2x32xf32>
    %301 = tpu.matmul %299, %300, %cst_136 {dimension_numbers = #tpu.dot_dimension_numbers<[1], [0], [0], [1], [0, 0, 1, 1], [], []>} : vector<2x192xf32>, vector<192x32xf32>, vector<2x32xf32> -> vector<2x32xf32>
    %c18 = arith.constant 18 : index
    %c0_137 = arith.constant 0 : index
    %302 = vector.load %arg9[%c18, %c0_137] : memref<24x512xf32, #tpu.memory_space<vmem>>, vector<1x32xf32>
    %303 = vector.broadcast %302 : vector<1x32xf32> to vector<2x32xf32>
    %304 = arith.addf %301, %303 : vector<2x32xf32>
    %cst_138 = arith.constant 0.00999999977 : f32
    %305 = vector.broadcast %cst_138 : f32 to vector<2x32xf32>
    %306 = arith.mulf %305, %304 : vector<2x32xf32>
    %307 = arith.maximumf %304, %306 : vector<2x32xf32>
    %c728 = arith.constant 728 : index
    %c0_139 = arith.constant 0 : index
    %308 = vector.load %arg8[%c728, %c0_139] : memref<760x192xf32, #tpu.memory_space<vmem>>, vector<32x128xf32>
    %cst_140 = arith.constant dense<0.000000e+00> : vector<2x128xf32>
    %309 = tpu.matmul %307, %308, %cst_140 {dimension_numbers = #tpu.dot_dimension_numbers<[1], [0], [0], [1], [0, 0, 1, 1], [], []>} : vector<2x32xf32>, vector<32x128xf32>, vector<2x128xf32> -> vector<2x128xf32>
    %c19 = arith.constant 19 : index
    %c0_141 = arith.constant 0 : index
    %310 = vector.load %arg9[%c19, %c0_141] : memref<24x512xf32, #tpu.memory_space<vmem>>, vector<1x128xf32>
    %311 = vector.broadcast %310 : vector<1x128xf32> to vector<2x128xf32>
    %312 = arith.addf %309, %311 : vector<2x128xf32>
    %313 = tpu.iota {dimensions = array<i32: 1>} : vector<2x128xi32>
    %c36_i32 = arith.constant 36 : i32
    %314 = vector.broadcast %c36_i32 : i32 to vector<2x128xi32>
    %315 = arith.cmpi slt, %313, %314 : vector<2x128xi32>
    %cst_142 = arith.constant -3.000000e+38 : f32
    %316 = vector.broadcast %cst_142 : f32 to vector<2x128xf32>
    %317 = arith.select %315, %312, %316 : vector<2x128xi1>, vector<2x128xf32>
    %cst_143 = arith.constant dense<0xFF800000> : vector<2xf32>
    %318 = vector.multi_reduction <maximumf>, %317, %cst_143 [1] : vector<2x128xf32> to vector<2xf32>
    %319 = vector.shape_cast %318 : vector<2xf32> to vector<2x1xf32>
    %320 = vector.broadcast %319 : vector<2x1xf32> to vector<2x128xf32>
    %321 = arith.subf %317, %320 : vector<2x128xf32>
    %322 = math.exp %321 : vector<2x128xf32>
    %cst_144 = arith.constant 0.000000e+00 : f32
    %323 = vector.broadcast %cst_144 : f32 to vector<2x128xf32>
    %324 = arith.select %315, %322, %323 : vector<2x128xi1>, vector<2x128xf32>
    %cst_145 = arith.constant dense<0.000000e+00> : vector<2xf32>
    %325 = vector.multi_reduction <add>, %324, %cst_145 [1] : vector<2x128xf32> to vector<2xf32>
    %326 = vector.shape_cast %325 : vector<2xf32> to vector<2x1xf32>
    %327 = math.log %326 : vector<2x1xf32>
    %328 = vector.broadcast %327 : vector<2x1xf32> to vector<2x128xf32>
    %329 = arith.subf %321, %328 : vector<2x128xf32>
    %330 = vector.broadcast %319 : vector<2x1xf32> to vector<2x128xf32>
    %331 = arith.cmpf oge, %317, %330 : vector<2x128xf32>
    %c36_i32_146 = arith.constant 36 : i32
    %332 = vector.broadcast %c36_i32_146 : i32 to vector<2x128xi32>
    %333 = arith.select %331, %313, %332 : vector<2x128xi1>, vector<2x128xi32>
    %cst_147 = arith.constant dense<2147483647> : vector<2xi32>
    %334 = vector.multi_reduction <minsi>, %333, %cst_147 [1] : vector<2x128xi32> to vector<2xi32>
    %335 = vector.shape_cast %334 : vector<2xi32> to vector<2x1xi32>
    %336 = vector.broadcast %335 : vector<2x1xi32> to vector<2x128xi32>
    %337 = arith.cmpi eq, %313, %336 : vector<2x128xi32>
    %cst_148 = arith.constant 0.000000e+00 : f32
    %338 = vector.broadcast %cst_148 : f32 to vector<2x128xf32>
    %339 = arith.select %337, %329, %338 : vector<2x128xi1>, vector<2x128xf32>
    %cst_149 = arith.constant dense<0.000000e+00> : vector<2xf32>
    %340 = vector.multi_reduction <add>, %339, %cst_149 [1] : vector<2x128xf32> to vector<2xf32>
    %341 = vector.shape_cast %340 : vector<2xf32> to vector<2x1xf32>
    %cst_150 = arith.constant 0.000000e+00 : f32
    %342 = vector.broadcast %cst_150 : f32 to vector<2x128xf32>
    %343 = arith.select %315, %312, %342 : vector<2x128xi1>, vector<2x128xf32>
    %c36_i32_151 = arith.constant 36 : i32
    %344 = vector.broadcast %c36_i32_151 : i32 to vector<2x128xi32>
    %345 = arith.cmpi eq, %313, %344 : vector<2x128xi32>
    %346 = arith.sitofp %335 : vector<2x1xi32> to vector<2x1xf32>
    %347 = vector.shape_cast %346 : vector<2x1xf32> to vector<2x1xf32>
    %348 = vector.broadcast %347 : vector<2x1xf32> to vector<2x128xf32>
    %349 = arith.select %345, %348, %343 : vector<2x128xi1>, vector<2x128xf32>
    %c37_i32 = arith.constant 37 : i32
    %350 = vector.broadcast %c37_i32 : i32 to vector<2x128xi32>
    %351 = arith.cmpi eq, %313, %350 : vector<2x128xi32>
    %352 = vector.shape_cast %341 : vector<2x1xf32> to vector<2x1xf32>
    %353 = vector.broadcast %352 : vector<2x1xf32> to vector<2x128xf32>
    %354 = arith.select %351, %353, %349 : vector<2x128xi1>, vector<2x128xf32>
    %c0_152 = arith.constant 0 : index
    %c0_153 = arith.constant 0 : index
    %355 = vector.load %arg10[%c0_152, %c0_153] : memref<2x128xf32, #tpu.memory_space<vmem>>, vector<2x128xf32>
    tpu.vector_store %arg10[%c0_152, %c0_153], %354 {strides = array<i32>} : memref<2x128xf32, #tpu.memory_space<vmem>>, vector<2x128xf32>,
    return
  }
}

</mosaic_0001>

<bundles_post_ra>
// kernel: robot_actor_forward.1
= control target key start
LH: loop header
LB: loop body
LE: loop exit
PB: predicated region body
PF: predicated region fallthrough
CT: control target
= control target key end

     0   :  { %s7757_s0 = inlined_call_operand.vmem [shape: f32[2,8], index: 0, kind: input, shape index: {}]   ;;  %s7758_s1 = inlined_call_operand.vmem [shape: f32[2,1024], index: 1, kind: input, shape index: {}]   ;;  %s7759_s2 = inlined_call_operand.vmem [shape: f32[8,16], index: 2, kind: input, shape index: {}]   ;;  %s7760_s3 = inlined_call_operand.vmem [shape: f32[8,1], index: 3, kind: input, shape index: {}]   ;;  %s7761_s4 = inlined_call_operand.vmem [shape: f32[8,16], index: 4, kind: input, shape index: {}]   ;;  %s7762_s5 = inlined_call_operand.vmem [shape: f32[8,1], index: 5, kind: input, shape index: {}]   ;;  %s7763_s6 = inlined_call_operand.vmem [shape: bf16[1024,512], index: 6, kind: input, shape index: {}]   ;;  %s7764_s7 = inlined_call_operand.vmem [shape: bf16[512,192], index: 7, kind: input, shape index: {}]   ;;  %s7765_s8 = inlined_call_operand.vmem [shape: f32[760,192], index: 8, kind: input, shape index: {}]   ;;  %s7766_s9 = inlined_call_operand.vmem [shape: f32[24,512], index: 9, kind: input, shape index: {}]   ;;  %s7767_s10 = inlined_call_operand.vmem [shape: f32[2,128], index: 10, kind: output, shape index: {}]  }
   0x1   :  { %v41_v0 = vld [vmem:[%s7763_s6] sm:$0xff]  ;;  %v43_v1 = vld [vmem:[%s7763_s6 + $0x8] sm:$0xff]  ;;  %v45_v2 = vld [vmem:[%s7763_s6 + $0x10] sm:$0xff] }
   0x2   :  { %42 = vst [vmem:[#allocation2] sm:$0xff] %v41_v0  ;;  %v47_v3 = vld [vmem:[%s7763_s6 + $0x18] sm:$0xff]  ;;  %v49_v4 = vld [vmem:[%s7763_s6 + $0x20] sm:$0xff]  ;;  %v51_v5 = vld [vmem:[%s7763_s6 + $0x28] sm:$0xff] }
   0x3   :  { %44 = vst [vmem:[#allocation2 + $0x8] sm:$0xff] %v43_v1  ;;  %v53_v6 = vld [vmem:[%s7763_s6 + $0x30] sm:$0xff]  ;;  %v55_v7 = vld [vmem:[%s7763_s6 + $0x38] sm:$0xff]  ;;  %v57_v8 = vld [vmem:[%s7763_s6 + $0x40] sm:$0xff] }
   0x4   :  { %46 = vst [vmem:[#allocation2 + $0x10] sm:$0xff] %v45_v2  ;;  %v59_v9 = vld [vmem:[%s7763_s6 + $0x48] sm:$0xff]  ;;  %v61_v10 = vld [vmem:[%s7763_s6 + $0x50] sm:$0xff]  ;;  %v63_v11 = vld [vmem:[%s7763_s6 + $0x58] sm:$0xff] }
   0x5   :  { %48 = vst [vmem:[#allocation2 + $0x18] sm:$0xff] %v47_v3  ;;  %v65_v12 = vld [vmem:[%s7763_s6 + $0x60] sm:$0xff]  ;;  %v67_v13 = vld [vmem:[%s7763_s6 + $0x68] sm:$0xff]  ;;  %v69_v14 = vld [vmem:[%s7763_s6 + $0x70] sm:$0xff] }
   0x6   :  { %50 = vst [vmem:[#allocation2 + $0x20] sm:$0xff] %v49_v4  ;;  %v71_v15 = vld [vmem:[%s7763_s6 + $0x78] sm:$0xff]  ;;  %v73_v16 = vld [vmem:[%s7763_s6 + $0x80] sm:$0xff]  ;;  %v75_v17 = vld [vmem:[%s7763_s6 + $0x88] sm:$0xff] }
   0x7   :  { %52 = vst [vmem:[#allocation2 + $0x28] sm:$0xff] %v51_v5  ;;  %v77_v18 = vld [vmem:[%s7763_s6 + $0x90] sm:$0xff]  ;;  %v79_v19 = vld [vmem:[%s7763_s6 + $0x98] sm:$0xff]  ;;  %v81_v20 = vld [vmem:[%s7763_s6 + $0xa0] sm:$0xff] }
   0x8   :  { %54 = vst [vmem:[#allocation2 + $0x30] sm:$0xff] %v53_v6  ;;  %v83_v21 = vld [vmem:[%s7763_s6 + $0xa8] sm:$0xff]  ;;  %v85_v22 = vld [vmem:[%s7763_s6 + $0xb0] sm:$0xff]  ;;  %v87_v23 = vld [vmem:[%s7763_s6 + $0xb8] sm:$0xff] }
   0x9   :  { %56 = vst [vmem:[#allocation2 + $0x38] sm:$0xff] %v55_v7  ;;  %v89_v24 = vld [vmem:[%s7763_s6 + $0xc0] sm:$0xff]  ;;  %v91_v25 = vld [vmem:[%s7763_s6 + $0xc8] sm:$0xff]  ;;  %v93_v26 = vld [vmem:[%s7763_s6 + $0xd0] sm:$0xff] }
   0xa   :  { %58 = vst [vmem:[#allocation2 + $0x40] sm:$0xff] %v57_v8  ;;  %v95_v27 = vld [vmem:[%s7763_s6 + $0xd8] sm:$0xff]  ;;  %v97_v28 = vld [vmem:[%s7763_s6 + $0xe0] sm:$0xff]  ;;  %v99_v29 = vld [vmem:[%s7763_s6 + $0xe8] sm:$0xff] }
   0xb   :  { %60 = vst [vmem:[#allocation2 + $0x48] sm:$0xff] %v59_v9  ;;  %v101_v30 = vld [vmem:[%s7763_s6 + $0xf0] sm:$0xff]  ;;  %v103_v31 = vld [vmem:[%s7763_s6 + $0xf8] sm:$0xff]  ;;  %v105_v32 = vld [vmem:[%s7763_s6 + $0x100] sm:$0xff] }
   0xc   :  { %62 = vst [vmem:[#allocation2 + $0x50] sm:$0xff] %v61_v10  ;;  %v107_v33 = vld [vmem:[%s7763_s6 + $0x108] sm:$0xff]  ;;  %v109_v34 = vld [vmem:[%s7763_s6 + $0x110] sm:$0xff]  ;;  %v111_v35 = vld [vmem:[%s7763_s6 + $0x118] sm:$0xff] }
   0xd   :  { %64 = vst [vmem:[#allocation2 + $0x58] sm:$0xff] %v63_v11  ;;  %v113_v36 = vld [vmem:[%s7763_s6 + $0x120] sm:$0xff]  ;;  %v115_v37 = vld [vmem:[%s7763_s6 + $0x128] sm:$0xff]  ;;  %v117_v38 = vld [vmem:[%s7763_s6 + $0x130] sm:$0xff] }
   0xe   :  { %66 = vst [vmem:[#allocation2 + $0x60] sm:$0xff] %v65_v12  ;;  %v119_v39 = vld [vmem:[%s7763_s6 + $0x138] sm:$0xff]  ;;  %v121_v40 = vld [vmem:[%s7763_s6 + $0x140] sm:$0xff]  ;;  %v123_v41 = vld [vmem:[%s7763_s6 + $0x148] sm:$0xff] }
   0xf   :  { %68 = vst [vmem:[#allocation2 + $0x68] sm:$0xff] %v67_v13  ;;  %v125_v42 = vld [vmem:[%s7763_s6 + $0x150] sm:$0xff]  ;;  %v127_v43 = vld [vmem:[%s7763_s6 + $0x158] sm:$0xff]  ;;  %v129_v44 = vld [vmem:[%s7763_s6 + $0x160] sm:$0xff] }
  0x10   :  { %70 = vst [vmem:[#allocation2 + $0x70] sm:$0xff] %v69_v14  ;;  %v131_v45 = vld [vmem:[%s7763_s6 + $0x168] sm:$0xff]  ;;  %v133_v46 = vld [vmem:[%s7763_s6 + $0x170] sm:$0xff]  ;;  %v135_v47 = vld [vmem:[%s7763_s6 + $0x178] sm:$0xff] }
  0x11   :  { %72 = vst [vmem:[#allocation2 + $0x78] sm:$0xff] %v71_v15  ;;  %v137_v48 = vld [vmem:[%s7763_s6 + $0x180] sm:$0xff]  ;;  %v139_v49 = vld [vmem:[%s7763_s6 + $0x188] sm:$0xff]  ;;  %v141_v50 = vld [vmem:[%s7763_s6 + $0x190] sm:$0xff] }
  0x12   :  { %74 = vst [vmem:[#allocation2 + $0x80] sm:$0xff] %v73_v16  ;;  %v143_v51 = vld [vmem:[%s7763_s6 + $0x198] sm:$0xff]  ;;  %v145_v52 = vld [vmem:[%s7763_s6 + $0x1a0] sm:$0xff]  ;;  %v147_v53 = vld [vmem:[%s7763_s6 + $0x1a8] sm:$0xff] }
  0x13   :  { %76 = vst [vmem:[#allocation2 + $0x88] sm:$0xff] %v75_v17  ;;  %v149_v54 = vld [vmem:[%s7763_s6 + $0x1b0] sm:$0xff]  ;;  %v151_v55 = vld [vmem:[%s7763_s6 + $0x1b8] sm:$0xff]  ;;  %v153_v56 = vld [vmem:[%s7763_s6 + $0x1c0] sm:$0xff] }
  0x14   :  { %78 = vst [vmem:[#allocation2 + $0x90] sm:$0xff] %v77_v18  ;;  %v155_v57 = vld [vmem:[%s7763_s6 + $0x1c8] sm:$0xff]  ;;  %v157_v58 = vld [vmem:[%s7763_s6 + $0x1d0] sm:$0xff]  ;;  %v159_v59 = vld [vmem:[%s7763_s6 + $0x1d8] sm:$0xff] }
  0x15   :  { %80 = vst [vmem:[#allocation2 + $0x98] sm:$0xff] %v79_v19  ;;  %v161_v60 = vld [vmem:[%s7763_s6 + $0x1e0] sm:$0xff]  ;;  %v163_v61 = vld [vmem:[%s7763_s6 + $0x1e8] sm:$0xff]  ;;  %v165_v62 = vld [vmem:[%s7763_s6 + $0x1f0] sm:$0xff] }
  0x16   :  { %82 = vst [vmem:[#allocation2 + $0xa0] sm:$0xff] %v81_v20  ;;  %v167_v63 = vld [vmem:[%s7763_s6 + $0x1f8] sm:$0xff]  ;;  %v169_v0 = vld [vmem:[%s7763_s6 + $0x200] sm:$0xff]  ;;  %v171_v1 = vld [vmem:[%s7763_s6 + $0x208] sm:$0xff] }
  0x17   :  { %84 = vst [vmem:[#allocation2 + $0xa8] sm:$0xff] %v83_v21  ;;  %v173_v2 = vld [vmem:[%s7763_s6 + $0x210] sm:$0xff]  ;;  %v175_v3 = vld [vmem:[%s7763_s6 + $0x218] sm:$0xff]  ;;  %v177_v4 = vld [vmem:[%s7763_s6 + $0x220] sm:$0xff] }
  0x18   :  { %86 = vst [vmem:[#allocation2 + $0xb0] sm:$0xff] %v85_v22  ;;  %v179_v5 = vld [vmem:[%s7763_s6 + $0x228] sm:$0xff]  ;;  %v181_v6 = vld [vmem:[%s7763_s6 + $0x230] sm:$0xff]  ;;  %v183_v7 = vld [vmem:[%s7763_s6 + $0x238] sm:$0xff] }
  0x19   :  { %88 = vst [vmem:[#allocation2 + $0xb8] sm:$0xff] %v87_v23  ;;  %v185_v8 = vld [vmem:[%s7763_s6 + $0x240] sm:$0xff]  ;;  %v187_v9 = vld [vmem:[%s7763_s6 + $0x248] sm:$0xff]  ;;  %v189_v10 = vld [vmem:[%s7763_s6 + $0x250] sm:$0xff] }
  0x1a   :  { %90 = vst [vmem:[#allocation2 + $0xc0] sm:$0xff] %v89_v24  ;;  %v191_v11 = vld [vmem:[%s7763_s6 + $0x258] sm:$0xff]  ;;  %v193_v12 = vld [vmem:[%s7763_s6 + $0x260] sm:$0xff]  ;;  %v195_v13 = vld [vmem:[%s7763_s6 + $0x268] sm:$0xff] }
  0x1b   :  { %92 = vst [vmem:[#allocation2 + $0xc8] sm:$0xff] %v91_v25  ;;  %v197_v14 = vld [vmem:[%s7763_s6 + $0x270] sm:$0xff]  ;;  %v199_v15 = vld [vmem:[%s7763_s6 + $0x278] sm:$0xff]  ;;  %v201_v16 = vld [vmem:[%s7763_s6 + $0x280] sm:$0xff] }
  0x1c   :  { %94 = vst [vmem:[#allocation2 + $0xd0] sm:$0xff] %v93_v26  ;;  %v203_v17 = vld [vmem:[%s7763_s6 + $0x288] sm:$0xff]  ;;  %v205_v18 = vld [vmem:[%s7763_s6 + $0x290] sm:$0xff]  ;;  %v207_v19 = vld [vmem:[%s7763_s6 + $0x298] sm:$0xff] }
  0x1d   :  { %96 = vst [vmem:[#allocation2 + $0xd8] sm:$0xff] %v95_v27  ;;  %v209_v20 = vld [vmem:[%s7763_s6 + $0x2a0] sm:$0xff]  ;;  %v211_v21 = vld [vmem:[%s7763_s6 + $0x2a8] sm:$0xff]  ;;  %v213_v22 = vld [vmem:[%s7763_s6 + $0x2b0] sm:$0xff] }
  0x1e   :  { %98 = vst [vmem:[#allocation2 + $0xe0] sm:$0xff] %v97_v28  ;;  %v215_v23 = vld [vmem:[%s7763_s6 + $0x2b8] sm:$0xff]  ;;  %v217_v24 = vld [vmem:[%s7763_s6 + $0x2c0] sm:$0xff]  ;;  %v219_v25 = vld [vmem:[%s7763_s6 + $0x2c8] sm:$0xff] }
  0x1f   :  { %100 = vst [vmem:[#allocation2 + $0xe8] sm:$0xff] %v99_v29  ;;  %v221_v26 = vld [vmem:[%s7763_s6 + $0x2d0] sm:$0xff]  ;;  %v223_v27 = vld [vmem:[%s7763_s6 + $0x2d8] sm:$0xff]  ;;  %v225_v28 = vld [vmem:[%s7763_s6 + $0x2e0] sm:$0xff] }
  0x20   :  { %102 = vst [vmem:[#allocation2 + $0xf0] sm:$0xff] %v101_v30  ;;  %v227_v29 = vld [vmem:[%s7763_s6 + $0x2e8] sm:$0xff]  ;;  %v229_v30 = vld [vmem:[%s7763_s6 + $0x2f0] sm:$0xff] }
  0x21   :  { %104 = vst [vmem:[#allocation2 + $0xf8] sm:$0xff] %v103_v31  ;;  %v231_v31 = vld [vmem:[%s7763_s6 + $0x2f8] sm:$0xff] }
  0x22   :  { %106 = vst [vmem:[#allocation2 + $0x100] sm:$0xff] %v105_v32  ;;  %v233_v32 = vld [vmem:[%s7763_s6 + $0x300] sm:$0xff] }
  0x23   :  { %108 = vst [vmem:[#allocation2 + $0x108] sm:$0xff] %v107_v33  ;;  %v235_v33 = vld [vmem:[%s7763_s6 + $0x308] sm:$0xff] }
  0x24   :  { %110 = vst [vmem:[#allocation2 + $0x110] sm:$0xff] %v109_v34  ;;  %v237_v34 = vld [vmem:[%s7763_s6 + $0x310] sm:$0xff] }
  0x25   :  { %112 = vst [vmem:[#allocation2 + $0x118] sm:$0xff] %v111_v35  ;;  %v239_v35 = vld [vmem:[%s7763_s6 + $0x318] sm:$0xff] }
  0x26   :  { %114 = vst [vmem:[#allocation2 + $0x120] sm:$0xff] %v113_v36  ;;  %v241_v36 = vld [vmem:[%s7763_s6 + $0x320] sm:$0xff] }
  0x27   :  { %116 = vst [vmem:[#allocation2 + $0x128] sm:$0xff] %v115_v37  ;;  %v243_v37 = vld [vmem:[%s7763_s6 + $0x328] sm:$0xff] }
  0x28   :  { %118 = vst [vmem:[#allocation2 + $0x130] sm:$0xff] %v117_v38  ;;  %v245_v38 = vld [vmem:[%s7763_s6 + $0x330] sm:$0xff] }
  0x29   :  { %120 = vst [vmem:[#allocation2 + $0x138] sm:$0xff] %v119_v39  ;;  %v247_v39 = vld [vmem:[%s7763_s6 + $0x338] sm:$0xff] }
  0x2a   :  { %122 = vst [vmem:[#allocation2 + $0x140] sm:$0xff] %v121_v40  ;;  %v249_v40 = vld [vmem:[%s7763_s6 + $0x340] sm:$0xff] }
  0x2b   :  { %124 = vst [vmem:[#allocation2 + $0x148] sm:$0xff] %v123_v41  ;;  %v251_v41 = vld [vmem:[%s7763_s6 + $0x348] sm:$0xff] }
  0x2c   :  { %126 = vst [vmem:[#allocation2 + $0x150] sm:$0xff] %v125_v42  ;;  %v253_v42 = vld [vmem:[%s7763_s6 + $0x350] sm:$0xff] }
  0x2d   :  { %128 = vst [vmem:[#allocation2 + $0x158] sm:$0xff] %v127_v43  ;;  %v255_v43 = vld [vmem:[%s7763_s6 + $0x358] sm:$0xff] }
  0x2e   :  { %130 = vst [vmem:[#allocation2 + $0x160] sm:$0xff] %v129_v44  ;;  %v257_v44 = vld [vmem:[%s7763_s6 + $0x360] sm:$0xff] }
  0x2f   :  { %132 = vst [vmem:[#allocation2 + $0x168] sm:$0xff] %v131_v45  ;;  %v259_v45 = vld [vmem:[%s7763_s6 + $0x368] sm:$0xff] }
  0x30   :  { %134 = vst [vmem:[#allocation2 + $0x170] sm:$0xff] %v133_v46  ;;  %v261_v46 = vld [vmem:[%s7763_s6 + $0x370] sm:$0xff] }
  0x31   :  { %136 = vst [vmem:[#allocation2 + $0x178] sm:$0xff] %v135_v47  ;;  %v263_v47 = vld [vmem:[%s7763_s6 + $0x378] sm:$0xff] }
  0x32   :  { %138 = vst [vmem:[#allocation2 + $0x180] sm:$0xff] %v137_v48  ;;  %v265_v48 = vld [vmem:[%s7763_s6 + $0x380] sm:$0xff] }
  0x33   :  { %140 = vst [vmem:[#allocation2 + $0x188] sm:$0xff] %v139_v49  ;;  %v267_v49 = vld [vmem:[%s7763_s6 + $0x388] sm:$0xff] }
  0x34   :  { %142 = vst [vmem:[#allocation2 + $0x190] sm:$0xff] %v141_v50  ;;  %v269_v50 = vld [vmem:[%s7763_s6 + $0x390] sm:$0xff] }
  0x35   :  { %144 = vst [vmem:[#allocation2 + $0x198] sm:$0xff] %v143_v51  ;;  %v271_v51 = vld [vmem:[%s7763_s6 + $0x398] sm:$0xff] }
  0x36   :  { %146 = vst [vmem:[#allocation2 + $0x1a0] sm:$0xff] %v145_v52  ;;  %v273_v52 = vld [vmem:[%s7763_s6 + $0x3a0] sm:$0xff] }
  0x37   :  { %148 = vst [vmem:[#allocation2 + $0x1a8] sm:$0xff] %v147_v53  ;;  %v275_v53 = vld [vmem:[%s7763_s6 + $0x3a8] sm:$0xff] }
  0x38   :  { %150 = vst [vmem:[#allocation2 + $0x1b0] sm:$0xff] %v149_v54  ;;  %v277_v54 = vld [vmem:[%s7763_s6 + $0x3b0] sm:$0xff] }
  0x39   :  { %152 = vst [vmem:[#allocation2 + $0x1b8] sm:$0xff] %v151_v55  ;;  %v279_v55 = vld [vmem:[%s7763_s6 + $0x3b8] sm:$0xff] }
  0x3a   :  { %154 = vst [vmem:[#allocation2 + $0x1c0] sm:$0xff] %v153_v56  ;;  %v281_v56 = vld [vmem:[%s7763_s6 + $0x3c0] sm:$0xff] }
  0x3b   :  { %156 = vst [vmem:[#allocation2 + $0x1c8] sm:$0xff] %v155_v57  ;;  %v283_v57 = vld [vmem:[%s7763_s6 + $0x3c8] sm:$0xff] }
  0x3c   :  { %158 = vst [vmem:[#allocation2 + $0x1d0] sm:$0xff] %v157_v58  ;;  %v285_v58 = vld [vmem:[%s7763_s6 + $0x3d0] sm:$0xff] }
  0x3d   :  { %160 = vst [vmem:[#allocation2 + $0x1d8] sm:$0xff] %v159_v59  ;;  %v287_v59 = vld [vmem:[%s7763_s6 + $0x3d8] sm:$0xff] }
  0x3e   :  { %162 = vst [vmem:[#allocation2 + $0x1e0] sm:$0xff] %v161_v60  ;;  %v289_v60 = vld [vmem:[%s7763_s6 + $0x3e0] sm:$0xff] }
  0x3f   :  { %164 = vst [vmem:[#allocation2 + $0x1e8] sm:$0xff] %v163_v61  ;;  %v291_v61 = vld [vmem:[%s7763_s6 + $0x3e8] sm:$0xff] }
  0x40   :  { %166 = vst [vmem:[#allocation2 + $0x1f0] sm:$0xff] %v165_v62  ;;  %v293_v62 = vld [vmem:[%s7763_s6 + $0x3f0] sm:$0xff] }
  0x41   :  { %168 = vst [vmem:[#allocation2 + $0x1f8] sm:$0xff] %v167_v63  ;;  %v295_v63 = vld [vmem:[%s7763_s6 + $0x3f8] sm:$0xff] }
  0x42   :  { %170 = vst [vmem:[#allocation2 + $0x200] sm:$0xff] %v169_v0  ;;  %v297_v0 = vld [vmem:[%s7763_s6 + $0x400] sm:$0xff] }
  0x43   :  { %172 = vst [vmem:[#allocation2 + $0x208] sm:$0xff] %v171_v1  ;;  %v299_v1 = vld [vmem:[%s7763_s6 + $0x408] sm:$0xff] }
  0x44   :  { %174 = vst [vmem:[#allocation2 + $0x210] sm:$0xff] %v173_v2  ;;  %v301_v2 = vld [vmem:[%s7763_s6 + $0x410] sm:$0xff] }
  0x45   :  { %176 = vst [vmem:[#allocation2 + $0x218] sm:$0xff] %v175_v3  ;;  %v303_v3 = vld [vmem:[%s7763_s6 + $0x418] sm:$0xff] }
  0x46   :  { %178 = vst [vmem:[#allocation2 + $0x220] sm:$0xff] %v177_v4  ;;  %v305_v4 = vld [vmem:[%s7763_s6 + $0x420] sm:$0xff] }
  0x47   :  { %180 = vst [vmem:[#allocation2 + $0x228] sm:$0xff] %v179_v5  ;;  %v307_v5 = vld [vmem:[%s7763_s6 + $0x428] sm:$0xff] }
  0x48   :  { %182 = vst [vmem:[#allocation2 + $0x230] sm:$0xff] %v181_v6  ;;  %v309_v6 = vld [vmem:[%s7763_s6 + $0x430] sm:$0xff] }
  0x49   :  { %184 = vst [vmem:[#allocation2 + $0x238] sm:$0xff] %v183_v7  ;;  %v311_v7 = vld [vmem:[%s7763_s6 + $0x438] sm:$0xff] }
  0x4a   :  { %186 = vst [vmem:[#allocation2 + $0x240] sm:$0xff] %v185_v8  ;;  %v313_v8 = vld [vmem:[%s7763_s6 + $0x440] sm:$0xff] }
  0x4b   :  { %188 = vst [vmem:[#allocation2 + $0x248] sm:$0xff] %v187_v9  ;;  %v315_v9 = vld [vmem:[%s7763_s6 + $0x448] sm:$0xff] }
  0x4c   :  { %190 = vst [vmem:[#allocation2 + $0x250] sm:$0xff] %v189_v10  ;;  %v317_v10 = vld [vmem:[%s7763_s6 + $0x450] sm:$0xff] }
  0x4d   :  { %192 = vst [vmem:[#allocation2 + $0x258] sm:$0xff] %v191_v11  ;;  %v319_v11 = vld [vmem:[%s7763_s6 + $0x458] sm:$0xff] }
  0x4e   :  { %194 = vst [vmem:[#allocation2 + $0x260] sm:$0xff] %v193_v12  ;;  %v321_v12 = vld [vmem:[%s7763_s6 + $0x460] sm:$0xff] }
  0x4f   :  { %196 = vst [vmem:[#allocation2 + $0x268] sm:$0xff] %v195_v13  ;;  %v323_v13 = vld [vmem:[%s7763_s6 + $0x468] sm:$0xff] }
  0x50   :  { %198 = vst [vmem:[#allocation2 + $0x270] sm:$0xff] %v197_v14  ;;  %v325_v14 = vld [vmem:[%s7763_s6 + $0x470] sm:$0xff] }
  0x51   :  { %200 = vst [vmem:[#allocation2 + $0x278] sm:$0xff] %v199_v15  ;;  %v327_v15 = vld [vmem:[%s7763_s6 + $0x478] sm:$0xff] }
  0x52   :  { %202 = vst [vmem:[#allocation2 + $0x280] sm:$0xff] %v201_v16  ;;  %v329_v16 = vld [vmem:[%s7763_s6 + $0x480] sm:$0xff] }
  0x53   :  { %204 = vst [vmem:[#allocation2 + $0x288] sm:$0xff] %v203_v17  ;;  %v331_v17 = vld [vmem:[%s7763_s6 + $0x488] sm:$0xff] }
  0x54   :  { %206 = vst [vmem:[#allocation2 + $0x290] sm:$0xff] %v205_v18  ;;  %v333_v18 = vld [vmem:[%s7763_s6 + $0x490] sm:$0xff] }
  0x55   :  { %208 = vst [vmem:[#allocation2 + $0x298] sm:$0xff] %v207_v19  ;;  %v335_v19 = vld [vmem:[%s7763_s6 + $0x498] sm:$0xff] }
  0x56   :  { %210 = vst [vmem:[#allocation2 + $0x2a0] sm:$0xff] %v209_v20  ;;  %v337_v20 = vld [vmem:[%s7763_s6 + $0x4a0] sm:$0xff] }
  0x57   :  { %212 = vst [vmem:[#allocation2 + $0x2a8] sm:$0xff] %v211_v21  ;;  %v339_v21 = vld [vmem:[%s7763_s6 + $0x4a8] sm:$0xff] }
  0x58   :  { %214 = vst [vmem:[#allocation2 + $0x2b0] sm:$0xff] %v213_v22  ;;  %v341_v22 = vld [vmem:[%s7763_s6 + $0x4b0] sm:$0xff] }
  0x59   :  { %216 = vst [vmem:[#allocation2 + $0x2b8] sm:$0xff] %v215_v23  ;;  %v343_v23 = vld [vmem:[%s7763_s6 + $0x4b8] sm:$0xff] }
  0x5a   :  { %218 = vst [vmem:[#allocation2 + $0x2c0] sm:$0xff] %v217_v24  ;;  %v345_v24 = vld [vmem:[%s7763_s6 + $0x4c0] sm:$0xff] }
  0x5b   :  { %220 = vst [vmem:[#allocation2 + $0x2c8] sm:$0xff] %v219_v25  ;;  %v347_v25 = vld [vmem:[%s7763_s6 + $0x4c8] sm:$0xff] }
  0x5c   :  { %222 = vst [vmem:[#allocation2 + $0x2d0] sm:$0xff] %v221_v26  ;;  %v349_v26 = vld [vmem:[%s7763_s6 + $0x4d0] sm:$0xff] }
  0x5d   :  { %224 = vst [vmem:[#allocation2 + $0x2d8] sm:$0xff] %v223_v27  ;;  %v351_v27 = vld [vmem:[%s7763_s6 + $0x4d8] sm:$0xff] }
  0x5e   :  { %226 = vst [vmem:[#allocation2 + $0x2e0] sm:$0xff] %v225_v28  ;;  %v353_v28 = vld [vmem:[%s7763_s6 + $0x4e0] sm:$0xff] }
  0x5f   :  { %228 = vst [vmem:[#allocation2 + $0x2e8] sm:$0xff] %v227_v29  ;;  %v355_v29 = vld [vmem:[%s7763_s6 + $0x4e8] sm:$0xff] }
  0x60   :  { %230 = vst [vmem:[#allocation2 + $0x2f0] sm:$0xff] %v229_v30  ;;  %v357_v30 = vld [vmem:[%s7763_s6 + $0x4f0] sm:$0xff] }
  0x61   :  { %232 = vst [vmem:[#allocation2 + $0x2f8] sm:$0xff] %v231_v31  ;;  %v359_v31 = vld [vmem:[%s7763_s6 + $0x4f8] sm:$0xff] }
  0x62   :  { %234 = vst [vmem:[#allocation2 + $0x300] sm:$0xff] %v233_v32  ;;  %v361_v32 = vld [vmem:[%s7763_s6 + $0x500] sm:$0xff] }
  0x63   :  { %236 = vst [vmem:[#allocation2 + $0x308] sm:$0xff] %v235_v33  ;;  %v363_v33 = vld [vmem:[%s7763_s6 + $0x508] sm:$0xff] }
  0x64   :  { %238 = vst [vmem:[#allocation2 + $0x310] sm:$0xff] %v237_v34  ;;  %v365_v34 = vld [vmem:[%s7763_s6 + $0x510] sm:$0xff] }
  0x65   :  { %240 = vst [vmem:[#allocation2 + $0x318] sm:$0xff] %v239_v35  ;;  %v367_v35 = vld [vmem:[%s7763_s6 + $0x518] sm:$0xff] }
  0x66   :  { %242 = vst [vmem:[#allocation2 + $0x320] sm:$0xff] %v241_v36  ;;  %v369_v36 = vld [vmem:[%s7763_s6 + $0x520] sm:$0xff] }
  0x67   :  { %244 = vst [vmem:[#allocation2 + $0x328] sm:$0xff] %v243_v37  ;;  %v371_v37 = vld [vmem:[%s7763_s6 + $0x528] sm:$0xff] }
  0x68   :  { %246 = vst [vmem:[#allocation2 + $0x330] sm:$0xff] %v245_v38  ;;  %v373_v38 = vld [vmem:[%s7763_s6 + $0x530] sm:$0xff] }
  0x69   :  { %248 = vst [vmem:[#allocation2 + $0x338] sm:$0xff] %v247_v39  ;;  %v375_v39 = vld [vmem:[%s7763_s6 + $0x538] sm:$0xff] }
  0x6a   :  { %250 = vst [vmem:[#allocation2 + $0x340] sm:$0xff] %v249_v40  ;;  %v377_v40 = vld [vmem:[%s7763_s6 + $0x540] sm:$0xff] }
  0x6b   :  { %252 = vst [vmem:[#allocation2 + $0x348] sm:$0xff] %v251_v41  ;;  %v379_v41 = vld [vmem:[%s7763_s6 + $0x548] sm:$0xff] }
  0x6c   :  { %254 = vst [vmem:[#allocation2 + $0x350] sm:$0xff] %v253_v42  ;;  %v381_v42 = vld [vmem:[%s7763_s6 + $0x550] sm:$0xff] }
  0x6d   :  { %256 = vst [vmem:[#allocation2 + $0x358] sm:$0xff] %v255_v43  ;;  %v383_v43 = vld [vmem:[%s7763_s6 + $0x558] sm:$0xff] }
  0x6e   :  { %258 = vst [vmem:[#allocation2 + $0x360] sm:$0xff] %v257_v44  ;;  %v385_v44 = vld [vmem:[%s7763_s6 + $0x560] sm:$0xff] }
  0x6f   :  { %260 = vst [vmem:[#allocation2 + $0x368] sm:$0xff] %v259_v45  ;;  %v387_v45 = vld [vmem:[%s7763_s6 + $0x568] sm:$0xff] }
  0x70   :  { %262 = vst [vmem:[#allocation2 + $0x370] sm:$0xff] %v261_v46  ;;  %v389_v46 = vld [vmem:[%s7763_s6 + $0x570] sm:$0xff] }
  0x71   :  { %264 = vst [vmem:[#allocation2 + $0x378] sm:$0xff] %v263_v47  ;;  %v391_v47 = vld [vmem:[%s7763_s6 + $0x578] sm:$0xff] }
  0x72   :  { %266 = vst [vmem:[#allocation2 + $0x380] sm:$0xff] %v265_v48  ;;  %v393_v48 = vld [vmem:[%s7763_s6 + $0x580] sm:$0xff] }
  0x73   :  { %268 = vst [vmem:[#allocation2 + $0x388] sm:$0xff] %v267_v49  ;;  %v395_v49 = vld [vmem:[%s7763_s6 + $0x588] sm:$0xff] }
  0x74   :  { %270 = vst [vmem:[#allocation2 + $0x390] sm:$0xff] %v269_v50  ;;  %v397_v50 = vld [vmem:[%s7763_s6 + $0x590] sm:$0xff] }
  0x75   :  { %272 = vst [vmem:[#allocation2 + $0x398] sm:$0xff] %v271_v51  ;;  %v399_v51 = vld [vmem:[%s7763_s6 + $0x598] sm:$0xff] }
  0x76   :  { %274 = vst [vmem:[#allocation2 + $0x3a0] sm:$0xff] %v273_v52  ;;  %v401_v52 = vld [vmem:[%s7763_s6 + $0x5a0] sm:$0xff] }
  0x77   :  { %276 = vst [vmem:[#allocation2 + $0x3a8] sm:$0xff] %v275_v53  ;;  %v403_v53 = vld [vmem:[%s7763_s6 + $0x5a8] sm:$0xff] }
  0x78   :  { %278 = vst [vmem:[#allocation2 + $0x3b0] sm:$0xff] %v277_v54  ;;  %v405_v54 = vld [vmem:[%s7763_s6 + $0x5b0] sm:$0xff] }
  0x79   :  { %280 = vst [vmem:[#allocation2 + $0x3b8] sm:$0xff] %v279_v55  ;;  %v407_v55 = vld [vmem:[%s7763_s6 + $0x5b8] sm:$0xff] }
  0x7a   :  { %282 = vst [vmem:[#allocation2 + $0x3c0] sm:$0xff] %v281_v56  ;;  %v409_v56 = vld [vmem:[%s7763_s6 + $0x5c0] sm:$0xff] }
  0x7b   :  { %284 = vst [vmem:[#allocation2 + $0x3c8] sm:$0xff] %v283_v57  ;;  %v411_v57 = vld [vmem:[%s7763_s6 + $0x5c8] sm:$0xff] }
  0x7c   :  { %286 = vst [vmem:[#allocation2 + $0x3d0] sm:$0xff] %v285_v58  ;;  %v413_v58 = vld [vmem:[%s7763_s6 + $0x5d0] sm:$0xff] }
  0x7d   :  { %288 = vst [vmem:[#allocation2 + $0x3d8] sm:$0xff] %v287_v59  ;;  %v415_v59 = vld [vmem:[%s7763_s6 + $0x5d8] sm:$0xff] }
  0x7e   :  { %290 = vst [vmem:[#allocation2 + $0x3e0] sm:$0xff] %v289_v60  ;;  %v417_v60 = vld [vmem:[%s7763_s6 + $0x5e0] sm:$0xff] }
  0x7f   :  { %292 = vst [vmem:[#allocation2 + $0x3e8] sm:$0xff] %v291_v61  ;;  %v419_v61 = vld [vmem:[%s7763_s6 + $0x5e8] sm:$0xff] }
  0x80   :  { %294 = vst [vmem:[#allocation2 + $0x3f0] sm:$0xff] %v293_v62  ;;  %v421_v62 = vld [vmem:[%s7763_s6 + $0x5f0] sm:$0xff] }
  0x81   :  { %296 = vst [vmem:[#allocation2 + $0x3f8] sm:$0xff] %v295_v63  ;;  %v423_v63 = vld [vmem:[%s7763_s6 + $0x5f8] sm:$0xff] }
  0x82   :  { %298 = vst [vmem:[#allocation2 + $0x400] sm:$0xff] %v297_v0  ;;  %v425_v0 = vld [vmem:[%s7763_s6 + $0x600] sm:$0xff] }
  0x83   :  { %300 = vst [vmem:[#allocation2 + $0x408] sm:$0xff] %v299_v1  ;;  %v427_v1 = vld [vmem:[%s7763_s6 + $0x608] sm:$0xff] }
  0x84   :  { %302 = vst [vmem:[#allocation2 + $0x410] sm:$0xff] %v301_v2  ;;  %v429_v2 = vld [vmem:[%s7763_s6 + $0x610] sm:$0xff] }
  0x85   :  { %304 = vst [vmem:[#allocation2 + $0x418] sm:$0xff] %v303_v3  ;;  %v431_v3 = vld [vmem:[%s7763_s6 + $0x618] sm:$0xff] }
  0x86   :  { %306 = vst [vmem:[#allocation2 + $0x420] sm:$0xff] %v305_v4  ;;  %v433_v4 = vld [vmem:[%s7763_s6 + $0x620] sm:$0xff] }
  0x87   :  { %308 = vst [vmem:[#allocation2 + $0x428] sm:$0xff] %v307_v5  ;;  %v435_v5 = vld [vmem:[%s7763_s6 + $0x628] sm:$0xff] }
  0x88   :  { %310 = vst [vmem:[#allocation2 + $0x430] sm:$0xff] %v309_v6  ;;  %v437_v6 = vld [vmem:[%s7763_s6 + $0x630] sm:$0xff] }
  0x89   :  { %312 = vst [vmem:[#allocation2 + $0x438] sm:$0xff] %v311_v7  ;;  %v439_v7 = vld [vmem:[%s7763_s6 + $0x638] sm:$0xff] }
  0x8a   :  { %314 = vst [vmem:[#allocation2 + $0x440] sm:$0xff] %v313_v8  ;;  %v441_v8 = vld [vmem:[%s7763_s6 + $0x640] sm:$0xff] }
  0x8b   :  { %316 = vst [vmem:[#allocation2 + $0x448] sm:$0xff] %v315_v9  ;;  %v443_v9 = vld [vmem:[%s7763_s6 + $0x648] sm:$0xff] }
  0x8c   :  { %318 = vst [vmem:[#allocation2 + $0x450] sm:$0xff] %v317_v10  ;;  %v445_v10 = vld [vmem:[%s7763_s6 + $0x650] sm:$0xff] }
  0x8d   :  { %320 = vst [vmem:[#allocation2 + $0x458] sm:$0xff] %v319_v11  ;;  %v447_v11 = vld [vmem:[%s7763_s6 + $0x658] sm:$0xff] }
  0x8e   :  { %322 = vst [vmem:[#allocation2 + $0x460] sm:$0xff] %v321_v12  ;;  %v449_v12 = vld [vmem:[%s7763_s6 + $0x660] sm:$0xff] }
  0x8f   :  { %324 = vst [vmem:[#allocation2 + $0x468] sm:$0xff] %v323_v13  ;;  %v451_v13 = vld [vmem:[%s7763_s6 + $0x668] sm:$0xff] }
  0x90   :  { %326 = vst [vmem:[#allocation2 + $0x470] sm:$0xff] %v325_v14  ;;  %v453_v14 = vld [vmem:[%s7763_s6 + $0x670] sm:$0xff] }
  0x91   :  { %328 = vst [vmem:[#allocation2 + $0x478] sm:$0xff] %v327_v15  ;;  %v455_v15 = vld [vmem:[%s7763_s6 + $0x678] sm:$0xff] }
  0x92   :  { %330 = vst [vmem:[#allocation2 + $0x480] sm:$0xff] %v329_v16  ;;  %v457_v16 = vld [vmem:[%s7763_s6 + $0x680] sm:$0xff] }
  0x93   :  { %332 = vst [vmem:[#allocation2 + $0x488] sm:$0xff] %v331_v17  ;;  %v459_v17 = vld [vmem:[%s7763_s6 + $0x688] sm:$0xff] }
  0x94   :  { %334 = vst [vmem:[#allocation2 + $0x490] sm:$0xff] %v333_v18  ;;  %v461_v18 = vld [vmem:[%s7763_s6 + $0x690] sm:$0xff] }
  0x95   :  { %336 = vst [vmem:[#allocation2 + $0x498] sm:$0xff] %v335_v19  ;;  %v463_v19 = vld [vmem:[%s7763_s6 + $0x698] sm:$0xff] }
  0x96   :  { %338 = vst [vmem:[#allocation2 + $0x4a0] sm:$0xff] %v337_v20  ;;  %v465_v20 = vld [vmem:[%s7763_s6 + $0x6a0] sm:$0xff] }
  0x97   :  { %340 = vst [vmem:[#allocation2 + $0x4a8] sm:$0xff] %v339_v21  ;;  %v467_v21 = vld [vmem:[%s7763_s6 + $0x6a8] sm:$0xff] }
  0x98   :  { %342 = vst [vmem:[#allocation2 + $0x4b0] sm:$0xff] %v341_v22  ;;  %v469_v22 = vld [vmem:[%s7763_s6 + $0x6b0] sm:$0xff] }
  0x99   :  { %344 = vst [vmem:[#allocation2 + $0x4b8] sm:$0xff] %v343_v23  ;;  %v471_v23 = vld [vmem:[%s7763_s6 + $0x6b8] sm:$0xff] }
  0x9a   :  { %346 = vst [vmem:[#allocation2 + $0x4c0] sm:$0xff] %v345_v24  ;;  %v473_v24 = vld [vmem:[%s7763_s6 + $0x6c0] sm:$0xff] }
  0x9b   :  { %348 = vst [vmem:[#allocation2 + $0x4c8] sm:$0xff] %v347_v25  ;;  %v475_v25 = vld [vmem:[%s7763_s6 + $0x6c8] sm:$0xff] }
  0x9c   :  { %350 = vst [vmem:[#allocation2 + $0x4d0] sm:$0xff] %v349_v26  ;;  %v477_v26 = vld [vmem:[%s7763_s6 + $0x6d0] sm:$0xff] }
  0x9d   :  { %352 = vst [vmem:[#allocation2 + $0x4d8] sm:$0xff] %v351_v27  ;;  %v479_v27 = vld [vmem:[%s7763_s6 + $0x6d8] sm:$0xff] }
  0x9e   :  { %354 = vst [vmem:[#allocation2 + $0x4e0] sm:$0xff] %v353_v28  ;;  %v481_v28 = vld [vmem:[%s7763_s6 + $0x6e0] sm:$0xff] }
  0x9f   :  { %356 = vst [vmem:[#allocation2 + $0x4e8] sm:$0xff] %v355_v29  ;;  %v483_v29 = vld [vmem:[%s7763_s6 + $0x6e8] sm:$0xff] }
  0xa0   :  { %358 = vst [vmem:[#allocation2 + $0x4f0] sm:$0xff] %v357_v30  ;;  %v485_v30 = vld [vmem:[%s7763_s6 + $0x6f0] sm:$0xff] }
  0xa1   :  { %360 = vst [vmem:[#allocation2 + $0x4f8] sm:$0xff] %v359_v31  ;;  %v487_v31 = vld [vmem:[%s7763_s6 + $0x6f8] sm:$0xff] }
  0xa2   :  { %362 = vst [vmem:[#allocation2 + $0x500] sm:$0xff] %v361_v32  ;;  %v489_v32 = vld [vmem:[%s7763_s6 + $0x700] sm:$0xff] }
  0xa3   :  { %364 = vst [vmem:[#allocation2 + $0x508] sm:$0xff] %v363_v33  ;;  %v491_v33 = vld [vmem:[%s7763_s6 + $0x708] sm:$0xff] }
  0xa4   :  { %366 = vst [vmem:[#allocation2 + $0x510] sm:$0xff] %v365_v34  ;;  %v493_v34 = vld [vmem:[%s7763_s6 + $0x710] sm:$0xff] }
  0xa5   :  { %368 = vst [vmem:[#allocation2 + $0x518] sm:$0xff] %v367_v35  ;;  %v495_v35 = vld [vmem:[%s7763_s6 + $0x718] sm:$0xff] }
  0xa6   :  { %370 = vst [vmem:[#allocation2 + $0x520] sm:$0xff] %v369_v36  ;;  %v497_v36 = vld [vmem:[%s7763_s6 + $0x720] sm:$0xff] }
  0xa7   :  { %372 = vst [vmem:[#allocation2 + $0x528] sm:$0xff] %v371_v37  ;;  %v499_v37 = vld [vmem:[%s7763_s6 + $0x728] sm:$0xff] }
  0xa8   :  { %374 = vst [vmem:[#allocation2 + $0x530] sm:$0xff] %v373_v38  ;;  %v501_v38 = vld [vmem:[%s7763_s6 + $0x730] sm:$0xff] }
  0xa9   :  { %376 = vst [vmem:[#allocation2 + $0x538] sm:$0xff] %v375_v39  ;;  %v503_v39 = vld [vmem:[%s7763_s6 + $0x738] sm:$0xff] }
  0xaa   :  { %378 = vst [vmem:[#allocation2 + $0x540] sm:$0xff] %v377_v40  ;;  %v505_v40 = vld [vmem:[%s7763_s6 + $0x740] sm:$0xff] }
  0xab   :  { %380 = vst [vmem:[#allocation2 + $0x548] sm:$0xff] %v379_v41  ;;  %v507_v41 = vld [vmem:[%s7763_s6 + $0x748] sm:$0xff] }
  0xac   :  { %382 = vst [vmem:[#allocation2 + $0x550] sm:$0xff] %v381_v42  ;;  %v509_v42 = vld [vmem:[%s7763_s6 + $0x750] sm:$0xff] }
  0xad   :  { %384 = vst [vmem:[#allocation2 + $0x558] sm:$0xff] %v383_v43  ;;  %v511_v43 = vld [vmem:[%s7763_s6 + $0x758] sm:$0xff] }
  0xae   :  { %386 = vst [vmem:[#allocation2 + $0x560] sm:$0xff] %v385_v44  ;;  %v513_v44 = vld [vmem:[%s7763_s6 + $0x760] sm:$0xff] }
  0xaf   :  { %388 = vst [vmem:[#allocation2 + $0x568] sm:$0xff] %v387_v45  ;;  %v515_v45 = vld [vmem:[%s7763_s6 + $0x768] sm:$0xff] }
  0xb0   :  { %390 = vst [vmem:[#allocation2 + $0x570] sm:$0xff] %v389_v46  ;;  %v517_v46 = vld [vmem:[%s7763_s6 + $0x770] sm:$0xff] }
  0xb1   :  { %392 = vst [vmem:[#allocation2 + $0x578] sm:$0xff] %v391_v47  ;;  %v519_v47 = vld [vmem:[%s7763_s6 + $0x778] sm:$0xff] }
  0xb2   :  { %394 = vst [vmem:[#allocation2 + $0x580] sm:$0xff] %v393_v48  ;;  %v521_v48 = vld [vmem:[%s7763_s6 + $0x780] sm:$0xff] }
  0xb3   :  { %396 = vst [vmem:[#allocation2 + $0x588] sm:$0xff] %v395_v49  ;;  %v523_v49 = vld [vmem:[%s7763_s6 + $0x788] sm:$0xff] }
  0xb4   :  { %398 = vst [vmem:[#allocation2 + $0x590] sm:$0xff] %v397_v50  ;;  %v525_v50 = vld [vmem:[%s7763_s6 + $0x790] sm:$0xff] }
  0xb5   :  { %400 = vst [vmem:[#allocation2 + $0x598] sm:$0xff] %v399_v51  ;;  %v527_v51 = vld [vmem:[%s7763_s6 + $0x798] sm:$0xff] }
  0xb6   :  { %402 = vst [vmem:[#allocation2 + $0x5a0] sm:$0xff] %v401_v52  ;;  %v529_v52 = vld [vmem:[%s7763_s6 + $0x7a0] sm:$0xff] }
  0xb7   :  { %404 = vst [vmem:[#allocation2 + $0x5a8] sm:$0xff] %v403_v53  ;;  %v531_v53 = vld [vmem:[%s7763_s6 + $0x7a8] sm:$0xff] }
  0xb8   :  { %406 = vst [vmem:[#allocation2 + $0x5b0] sm:$0xff] %v405_v54  ;;  %v533_v54 = vld [vmem:[%s7763_s6 + $0x7b0] sm:$0xff] }
  0xb9   :  { %408 = vst [vmem:[#allocation2 + $0x5b8] sm:$0xff] %v407_v55  ;;  %v535_v55 = vld [vmem:[%s7763_s6 + $0x7b8] sm:$0xff] }
  0xba   :  { %410 = vst [vmem:[#allocation2 + $0x5c0] sm:$0xff] %v409_v56  ;;  %v537_v56 = vld [vmem:[%s7763_s6 + $0x7c0] sm:$0xff] }
  0xbb   :  { %412 = vst [vmem:[#allocation2 + $0x5c8] sm:$0xff] %v411_v57  ;;  %v539_v57 = vld [vmem:[%s7763_s6 + $0x7c8] sm:$0xff] }
  0xbc   :  { %414 = vst [vmem:[#allocation2 + $0x5d0] sm:$0xff] %v413_v58  ;;  %v541_v58 = vld [vmem:[%s7763_s6 + $0x7d0] sm:$0xff] }
  0xbd   :  { %416 = vst [vmem:[#allocation2 + $0x5d8] sm:$0xff] %v415_v59  ;;  %v543_v59 = vld [vmem:[%s7763_s6 + $0x7d8] sm:$0xff] }
  0xbe   :  { %418 = vst [vmem:[#allocation2 + $0x5e0] sm:$0xff] %v417_v60  ;;  %v545_v60 = vld [vmem:[%s7763_s6 + $0x7e0] sm:$0xff] }
  0xbf   :  { %420 = vst [vmem:[#allocation2 + $0x5e8] sm:$0xff] %v419_v61  ;;  %v547_v61 = vld [vmem:[%s7763_s6 + $0x7e8] sm:$0xff] }
  0xc0   :  { %422 = vst [vmem:[#allocation2 + $0x5f0] sm:$0xff] %v421_v62  ;;  %v549_v62 = vld [vmem:[%s7763_s6 + $0x7f0] sm:$0xff] }
  0xc1   :  { %424 = vst [vmem:[#allocation2 + $0x5f8] sm:$0xff] %v423_v63  ;;  %v551_v63 = vld [vmem:[%s7763_s6 + $0x7f8] sm:$0xff] }
  0xc2   :  { %426 = vst [vmem:[#allocation2 + $0x600] sm:$0xff] %v425_v0 }
  0xc3   :  { %428 = vst [vmem:[#allocation2 + $0x608] sm:$0xff] %v427_v1 }
  0xc4   :  { %430 = vst [vmem:[#allocation2 + $0x610] sm:$0xff] %v429_v2 }
  0xc5   :  { %432 = vst [vmem:[#allocation2 + $0x618] sm:$0xff] %v431_v3 }
  0xc6   :  { %434 = vst [vmem:[#allocation2 + $0x620] sm:$0xff] %v433_v4 }
  0xc7   :  { %436 = vst [vmem:[#allocation2 + $0x628] sm:$0xff] %v435_v5 }
  0xc8   :  { %438 = vst [vmem:[#allocation2 + $0x630] sm:$0xff] %v437_v6 }
  0xc9   :  { %440 = vst [vmem:[#allocation2 + $0x638] sm:$0xff] %v439_v7 }
  0xca   :  { %442 = vst [vmem:[#allocation2 + $0x640] sm:$0xff] %v441_v8 }
  0xcb   :  { %444 = vst [vmem:[#allocation2 + $0x648] sm:$0xff] %v443_v9 }
  0xcc   :  { %446 = vst [vmem:[#allocation2 + $0x650] sm:$0xff] %v445_v10 }
  0xcd   :  { %448 = vst [vmem:[#allocation2 + $0x658] sm:$0xff] %v447_v11 }
  0xce   :  { %450 = vst [vmem:[#allocation2 + $0x660] sm:$0xff] %v449_v12 }
  0xcf   :  { %452 = vst [vmem:[#allocation2 + $0x668] sm:$0xff] %v451_v13 }
  0xd0   :  { %454 = vst [vmem:[#allocation2 + $0x670] sm:$0xff] %v453_v14 }
  0xd1   :  { %456 = vst [vmem:[#allocation2 + $0x678] sm:$0xff] %v455_v15 }
  0xd2   :  { %458 = vst [vmem:[#allocation2 + $0x680] sm:$0xff] %v457_v16 }
  0xd3   :  { %460 = vst [vmem:[#allocation2 + $0x688] sm:$0xff] %v459_v17 }
  0xd4   :  { %462 = vst [vmem:[#allocation2 + $0x690] sm:$0xff] %v461_v18 }
  0xd5   :  { %464 = vst [vmem:[#allocation2 + $0x698] sm:$0xff] %v463_v19 }
  0xd6   :  { %466 = vst [vmem:[#allocation2 + $0x6a0] sm:$0xff] %v465_v20 }
  0xd7   :  { %468 = vst [vmem:[#allocation2 + $0x6a8] sm:$0xff] %v467_v21 }
  0xd8   :  { %470 = vst [vmem:[#allocation2 + $0x6b0] sm:$0xff] %v469_v22 }
  0xd9   :  { %472 = vst [vmem:[#allocation2 + $0x6b8] sm:$0xff] %v471_v23 }
  0xda   :  { %474 = vst [vmem:[#allocation2 + $0x6c0] sm:$0xff] %v473_v24 }
  0xdb   :  { %476 = vst [vmem:[#allocation2 + $0x6c8] sm:$0xff] %v475_v25 }
  0xdc   :  { %478 = vst [vmem:[#allocation2 + $0x6d0] sm:$0xff] %v477_v26 }
  0xdd   :  { %480 = vst [vmem:[#allocation2 + $0x6d8] sm:$0xff] %v479_v27 }
  0xde   :  { %482 = vst [vmem:[#allocation2 + $0x6e0] sm:$0xff] %v481_v28 }
  0xdf   :  { %484 = vst [vmem:[#allocation2 + $0x6e8] sm:$0xff] %v483_v29 }
  0xe0   :  { %486 = vst [vmem:[#allocation2 + $0x6f0] sm:$0xff] %v485_v30 }
  0xe1   :  { %488 = vst [vmem:[#allocation2 + $0x6f8] sm:$0xff] %v487_v31 }
  0xe2   :  { %490 = vst [vmem:[#allocation2 + $0x700] sm:$0xff] %v489_v32 }
  0xe3   :  { %492 = vst [vmem:[#allocation2 + $0x708] sm:$0xff] %v491_v33 }
  0xe4   :  { %494 = vst [vmem:[#allocation2 + $0x710] sm:$0xff] %v493_v34 }
  0xe5   :  { %496 = vst [vmem:[#allocation2 + $0x718] sm:$0xff] %v495_v35 }
  0xe6   :  { %498 = vst [vmem:[#allocation2 + $0x720] sm:$0xff] %v497_v36 }
  0xe7   :  { %500 = vst [vmem:[#allocation2 + $0x728] sm:$0xff] %v499_v37 }
  0xe8   :  { %502 = vst [vmem:[#allocation2 + $0x730] sm:$0xff] %v501_v38 }
  0xe9   :  { %504 = vst [vmem:[#allocation2 + $0x738] sm:$0xff] %v503_v39 }
  0xea   :  { %506 = vst [vmem:[#allocation2 + $0x740] sm:$0xff] %v505_v40 }
  0xeb   :  { %508 = vst [vmem:[#allocation2 + $0x748] sm:$0xff] %v507_v41 }
  0xec   :  { %510 = vst [vmem:[#allocation2 + $0x750] sm:$0xff] %v509_v42 }
  0xed   :  { %512 = vst [vmem:[#allocation2 + $0x758] sm:$0xff] %v511_v43 }
  0xee   :  { %514 = vst [vmem:[#allocation2 + $0x760] sm:$0xff] %v513_v44 }
  0xef   :  { %516 = vst [vmem:[#allocation2 + $0x768] sm:$0xff] %v515_v45 }
  0xf0   :  { %518 = vst [vmem:[#allocation2 + $0x770] sm:$0xff] %v517_v46 }
  0xf1   :  { %520 = vst [vmem:[#allocation2 + $0x778] sm:$0xff] %v519_v47 }
  0xf2   :  { %522 = vst [vmem:[#allocation2 + $0x780] sm:$0xff] %v521_v48 }
  0xf3   :  { %524 = vst [vmem:[#allocation2 + $0x788] sm:$0xff] %v523_v49 }
  0xf4   :  { %526 = vst [vmem:[#allocation2 + $0x790] sm:$0xff] %v525_v50 }
  0xf5   :  { %528 = vst [vmem:[#allocation2 + $0x798] sm:$0xff] %v527_v51 }
  0xf6   :  { %530 = vst [vmem:[#allocation2 + $0x7a0] sm:$0xff] %v529_v52 }
  0xf7   :  { %532 = vst [vmem:[#allocation2 + $0x7a8] sm:$0xff] %v531_v53 }
  0xf8   :  { %534 = vst [vmem:[#allocation2 + $0x7b0] sm:$0xff] %v533_v54 }
  0xf9   :  { %536 = vst [vmem:[#allocation2 + $0x7b8] sm:$0xff] %v535_v55 }
  0xfa   :  { %538 = vst [vmem:[#allocation2 + $0x7c0] sm:$0xff] %v537_v56 }
  0xfb   :  { %540 = vst [vmem:[#allocation2 + $0x7c8] sm:$0xff] %v539_v57 }
  0xfc   :  { %542 = vst [vmem:[#allocation2 + $0x7d0] sm:$0xff] %v541_v58 }
  0xfd   :  { %544 = vst [vmem:[#allocation2 + $0x7d8] sm:$0xff] %v543_v59 }
  0xfe   :  { %546 = vst [vmem:[#allocation2 + $0x7e0] sm:$0xff] %v545_v60 }
  0xff   :  { %548 = vst [vmem:[#allocation2 + $0x7e8] sm:$0xff] %v547_v61 }
 0x100   :  { %550 = vst [vmem:[#allocation2 + $0x7f0] sm:$0xff] %v549_v62 }
 0x101   :  { %552 = vst [vmem:[#allocation2 + $0x7f8] sm:$0xff] %v551_v63 }
 0x102   :  { %558 = vsyncadd [#allocation4], 32768  ;;  %v570_v0 = vld [vmem:[%s7764_s7] sm:$0xff]  ;;  %v572_v1 = vld [vmem:[%s7764_s7 + $0x8] sm:$0xff]  ;;  %vm707_vm0 = vcmask 64512  }
 0x103   :  { %571 = vst [vmem:[#allocation3] sm:$0xff] %v570_v0  ;;  %v574_v2 = vld [vmem:[%s7764_s7 + $0x10] sm:$0xff]  ;;  %v576_v3 = vld [vmem:[%s7764_s7 + $0x18] sm:$0xff]  ;;  %v578_v4 = vld [vmem:[%s7764_s7 + $0x20] sm:$0xff] }
 0x104   :  { %573 = vst [vmem:[#allocation3 + $0x8] sm:$0xff] %v572_v1  ;;  %v580_v5 = vld [vmem:[%s7764_s7 + $0x28] sm:$0xff]  ;;  %v582_v6 = vld [vmem:[%s7764_s7 + $0x30] sm:$0xff]  ;;  %v584_v7 = vld [vmem:[%s7764_s7 + $0x38] sm:$0xff] }
 0x105   :  { %575 = vst [vmem:[#allocation3 + $0x10] sm:$0xff] %v574_v2  ;;  %v586_v8 = vld [vmem:[%s7764_s7 + $0x40] sm:$0xff]  ;;  %v588_v9 = vld [vmem:[%s7764_s7 + $0x48] sm:$0xff]  ;;  %v590_v10 = vld [vmem:[%s7764_s7 + $0x50] sm:$0xff] }
 0x106   :  { %577 = vst [vmem:[#allocation3 + $0x18] sm:$0xff] %v576_v3  ;;  %v592_v11 = vld [vmem:[%s7764_s7 + $0x58] sm:$0xff]  ;;  %v594_v12 = vld [vmem:[%s7764_s7 + $0x60] sm:$0xff]  ;;  %v596_v13 = vld [vmem:[%s7764_s7 + $0x68] sm:$0xff] }
 0x107   :  { %579 = vst [vmem:[#allocation3 + $0x20] sm:$0xff] %v578_v4  ;;  %v598_v14 = vld [vmem:[%s7764_s7 + $0x70] sm:$0xff]  ;;  %v600_v15 = vld [vmem:[%s7764_s7 + $0x78] sm:$0xff]  ;;  %v602_v16 = vld [vmem:[%s7764_s7 + $0x80] sm:$0xff] }
 0x108   :  { %581 = vst [vmem:[#allocation3 + $0x28] sm:$0xff] %v580_v5  ;;  %v604_v17 = vld [vmem:[%s7764_s7 + $0x88] sm:$0xff]  ;;  %v606_v18 = vld [vmem:[%s7764_s7 + $0x90] sm:$0xff]  ;;  %v608_v19 = vld [vmem:[%s7764_s7 + $0x98] sm:$0xff] }
 0x109   :  { %583 = vst [vmem:[#allocation3 + $0x30] sm:$0xff] %v582_v6  ;;  %v610_v20 = vld [vmem:[%s7764_s7 + $0xa0] sm:$0xff]  ;;  %v612_v21 = vld [vmem:[%s7764_s7 + $0xa8] sm:$0xff]  ;;  %v614_v22 = vld [vmem:[%s7764_s7 + $0xb0] sm:$0xff] }
 0x10a   :  { %585 = vst [vmem:[#allocation3 + $0x38] sm:$0xff] %v584_v7  ;;  %v616_v23 = vld [vmem:[%s7764_s7 + $0xb8] sm:$0xff]  ;;  %v618_v24 = vld [vmem:[%s7764_s7 + $0xc0] sm:$0xff]  ;;  %v620_v25 = vld [vmem:[%s7764_s7 + $0xc8] sm:$0xff] }
 0x10b   :  { %587 = vst [vmem:[#allocation3 + $0x40] sm:$0xff] %v586_v8  ;;  %v622_v26 = vld [vmem:[%s7764_s7 + $0xd0] sm:$0xff]  ;;  %v624_v27 = vld [vmem:[%s7764_s7 + $0xd8] sm:$0xff]  ;;  %v626_v28 = vld [vmem:[%s7764_s7 + $0xe0] sm:$0xff] }
 0x10c   :  { %589 = vst [vmem:[#allocation3 + $0x48] sm:$0xff] %v588_v9  ;;  %v628_v29 = vld [vmem:[%s7764_s7 + $0xe8] sm:$0xff]  ;;  %v630_v30 = vld [vmem:[%s7764_s7 + $0xf0] sm:$0xff]  ;;  %v632_v31 = vld [vmem:[%s7764_s7 + $0xf8] sm:$0xff] }
 0x10d   :  { %591 = vst [vmem:[#allocation3 + $0x50] sm:$0xff] %v590_v10  ;;  %v634_v32 = vld [vmem:[%s7764_s7 + $0x100] sm:$0xff]  ;;  %v636_v33 = vld [vmem:[%s7764_s7 + $0x108] sm:$0xff]  ;;  %v638_v34 = vld [vmem:[%s7764_s7 + $0x110] sm:$0xff] }
 0x10e   :  { %593 = vst [vmem:[#allocation3 + $0x58] sm:$0xff] %v592_v11  ;;  %v640_v35 = vld [vmem:[%s7764_s7 + $0x118] sm:$0xff]  ;;  %v642_v36 = vld [vmem:[%s7764_s7 + $0x120] sm:$0xff]  ;;  %v644_v37 = vld [vmem:[%s7764_s7 + $0x128] sm:$0xff] }
 0x10f   :  { %595 = vst [vmem:[#allocation3 + $0x60] sm:$0xff] %v594_v12  ;;  %v646_v38 = vld [vmem:[%s7764_s7 + $0x130] sm:$0xff]  ;;  %v648_v39 = vld [vmem:[%s7764_s7 + $0x138] sm:$0xff]  ;;  %v650_v40 = vld [vmem:[%s7764_s7 + $0x140] sm:$0xff] }
 0x110   :  { %597 = vst [vmem:[#allocation3 + $0x68] sm:$0xff] %v596_v13  ;;  %v652_v41 = vld [vmem:[%s7764_s7 + $0x148] sm:$0xff]  ;;  %v654_v42 = vld [vmem:[%s7764_s7 + $0x150] sm:$0xff]  ;;  %v656_v43 = vld [vmem:[%s7764_s7 + $0x158] sm:$0xff] }
 0x111   :  { %599 = vst [vmem:[#allocation3 + $0x70] sm:$0xff] %v598_v14  ;;  %v658_v44 = vld [vmem:[%s7764_s7 + $0x160] sm:$0xff]  ;;  %v660_v45 = vld [vmem:[%s7764_s7 + $0x168] sm:$0xff]  ;;  %v662_v46 = vld [vmem:[%s7764_s7 + $0x170] sm:$0xff] }
 0x112   :  { %601 = vst [vmem:[#allocation3 + $0x78] sm:$0xff] %v600_v15  ;;  %v664_v47 = vld [vmem:[%s7764_s7 + $0x178] sm:$0xff]  ;;  %v666_v48 = vld [vmem:[%s7764_s7 + $0x180] sm:$0xff]  ;;  %v668_v49 = vld [vmem:[%s7764_s7 + $0x188] sm:$0xff] }
 0x113   :  { %603 = vst [vmem:[#allocation3 + $0x80] sm:$0xff] %v602_v16  ;;  %v670_v50 = vld [vmem:[%s7764_s7 + $0x190] sm:$0xff]  ;;  %v672_v51 = vld [vmem:[%s7764_s7 + $0x198] sm:$0xff]  ;;  %v674_v52 = vld [vmem:[%s7764_s7 + $0x1a0] sm:$0xff] }
 0x114   :  { %605 = vst [vmem:[#allocation3 + $0x88] sm:$0xff] %v604_v17  ;;  %v676_v53 = vld [vmem:[%s7764_s7 + $0x1a8] sm:$0xff]  ;;  %v678_v54 = vld [vmem:[%s7764_s7 + $0x1b0] sm:$0xff]  ;;  %v680_v55 = vld [vmem:[%s7764_s7 + $0x1b8] sm:$0xff] }
 0x115   :  { %607 = vst [vmem:[#allocation3 + $0x90] sm:$0xff] %v606_v18  ;;  %v682_v56 = vld [vmem:[%s7764_s7 + $0x1c0] sm:$0xff]  ;;  %v684_v57 = vld [vmem:[%s7764_s7 + $0x1c8] sm:$0xff]  ;;  %v686_v58 = vld [vmem:[%s7764_s7 + $0x1d0] sm:$0xff] }
 0x116   :  { %609 = vst [vmem:[#allocation3 + $0x98] sm:$0xff] %v608_v19  ;;  %v688_v59 = vld [vmem:[%s7764_s7 + $0x1d8] sm:$0xff]  ;;  %v690_v60 = vld [vmem:[%s7764_s7 + $0x1e0] sm:$0xff]  ;;  %v692_v61 = vld [vmem:[%s7764_s7 + $0x1e8] sm:$0xff] }
 0x117   :  { %611 = vst [vmem:[#allocation3 + $0xa0] sm:$0xff] %v610_v20  ;;  %v694_v62 = vld [vmem:[%s7764_s7 + $0x1f0] sm:$0xff]  ;;  %v696_v63 = vld [vmem:[%s7764_s7 + $0x1f8] sm:$0xff]  ;;  %v7126_v1 = vld [vmem:[%s7757_s0] sm:$0x3] }
 0x118   :  { %613 = vst [vmem:[#allocation3 + $0xa8] sm:$0xff] %v612_v21  ;;  %v802_v0 = vld [vmem:[%s7765_s8 + $0x30] sm:$0xff] }
 0x119   :  { %615 = vst [vmem:[#allocation3 + $0xb0] sm:$0xff] %v614_v22 }
 0x11a   :  { %617 = vst [vmem:[#allocation3 + $0xb8] sm:$0xff] %v616_v23 }
 0x11b   :  { %619 = vst [vmem:[#allocation3 + $0xc0] sm:$0xff] %v618_v24 }
 0x11c   :  { %621 = vst [vmem:[#allocation3 + $0xc8] sm:$0xff] %v620_v25 }
 0x11d   :  { %623 = vst [vmem:[#allocation3 + $0xd0] sm:$0xff] %v622_v26 }
 0x11e   :  { %625 = vst [vmem:[#allocation3 + $0xd8] sm:$0xff] %v624_v27 }
 0x11f   :  { %627 = vst [vmem:[#allocation3 + $0xe0] sm:$0xff] %v626_v28 }
 0x120   :  { %629 = vst [vmem:[#allocation3 + $0xe8] sm:$0xff] %v628_v29 }
 0x121   :  { %631 = vst [vmem:[#allocation3 + $0xf0] sm:$0xff] %v630_v30 }
 0x122   :  { %633 = vst [vmem:[#allocation3 + $0xf8] sm:$0xff] %v632_v31 }
 0x123   :  { %635 = vst [vmem:[#allocation3 + $0x100] sm:$0xff] %v634_v32 }
 0x124   :  { %637 = vst [vmem:[#allocation3 + $0x108] sm:$0xff] %v636_v33 }
 0x125   :  { %639 = vst [vmem:[#allocation3 + $0x110] sm:$0xff] %v638_v34 }
 0x126   :  { %641 = vst [vmem:[#allocation3 + $0x118] sm:$0xff] %v640_v35 }
 0x127   :  { %643 = vst [vmem:[#allocation3 + $0x120] sm:$0xff] %v642_v36 }
 0x128   :  { %645 = vst [vmem:[#allocation3 + $0x128] sm:$0xff] %v644_v37 }
 0x129   :  { %647 = vst [vmem:[#allocation3 + $0x130] sm:$0xff] %v646_v38 }
 0x12a   :  { %649 = vst [vmem:[#allocation3 + $0x138] sm:$0xff] %v648_v39 }
 0x12b   :  { %651 = vst [vmem:[#allocation3 + $0x140] sm:$0xff] %v650_v40 }
 0x12c   :  { %653 = vst [vmem:[#allocation3 + $0x148] sm:$0xff] %v652_v41 }
 0x12d   :  { %655 = vst [vmem:[#allocation3 + $0x150] sm:$0xff] %v654_v42 }
 0x12e   :  { %657 = vst [vmem:[#allocation3 + $0x158] sm:$0xff] %v656_v43 }
 0x12f   :  { %659 = vst [vmem:[#allocation3 + $0x160] sm:$0xff] %v658_v44 }
 0x130   :  { %661 = vst [vmem:[#allocation3 + $0x168] sm:$0xff] %v660_v45 }
 0x131   :  { %663 = vst [vmem:[#allocation3 + $0x170] sm:$0xff] %v662_v46 }
 0x132   :  { %665 = vst [vmem:[#allocation3 + $0x178] sm:$0xff] %v664_v47 }
 0x133   :  { %667 = vst [vmem:[#allocation3 + $0x180] sm:$0xff] %v666_v48 }
 0x134   :  { %669 = vst [vmem:[#allocation3 + $0x188] sm:$0xff] %v668_v49 }
 0x135   :  { %671 = vst [vmem:[#allocation3 + $0x190] sm:$0xff] %v670_v50 }
 0x136   :  { %673 = vst [vmem:[#allocation3 + $0x198] sm:$0xff] %v672_v51 }
 0x137   :  { %675 = vst [vmem:[#allocation3 + $0x1a0] sm:$0xff] %v674_v52 }
 0x138   :  { %677 = vst [vmem:[#allocation3 + $0x1a8] sm:$0xff] %v676_v53 }
 0x139   :  { %679 = vst [vmem:[#allocation3 + $0x1b0] sm:$0xff] %v678_v54 }
 0x13a   :  { %681 = vst [vmem:[#allocation3 + $0x1b8] sm:$0xff] %v680_v55 }
 0x13b   :  { %683 = vst [vmem:[#allocation3 + $0x1c0] sm:$0xff] %v682_v56 }
 0x13c   :  { %685 = vst [vmem:[#allocation3 + $0x1c8] sm:$0xff] %v684_v57 }
 0x13d   :  { %687 = vst [vmem:[#allocation3 + $0x1d0] sm:$0xff] %v686_v58 }
 0x13e   :  { %689 = vst [vmem:[#allocation3 + $0x1d8] sm:$0xff] %v688_v59 }
 0x13f   :  { %691 = vst [vmem:[#allocation3 + $0x1e0] sm:$0xff] %v690_v60 }
 0x140   :  { %693 = vst [vmem:[#allocation3 + $0x1e8] sm:$0xff] %v692_v61 }
 0x141   :  { %695 = vst [vmem:[#allocation3 + $0x1f0] sm:$0xff] %v694_v62 }
 0x142   :  { %697 = vst [vmem:[#allocation3 + $0x1f8] sm:$0xff] %v696_v63 }
 0x143   :  { %703 = vsyncadd [#allocation4 + $0x1], 8192  ;;  %819 = vmatpush.msra.mxu2 %v802_v0  ;;  %v705_v2 = vld [vmem:[%s7765_s8] sm:$0xff]  ;;  %v826_v4 = vld [vmem:[%s7765_s8 + $0x50] sm:$0xff]  ;;  %vm736_vm1 = vcmask 130048   ;;  %v762_v18 = vlaneseq  ;;  %vm905_vm5 = vcmask 1041408  }
 0x144   :  { %4438 = vmatmul.msk.f32.vlgmr.msra.gmra.mxu2 %vm707_vm0, %v7126_v1  ;;  %726 = vmatpush.msra.mxu0 %v705_v2  ;;  %v827_v3 = vld [vmem:[%s7765_s8 + $0x60] sm:$0xff]  ;;  %v733_v6 = vld [vmem:[%s7765_s8 + $0x10] sm:$0xff]  ;;  %v6103_v31 = vmov 0.0   ;;  %vm901_vm6 = vcmask 15360   ;;  %v6104_v41 = vmov 0  }
 0x145   :  { %4431 = vmatmul.msk.f32.vlgmr.msra.gmra.mxu0 %vm707_vm0, %v7126_v1  ;;  %846 = vmatpush.msra.mxu3 %v827_v3  ;;  %v734_v5 = vld [vmem:[%s7765_s8 + $0x20] sm:$0xff]  ;;  %v852_v16 = vld [vmem:[%s7765_s8 + $0x70] sm:$0xff]  ;;  %v7168_v19 = vand.u32 127, %v762_v18  ;;  %v7171_v21 = vshrl.u32 %v762_v18, 7 }
 0x146   :  { %754 = vmatpush.msra.mxu1 %v734_v5  ;;  %v853_v7 = vld [vmem:[%s7765_s8 + $0x80] sm:$0xff]  ;;  %6085 = vset.pattern.permute.xlu0 %v6104_v41  ;;  %v878_v51 = vld [vmem:[%s7765_s8 + $0x90] sm:$0xff] }
 0x147   :  { %847 = vmatpush.msra.mxu3 %v826_v4  ;;  %872 = vmatpush.msrb.mxu0 %v853_v7  ;;  %v706_v8 = vld [vmem:[%s7766_s9] ss:$0 sm:$0xff]  ;;  %v803_v11 = vld [vmem:[%s7766_s9 + $0x4] ss:$0 sm:$0xff]  ;;  %v766_v20 = vmul.u32 4, %v7168_v19  ;;  %v781_v33 = vmul.u32 8, %v7168_v19 }
 0x148   :  { %755 = vmatpush.msra.mxu1 %v733_v6  ;;  %v824_v17 = vld [vmem:[%s7759_s2] sm:$0xff]  ;;  %v780_v34 = vadd.s32 8, %v7171_v21 }
 0x149   :  { %873 = vmatpush.msrb.mxu0 %v852_v16  ;;  %v768_v22 = vadd.s32 4, %v766_v20  ;;  %v735_v23 = vld [vmem:[%s7766_s9 + $0x1] ss:$0 sm:$0xff]  ;;  %vm767_vm2 = vcmp.ge.s32.totalorder %v7171_v21, %v766_v20  ;;  %v828_v27 = vld [vmem:[%s7766_s9 + $0x6] ss:$0 sm:$0xff]  ;;  %v784_v35 = vadd.s32 8, %v781_v33  ;;  %vm782_vm10 = vcmp.ge.s32.totalorder %v7171_v21, %v781_v33 }
 0x14a   :  { %vm783_vm7 = vcmp.ge.s32.totalorder %v780_v34, %v781_v33  ;;  %v825_v40 = vld [vmem:[%s7760_s3] sm:$0xff] }
 0x14b   :  { %vm769_vm3 = vcmp.lt.s32.totalorder %v7171_v21, %v768_v22  ;;  %vm786_vm8 = vcmp.lt.s32.totalorder %v780_v34, %v784_v35  ;;  %vm785_vm11 = vcmp.lt.s32.totalorder %v7171_v21, %v784_v35  ;;  %vm953_vm13 = vcmp.gt.f32.partialorder %v825_v40, 0.0  ;;  %v1174_v43 = vld [vmem:[%s7762_s5] sm:$0xff]  ;;  %v1128_v40 = vld [vmem:[%s7765_s8 + $0xd0] sm:$0xff] }
 0x14c   :  { %vm770_vm4 = vmand %vm767_vm2, %vm769_vm3  ;;  %v954_v42 = vsel %vm953_vm13, 1, %v6104_v41  ;;  %vm1297_vm14 = vcmp.gt.f32.partialorder %v1174_v43, 0.0  ;;  %v854_v45 = vld [vmem:[%s7766_s9 + $0x7] ss:$0 sm:$0xff]  ;;  %vm961_vm2 = vcmp.lt.s32.totalorder %v7171_v21, 4  ;;  %vm975_vm3 = vcmp.ge.s32.totalorder %v7171_v21, 4 }
 0x14d   :  { %4440 = vmatmul.msk.f32.vlgmr.msrb.gmra.mxu0 %vm736_vm1, %v824_v17  ;;  %v7189_v32 = vsel %vm770_vm4, 1.0, %v6103_v31  ;;  %vm788_vm9 = vmand %vm783_vm7, %vm786_vm8  ;;  %956 = vperm.xlu0 %6085, %v954_v42   ;;  %v1298_v44 = vsel %vm1297_vm14, 1, %v6104_v41  ;;  %v879_v50 = vld [vmem:[%s7765_s8 + $0xa0] sm:$0xff]  ;;  %v795_v41 = vmul.u32 8, %v7171_v21 }
 0x14e   :  { %v4436_v36 = vsel %vm788_vm9, 1.0, %v6103_v31  ;;  %vm787_vm12 = vmand %vm782_vm10, %vm785_vm11  ;;  %895 = vmatpush.msra.mxu0 %v879_v50 }
 0x14f   :  { %v7199_v37 = vmul.f32 0.35355338, %v4436_v36  ;;  %v4435_v38 = vsel %vm787_vm12, 1.0, %v6103_v31  ;;  %v797_v42 = vadd.s32 8, %v795_v41  ;;  %vm796_vm13 = vcmp.ge.s32.totalorder %v7168_v19, %v795_v41 }
 0x150   :  { %v7203_v39 = vmul.f32 0.35355338, %v4435_v38  ;;  %896 = vmatpush.msra.mxu0 %v878_v51  ;;  %v1129_v38 = vld [vmem:[%s7765_s8 + $0xe0] sm:$0xff] }
 0x151   :  { %947 = vmatpush.msrb.mxu3 %v7199_v37  ;;  %vm798_vm14 = vcmp.lt.s32.totalorder %v7168_v19, %v797_v42 }
 0x153   :  { %948 = vmatpush.msrb.mxu3 %v7203_v39 }
 0x155   :  { %1300 = vperm.xlu0 %6085, %v1298_v44   ;;  %4441 = vmatmul.msk.f32.vlgmr.msra.gmra.mxu0 %vm736_vm1, %v824_v17  ;;  %v1151_v44 = vld [vmem:[%s7765_s8 + $0x40] sm:$0xff] }
 0x1bf   :  { %v957_v52 = vpop.permute.xlu0 %956 }
 0x1c0   :  { %vm958_vm15 = vcmp.eq.s32.totalorder %v957_v52, 1 }
 0x1c2   :  { %v728_v9 = vpop.f32.mrf.mxu0 }
 0x1c3   :  { %v729_v10 = vadd.f32 %v728_v9, %v706_v8  ;;  %v773_v8 = vmul.u32 4, %v7171_v21 }
 0x1c5   :  { %v731_v12 = vmul.f32 0.01, %v729_v10  ;;  %vm774_vm4 = vcmp.ge.s32.totalorder %v7168_v19, %v773_v8 }
 0x1c7   :  { %v821_v13 = vpop.f32.mrf.mxu2  ;;  %v732_v14 = vmax.f32 %v729_v10, %v731_v12  ;;  %v775_v12 = vadd.s32 4, %v773_v8  ;;  %v1301_v8 = vpop.permute.xlu0 %1300 }
 0x1c8   :  { %v7156_v15 = vadd.f32 %v821_v13, %v803_v11 }
 0x1c9   :  { %4432 = vmatmul.msk.f32.vlgmr.msra.gmra.mxu1 %vm736_vm1, %v732_v14  ;;  %vm776_vm7 = vcmp.lt.s32.totalorder %v7168_v19, %v775_v12 }
 0x1ca   :  { %4439 = vmatmul.msk.f32.vlgmr.msra.gmra.mxu3 %vm736_vm1, %v7156_v15  ;;  %v875_v46 = vpop.f32.mrf.mxu0  ;;  %vm777_vm8 = vmand %vm774_vm4, %vm776_vm7  ;;  %vm1302_vm4 = vcmp.eq.s32.totalorder %v1301_v8, 1 }
 0x1cb   :  { %v876_v47 = vadd.f32 %v875_v46, %v854_v45  ;;  %v7239_v16 = vsel %vm777_vm8, 1.0, %v6103_v31 }
 0x1d2   :  { %v898_v18 = vpop.f32.mrf.mxu0 }
 0x246   :  { %v757_v24 = vpop.f32.mrf.mxu1 }
 0x247   :  { %v7176_v25 = vadd.f32 %v757_v24, %v735_v23 }
 0x249   :  { %v7181_v26 = vmul.f32 0.01, %v7176_v25 }
 0x24b   :  { %v761_v28 = vmax.f32 %v7176_v25, %v7181_v26 }
 0x24d   :  { %v849_v29 = vpop.f32.mrf.mxu3 }
 0x24e   :  { %v850_v30 = vadd.f32 %v849_v29, %v828_v27 }
 0x250   :  { %4442 = vmatpush.msk.msrb.mxu1 %vm905_vm5, %v850_v30 }
 0x251   :  { %4443 = vmatmul.msk.f32.vlgmr.msrb.gmra.mxu1 %vm901_vm6, %v7189_v32 }
 0x2ce   :  { %v926_v48 = vpop.f32.mrf.mxu1 }
 0x2cf   :  { %v929_v49 = vmul.f32 %v926_v48, %v876_v47 }
 0x2d1   :  { %4444 = vmatmul.msk.f32.vlgmr.msrb.gmra.mxu3 %vm736_vm1, %v929_v49  ;;  %v880_v49 = vld [vmem:[%s7766_s9 + $0x20] ss:$0 sm:$0xff] }
 0x2d2   :  { %v899_v50 = vadd.f32 %v898_v18, %v880_v49 }
 0x354   :  { %v950_v53 = vpop.f32.mrf.mxu3 }
 0x355   :  { %v959_v54 = vsel %vm958_vm15, %v950_v53, -1e+09  ;;  %vm799_vm15 = vmand %vm796_vm13, %vm798_vm14  ;;  %v1176_v53 = vld [vmem:[%s7765_s8 + $0x100] sm:$0xff] }
 0x356   :  { %v965_v55 = vsel %vm961_vm2, %v959_v54, -3e+38  ;;  %v980_v56 = vsel %vm975_vm3, %v959_v54, -3e+38  ;;  %v4437_v43 = vsel %vm799_vm15, 1.0, %v6103_v31  ;;  %v1103_v31 = vld [vmem:[%s7765_s8 + $0xc0] sm:$0xff] }
 0x357   :  { %v966_v57 = vsel %vm901_vm6, %v965_v55, -inf  ;;  %v981_v58 = vsel %vm901_vm6, %v980_v56, -inf  ;;  %4448 = vmatpush.msk.msra.mxu1 %vm905_vm5, %v4437_v43 }
 0x358   :  { %v967_v59 = vrot.slane %v966_v57, 4  ;;  %v982_v60 = vrot.slane %v981_v58, 4 }
 0x359   :  { %1168 = vmatpush.msrb.mxu1 %v1151_v44  ;;  %v1228_v44 = vld [vmem:[%s7765_s8 + $0x140] sm:$0xff] }
 0x35a   :  { %v968_v61 = vmax.f32 %v966_v57, %v967_v59  ;;  %v983_v62 = vmax.f32 %v981_v58, %v982_v60  ;;  %v1102_v57 = vld [vmem:[%s7765_s8 + $0xb0] sm:$0xff]  ;;  %v1202_v58 = vld [vmem:[%s7765_s8 + $0x120] sm:$0xff] }
 0x35b   :  { %v1173_v60 = vld [vmem:[%s7761_s4] sm:$0xff] }
 0x35c   :  { %v969_v63 = vrot.slane %v968_v61, 2  ;;  %v984_v0 = vrot.slane %v983_v62, 2 }
 0x35e   :  { %v970_v2 = vmax.f32 %v968_v61, %v969_v63  ;;  %v985_v3 = vmax.f32 %v983_v62, %v984_v0  ;;  %v1104_v63 = vld [vmem:[%s7766_s9 + $0x21] ss:$0 sm:$0xff] }
 0x360   :  { %v971_v4 = vrot.slane %v970_v2, 1  ;;  %v986_v5 = vrot.slane %v985_v3, 1 }
 0x362   :  { %v972_v6 = vmax.f32 %v970_v2, %v971_v4  ;;  %v987_v7 = vmax.f32 %v985_v3, %v986_v5  ;;  %v1203_v3 = vld [vmem:[%s7766_s9 + $0x24] ss:$0 sm:$0xff] }
 0x364   :  { %v973_v9 = vsel %vm961_vm2, %v972_v6, 0.0  ;;  %v988_v10 = vsel %vm975_vm3, %v987_v7, 0.0 }
 0x365   :  { %v989_v11 = vadd.f32 %v988_v10, %v973_v9 }
 0x367   :  { %v990_v13 = vsub.f32 %v959_v54, %v989_v11  ;;  %v1152_v54 = vld [vmem:[%s7766_s9 + $0x5] ss:$0 sm:$0xff] }
 0x369   :  { %v991_v14 = vmul.f32 1.442695, %v990_v13 }
 0x36b   :  { %6086 = vpow2.f32 %v991_v14 }
 0x371   :  { %v6087_v17 = vpop.eup %6086 }
 0x372   :  { %1011 = vmatpush.msrb.mxu0 %v6087_v17 }
 0x373   :  { %4445 = vmatmul.msk.f32.vlgmr.msrb.gmra.mxu0 %vm707_vm0, %v7239_v16 }
 0x374   :  { %1122 = vmatpush.msra.mxu0 %v1103_v31 }
 0x376   :  { %1123 = vmatpush.msra.mxu0 %v1102_v57 }
 0x378   :  { %1221 = vmatpush.msrb.mxu0 %v1202_v58 }
 0x3f0   :  { %v1013_v20 = vpop.f32.mrf.mxu0 }
 0x3f1   :  { %6088 = vrcp.f32 %v1013_v20  ;;  %v1027_v27 = vand.u32 2147483648, %v1013_v20  ;;  %v1025_v30 = vand.u32 2147483647, %v1013_v20  ;;  %vm1021_vm10 = vweird.f32 %v1013_v20 }
 0x3f3   :  { %v1028_v34 = vor.u32 1.1754944e-38, %v1027_v27  ;;  %vm1026_vm12 = vcmp.eq.f32.partialorder %v1025_v30, 8.507059e+37 }
 0x3f7   :  { %v6089_v22 = vpop.eup %6088 }
 0x3f8   :  { %v1017_v23 = vmul.f32 %v6089_v22, %v1013_v20  ;;  %vm1022_vm9 = vweird.f32 %v6089_v22 }
 0x3f9   :  { %vm1023_vm11 = vmor %vm1021_vm10, %vm1022_vm9 }
 0x3fa   :  { %v1018_v24 = vsub.f32 1.0, %v1017_v23 }
 0x3fc   :  { %v1019_v29 = vmul.f32 %v6089_v22, %v1018_v24 }
 0x3fe   :  { %v1020_v33 = vadd.f32 %v6089_v22, %v1019_v29 }
 0x400   :  { %v1024_v35 = vsel %vm1023_vm11, %v6089_v22, %v1020_v33 }
 0x401   :  { %v1029_v36 = vsel %vm1026_vm12, %v1028_v34, %v1024_v35 }
 0x402   :  { %4446 = vmatpush.msk.msrb.mxu2 %vm905_vm5, %v1029_v36 }
 0x403   :  { %4447 = vmatmul.msk.f32.vlgmr.msrb.gmra.mxu2 %vm901_vm6, %v7189_v32 }
 0x404   :  { %1145 = vmatpush.msra.mxu2 %v1129_v38 }
 0x406   :  { %1146 = vmatpush.msra.mxu2 %v1128_v40 }
 0x408   :  { %1244 = vmatpush.msrb.mxu2 %v1228_v44 }
 0x40b   :  { %4452 = vmatmul.msk.f32.vlgmr.msra.gmra.mxu2 %vm736_vm1, %v7156_v15  ;;  %v1130_v15 = vld [vmem:[%s7766_s9 + $0x22] ss:$0 sm:$0xff] }
 0x486   :  { %v1051_v45 = vpop.f32.mrf.mxu2 }
 0x487   :  { %v1054_v46 = vmul.f32 %v6087_v17, %v1051_v45  ;;  %v1227_v45 = vld [vmem:[%s7765_s8 + $0x130] sm:$0xff] }
 0x488   :  { %1245 = vmatpush.msrb.mxu2 %v1227_v45 }
 0x489   :  { %4449 = vmatmul.msk.f32.vlgmr.msra.gmra.mxu1 %vm901_vm6, %v1054_v46  ;;  %4456 = vmatmul.msk.f32.vlgmr.msrb.gmra.mxu2 %vm736_vm1, %v1173_v60 }
 0x48e   :  { %v1148_v47 = vpop.f32.mrf.mxu2 }
 0x48f   :  { %v7266_v48 = vadd.f32 %v1148_v47, %v1130_v15 }
 0x491   :  { %4453 = vmatmul.msk.f32.vlgmr.msrb.gmra.mxu1 %vm707_vm0, %v7126_v1  ;;  %v1175_v1 = vld [vmem:[%s7765_s8 + $0xf0] sm:$0xff] }
 0x506   :  { %v1078_v51 = vpop.f32.mrf.mxu1 }
 0x507   :  { %v1081_v52 = vmul.f32 %v1078_v51, %v899_v50 }
 0x509   :  { %1097 = vmatpush.msra.mxu3 %v1081_v52 }
 0x50a   :  { %4450 = vmatmul.msk.f32.vlgmr.msra.gmra.mxu3 %vm707_vm0, %v7239_v16 }
 0x50b   :  { %1195 = vmatpush.msrb.mxu3 %v1176_v53 }
 0x50c   :  { %v1247_v57 = vpop.f32.mrf.mxu2 }
 0x50d   :  { %1196 = vmatpush.msrb.mxu3 %v1175_v1 }
 0x50e   :  { %v1170_v55 = vpop.f32.mrf.mxu1 }
 0x50f   :  { %1291 = vmatpush.msra.mxu3 %v7199_v37  ;;  %v7288_v56 = vadd.f32 %v1170_v55, %v1152_v54  ;;  %v1201_v37 = vld [vmem:[%s7765_s8 + $0x110] sm:$0xff]  ;;  %v1457_v54 = vld [vmem:[%s7765_s8 + $0x180] sm:$0xff] }
 0x510   :  { %1222 = vmatpush.msrb.mxu0 %v1201_v37  ;;  %v1456_v55 = vld [vmem:[%s7765_s8 + $0x170] sm:$0xff] }
 0x511   :  { %1292 = vmatpush.msra.mxu3 %v7203_v39  ;;  %v1177_v39 = vld [vmem:[%s7766_s9 + $0x23] ss:$0 sm:$0xff] }
 0x512   :  { %4454 = vmatmul.msk.f32.vlgmr.msrb.gmra.mxu3 %vm736_vm1, %v7288_v56 }
 0x58d   :  { %v1099_v59 = vpop.f32.mrf.mxu3 }
 0x58e   :  { %4451 = vmatmul.msk.f32.vlgmr.msra.gmra.mxu0 %vm736_vm1, %v1099_v59  ;;  %v1458_v59 = vld [vmem:[%s7766_s9 + $0x27] ss:$0 sm:$0xff] }
 0x595   :  { %v1198_v61 = vpop.f32.mrf.mxu3 }
 0x596   :  { %v1199_v62 = vadd.f32 %v1198_v61, %v1177_v39  ;;  %4455 = vmatmul.msk.f32.vlgmr.msrb.gmra.mxu0 %vm736_vm1, %v1173_v60  ;;  %v1431_v60 = vld [vmem:[%s7765_s8 + $0x160] sm:$0xff] }
 0x597   :  { %v1229_v61 = vld [vmem:[%s7766_s9 + $0x25] ss:$0 sm:$0xff] }
 0x598   :  { %4457 = vmatpush.msk.msra.mxu1 %vm905_vm5, %v1199_v62  ;;  %v1248_v62 = vadd.f32 %v1247_v57, %v1229_v61 }
 0x599   :  { %4458 = vmatmul.msk.f32.vlgmr.msra.gmra.mxu1 %vm901_vm6, %v7189_v32 }
 0x59a   :  { %4463 = vmatpush.msk.msrb.mxu1 %vm905_vm5, %v4437_v43 }
 0x60b   :  { %v1125_v0 = vpop.f32.mrf.mxu0 }
 0x60c   :  { %v7317_v2 = vadd.f32 %v1125_v0, %v1104_v63 }
 0x613   :  { %v1224_v4 = vpop.f32.mrf.mxu0 }
 0x614   :  { %v1225_v5 = vadd.f32 %v1224_v4, %v1203_v3  ;;  %v1432_v4 = vld [vmem:[%s7766_s9 + $0x26] ss:$0 sm:$0xff] }
 0x616   :  { %v1270_v6 = vpop.f32.mrf.mxu1 }
 0x617   :  { %v1273_v7 = vmul.f32 %v1270_v6, %v1225_v5 }
 0x619   :  { %4459 = vmatmul.msk.f32.vlgmr.msra.gmra.mxu3 %vm736_vm1, %v1273_v7 }
 0x69c   :  { %v1294_v9 = vpop.f32.mrf.mxu3 }
 0x69d   :  { %v1303_v10 = vsel %vm1302_vm4, %v1294_v9, -1e+09 }
 0x69e   :  { %v1304_v11 = vsel %vm961_vm2, %v1303_v10, -3e+38  ;;  %v1314_v12 = vsel %vm975_vm3, %v1303_v10, -3e+38 }
 0x69f   :  { %v1305_v13 = vsel %vm901_vm6, %v1304_v11, -inf  ;;  %v1315_v14 = vsel %vm901_vm6, %v1314_v12, -inf }
 0x6a0   :  { %v1306_v17 = vrot.slane %v1305_v13, 4  ;;  %v1316_v18 = vrot.slane %v1315_v14, 4 }
 0x6a2   :  { %v1307_v20 = vmax.f32 %v1305_v13, %v1306_v17  ;;  %v1317_v22 = vmax.f32 %v1315_v14, %v1316_v18 }
 0x6a4   :  { %v1308_v23 = vrot.slane %v1307_v20, 2  ;;  %v1318_v24 = vrot.slane %v1317_v22, 2 }
 0x6a6   :  { %v1309_v27 = vmax.f32 %v1307_v20, %v1308_v23  ;;  %v1319_v29 = vmax.f32 %v1317_v22, %v1318_v24 }
 0x6a8   :  { %v1310_v30 = vrot.slane %v1309_v27, 1  ;;  %v1320_v33 = vrot.slane %v1319_v29, 1 }
 0x6aa   :  { %v1311_v34 = vmax.f32 %v1309_v27, %v1310_v30  ;;  %v1321_v35 = vmax.f32 %v1319_v29, %v1320_v33 }
 0x6ac   :  { %v1312_v36 = vsel %vm961_vm2, %v1311_v34, 0.0  ;;  %v1322_v38 = vsel %vm975_vm3, %v1321_v35, 0.0 }
 0x6ad   :  { %v1323_v40 = vadd.f32 %v1322_v38, %v1312_v36 }
 0x6af   :  { %v1324_v41 = vsub.f32 %v1303_v10, %v1323_v40 }
 0x6b1   :  { %v1325_v42 = vmul.f32 1.442695, %v1324_v41 }
 0x6b3   :  { %6090 = vpow2.f32 %v1325_v42 }
 0x6b9   :  { %v6091_v43 = vpop.eup %6090 }
 0x6ba   :  { %1342 = vmatpush.msra.mxu0 %v6091_v43 }
 0x6bb   :  { %4460 = vmatmul.msk.f32.vlgmr.msra.gmra.mxu0 %vm707_vm0, %v7239_v16 }
 0x6bc   :  { %1450 = vmatpush.msrb.mxu0 %v1431_v60 }
 0x738   :  { %v1344_v21 = vpop.f32.mrf.mxu0 }
 0x739   :  { %6092 = vrcp.f32 %v1344_v21  ;;  %v1358_v31 = vand.u32 2147483648, %v1344_v21  ;;  %v1356_v50 = vand.u32 2147483647, %v1344_v21  ;;  %vm1352_vm3 = vweird.f32 %v1344_v21 }
 0x73b   :  { %v1359_v52 = vor.u32 1.1754944e-38, %v1358_v31  ;;  %vm1357_vm8 = vcmp.eq.f32.partialorder %v1356_v50, 8.507059e+37 }
 0x73f   :  { %v6093_v46 = vpop.eup %6092 }
 0x740   :  { %v1348_v15 = vmul.f32 %v6093_v46, %v1344_v21  ;;  %vm1353_vm2 = vweird.f32 %v6093_v46 }
 0x741   :  { %vm1354_vm7 = vmor %vm1352_vm3, %vm1353_vm2 }
 0x742   :  { %v1349_v47 = vsub.f32 1.0, %v1348_v15 }
 0x744   :  { %v1350_v49 = vmul.f32 %v6093_v46, %v1349_v47 }
 0x746   :  { %v1351_v51 = vadd.f32 %v6093_v46, %v1350_v49 }
 0x748   :  { %v1355_v53 = vsel %vm1354_vm7, %v6093_v46, %v1351_v51 }
 0x749   :  { %v1360_v1 = vsel %vm1357_vm8, %v1359_v52, %v1355_v53 }
 0x74a   :  { %4461 = vmatpush.msk.msra.mxu2 %vm905_vm5, %v1360_v1 }
 0x74b   :  { %4462 = vmatmul.msk.f32.vlgmr.msra.gmra.mxu2 %vm901_vm6, %v7189_v32 }
 0x74c   :  { %1473 = vmatpush.msrb.mxu2 %v1457_v54 }
 0x74e   :  { %1474 = vmatpush.msrb.mxu2 %v1456_v55 }
 0x753   :  { %4467 = vmatmul.msk.f32.vlgmr.msrb.gmra.mxu2 %vm736_vm1, %v7288_v56  ;;  %v1430_v56 = vld [vmem:[%s7765_s8 + $0x150] sm:$0xff] }
 0x754   :  { %1451 = vmatpush.msrb.mxu0 %v1430_v56 }
 0x7ce   :  { %v1382_v58 = vpop.f32.mrf.mxu2 }
 0x7cf   :  { %v1385_v37 = vmul.f32 %v6091_v43, %v1382_v58 }
 0x7d1   :  { %4464 = vmatmul.msk.f32.vlgmr.msrb.gmra.mxu1 %vm901_vm6, %v1385_v37 }
 0x7d6   :  { %v1476_v39 = vpop.f32.mrf.mxu2 }
 0x7d7   :  { %v7357_v32 = vadd.f32 %v1476_v39, %v1458_v59 }
 0x84e   :  { %v1406_v63 = vpop.f32.mrf.mxu1 }
 0x84f   :  { %v1409_v0 = vmul.f32 %v1406_v63, %v1248_v62 }
 0x851   :  { %1425 = vmatpush.msrb.mxu3 %v1409_v0 }
 0x852   :  { %4465 = vmatmul.msk.f32.vlgmr.msrb.gmra.mxu3 %vm707_vm0, %v7239_v16 }
 0x8d5   :  { %v1427_v3 = vpop.f32.mrf.mxu3 }
 0x8d6   :  { %4466 = vmatmul.msk.f32.vlgmr.msrb.gmra.mxu0 %vm736_vm1, %v1427_v3 }
 0x953   :  { %v1453_v5 = vpop.f32.mrf.mxu0 }
 0x954   :  { %v7374_v6 = vadd.f32 %v1453_v5, %v1432_v4 }
 0x955   :  { %6099 = dma.done.wait [#allocation4], 32768 }
 0x956   :  { %6100 = vsyncadd [#allocation4], 4294934528 }
 0x957   :  { %6101 = dma.done.wait [#allocation4 + $0x1], 8192 }
 0x958   :  { %6102 = vsyncadd [#allocation4 + $0x1], 4294959104  ;;  %v4583_v7 = vld [vmem:[#allocation2 + $0xe0] sm:$0xf]  ;;  %v5793_v8 = vld [vmem:[#allocation2 + $0xec] sm:$0xf0] }
 0x959   :  { %v4711_v9 = vld [vmem:[#allocation2 + $0x1e0] sm:$0xf]  ;;  %v4584_v10 = vor.u32 %v5793_v8, %v4583_v7  ;;  %v5825_v11 = vld [vmem:[#allocation2 + $0x1ec] sm:$0xf0]  ;;  %v4010_v25 = vld [vmem:[%s7765_s8 + $0x2b0] sm:$0xff]  ;;  %vm4041_vm0 = vcmask 523264  }
 0x95a   :  { %v4839_v16 = vld [vmem:[#allocation2 + $0x2e0] sm:$0xf]  ;;  %v5857_v12 = vld [vmem:[#allocation2 + $0x2ec] sm:$0xf0]  ;;  %v4712_v13 = vor.u32 %v5825_v11, %v4711_v9  ;;  %v4009_v26 = vld [vmem:[%s7765_s8 + $0x2a0] sm:$0xff]  ;;  %vm4362_vm6 = vcmp.lt.s32.totalorder %v7168_v19, 36 }
 0x95b   :  { %v4840_v14 = vor.u32 %v5857_v12, %v4839_v16  ;;  %v4967_v17 = vld [vmem:[#allocation2 + $0x3e0] sm:$0xf]  ;;  %v5889_v18 = vld [vmem:[#allocation2 + $0x3ec] sm:$0xf0]  ;;  %3065 = vmatpush.bf16.msra.mxu1 %v4584_v10  ;;  %vm4400_vm11 = vcmp.eq.s32.totalorder %v7168_v19, 36  ;;  %vm4403_vm13 = vcmp.eq.s32.totalorder %v7168_v19, 37 }
 0x95c   :  { %v4567_v20 = vld [vmem:[#allocation2 + $0xc0] sm:$0xf]  ;;  %v4968_v22 = vor.u32 %v5889_v18, %v4967_v17  ;;  %v5789_v23 = vld [vmem:[#allocation2 + $0xcc] sm:$0xf0]  ;;  %3078 = vmatpush.bf16.msra.mxu3 %v4712_v13 }
 0x95d   :  { %v4695_v24 = vld [vmem:[#allocation2 + $0x1c0] sm:$0xf]  ;;  %v5821_v27 = vld [vmem:[#allocation2 + $0x1cc] sm:$0xf0]  ;;  %3091 = vmatpush.bf16.msra.mxu0 %v4840_v14  ;;  %v4568_v29 = vor.u32 %v5789_v23, %v4567_v20 }
 0x95e   :  { %v4696_v30 = vor.u32 %v5821_v27, %v4695_v24  ;;  %v4823_v33 = vld [vmem:[#allocation2 + $0x2c0] sm:$0xf]  ;;  %v5853_v34 = vld [vmem:[#allocation2 + $0x2cc] sm:$0xf0]  ;;  %3104 = vmatpush.bf16.msra.mxu2 %v4968_v22 }
 0x95f   :  { %v4951_v35 = vld [vmem:[#allocation2 + $0x3c0] sm:$0xf]  ;;  %v4824_v36 = vor.u32 %v5853_v34, %v4823_v33  ;;  %v5885_v38 = vld [vmem:[#allocation2 + $0x3cc] sm:$0xf0]  ;;  %3066 = vmatpush.bf16.msra.mxu1 %v4568_v29 }
 0x960   :  { %v4551_v40 = vld [vmem:[#allocation2 + $0xa0] sm:$0xf]  ;;  %v5785_v41 = vld [vmem:[#allocation2 + $0xac] sm:$0xf0]  ;;  %v4952_v42 = vor.u32 %v5885_v38, %v4951_v35  ;;  %3079 = vmatpush.bf16.msra.mxu3 %v4696_v30 }
 0x961   :  { %v4679_v43 = vld [vmem:[#allocation2 + $0x1a0] sm:$0xf]  ;;  %v5817_v44 = vld [vmem:[#allocation2 + $0x1ac] sm:$0xf0]  ;;  %v4552_v21 = vor.u32 %v5785_v41, %v4551_v40  ;;  %3092 = vmatpush.bf16.msra.mxu0 %v4824_v36 }
 0x962   :  { %v4807_v45 = vld [vmem:[#allocation2 + $0x2a0] sm:$0xf]  ;;  %v5849_v46 = vld [vmem:[#allocation2 + $0x2ac] sm:$0xf0]  ;;  %v4680_v31 = vor.u32 %v5817_v44, %v4679_v43  ;;  %3105 = vmatpush.bf16.msra.mxu2 %v4952_v42 }
 0x963   :  { %v4935_v15 = vld [vmem:[#allocation2 + $0x3a0] sm:$0xf]  ;;  %v5881_v47 = vld [vmem:[#allocation2 + $0x3ac] sm:$0xf0]  ;;  %v4808_v49 = vor.u32 %v5849_v46, %v4807_v45  ;;  %3067 = vmatpush.bf16.msra.mxu1 %v4552_v21 }
 0x964   :  { %v4535_v50 = vld [vmem:[#allocation2 + $0x80] sm:$0xf]  ;;  %v5781_v51 = vld [vmem:[#allocation2 + $0x8c] sm:$0xf0]  ;;  %v4936_v53 = vor.u32 %v5881_v47, %v4935_v15  ;;  %3080 = vmatpush.bf16.msra.mxu3 %v4680_v31 }
 0x965   :  { %v4663_v52 = vld [vmem:[#allocation2 + $0x180] sm:$0xf]  ;;  %v5813_v1 = vld [vmem:[#allocation2 + $0x18c] sm:$0xf0]  ;;  %v4536_v37 = vor.u32 %v5781_v51, %v4535_v50  ;;  %3093 = vmatpush.bf16.msra.mxu0 %v4808_v49 }
 0x966   :  { %v4791_v54 = vld [vmem:[#allocation2 + $0x280] sm:$0xf]  ;;  %v5845_v55 = vld [vmem:[#allocation2 + $0x28c] sm:$0xf0]  ;;  %v4664_v59 = vor.u32 %v5813_v1, %v4663_v52  ;;  %3106 = vmatpush.bf16.msra.mxu2 %v4936_v53 }
 0x967   :  { %v4919_v57 = vld [vmem:[#allocation2 + $0x380] sm:$0xf]  ;;  %v5877_v58 = vld [vmem:[#allocation2 + $0x38c] sm:$0xf0]  ;;  %v4792_v39 = vor.u32 %v5845_v55, %v4791_v54  ;;  %3068 = vmatpush.bf16.msra.mxu1 %v4536_v37 }
 0x968   :  { %v4519_v60 = vld [vmem:[#allocation2 + $0x60] sm:$0xf]  ;;  %v5777_v56 = vld [vmem:[#allocation2 + $0x6c] sm:$0xf0]  ;;  %v4920_v62 = vor.u32 %v5877_v58, %v4919_v57  ;;  %3081 = vmatpush.bf16.msra.mxu3 %v4664_v59 }
 0x969   :  { %v4647_v61 = vld [vmem:[#allocation2 + $0x160] sm:$0xf]  ;;  %v5809_v63 = vld [vmem:[#allocation2 + $0x16c] sm:$0xf0]  ;;  %v4520_v7 = vor.u32 %v5777_v56, %v4519_v60  ;;  %3094 = vmatpush.bf16.msra.mxu0 %v4792_v39 }
 0x96a   :  { %v4775_v0 = vld [vmem:[#allocation2 + $0x260] sm:$0xf]  ;;  %v5841_v3 = vld [vmem:[#allocation2 + $0x26c] sm:$0xf0]  ;;  %v4648_v8 = vor.u32 %v5809_v63, %v4647_v61  ;;  %3107 = vmatpush.bf16.msra.mxu2 %v4920_v62 }
 0x96b   :  { %v4903_v4 = vld [vmem:[#allocation2 + $0x360] sm:$0xf]  ;;  %v5873_v5 = vld [vmem:[#allocation2 + $0x36c] sm:$0xf0]  ;;  %v4776_v9 = vor.u32 %v5841_v3, %v4775_v0  ;;  %3069 = vmatpush.bf16.msra.mxu1 %v4520_v7 }
 0x96c   :  { %v4503_v10 = vld [vmem:[#allocation2 + $0x40] sm:$0xf]  ;;  %v5773_v11 = vld [vmem:[#allocation2 + $0x4c] sm:$0xf0]  ;;  %v4904_v12 = vor.u32 %v5873_v5, %v4903_v4  ;;  %3082 = vmatpush.bf16.msra.mxu3 %v4648_v8 }
 0x96d   :  { %v4631_v16 = vld [vmem:[#allocation2 + $0x140] sm:$0xf]  ;;  %v5805_v13 = vld [vmem:[#allocation2 + $0x14c] sm:$0xf0]  ;;  %v4504_v22 = vor.u32 %v5773_v11, %v4503_v10  ;;  %3095 = vmatpush.bf16.msra.mxu0 %v4776_v9 }
 0x96e   :  { %v4759_v14 = vld [vmem:[#allocation2 + $0x240] sm:$0xf]  ;;  %v5837_v17 = vld [vmem:[#allocation2 + $0x24c] sm:$0xf0]  ;;  %v4632_v23 = vor.u32 %v5805_v13, %v4631_v16  ;;  %3108 = vmatpush.bf16.msra.mxu2 %v4904_v12 }
 0x96f   :  { %v4887_v18 = vld [vmem:[#allocation2 + $0x340] sm:$0xf]  ;;  %v5869_v20 = vld [vmem:[#allocation2 + $0x34c] sm:$0xf0]  ;;  %v4760_v24 = vor.u32 %v5837_v17, %v4759_v14  ;;  %3070 = vmatpush.bf16.msra.mxu1 %v4504_v22 }
 0x970   :  { %v4487_v27 = vld [vmem:[#allocation2 + $0x20] sm:$0xf]  ;;  %v5769_v29 = vld [vmem:[#allocation2 + $0x2c] sm:$0xf0]  ;;  %v4888_v33 = vor.u32 %v5869_v20, %v4887_v18  ;;  %3083 = vmatpush.bf16.msra.mxu3 %v4632_v23  ;;  %v1487_v20 = vld [vmem:[%s7758_s1] sm:$0xff] }
 0x971   :  { %v4615_v30 = vld [vmem:[#allocation2 + $0x120] sm:$0xf]  ;;  %v5801_v34 = vld [vmem:[#allocation2 + $0x12c] sm:$0xf0]  ;;  %v4488_v41 = vor.u32 %v5769_v29, %v4487_v27  ;;  %3096 = vmatpush.bf16.msra.mxu0 %v4760_v24  ;;  %1491 = vst [vmem:[#allocation1] ss:$4 sm:$0xff] %v1487_v20 }
 0x972   :  { %v4743_v35 = vld [vmem:[#allocation2 + $0x220] sm:$0xf]  ;;  %v5833_v36 = vld [vmem:[#allocation2 + $0x22c] sm:$0xf0]  ;;  %v4616_v44 = vor.u32 %v5801_v34, %v4615_v30  ;;  %3109 = vmatpush.bf16.msra.mxu2 %v4888_v33 }
 0x973   :  { %v4871_v38 = vld [vmem:[#allocation2 + $0x320] sm:$0xf]  ;;  %v5865_v40 = vld [vmem:[#allocation2 + $0x32c] sm:$0xf0]  ;;  %v4744_v45 = vor.u32 %v5833_v36, %v4743_v35  ;;  %3071 = vmatpush.bf16.msra.mxu1 %v4488_v41 }
 0x974   :  { %v4471_v42 = vld [vmem:[#allocation2] sm:$0xf]  ;;  %v5765_v43 = vld [vmem:[#allocation2 + $0xc] sm:$0xf0]  ;;  %v4872_v47 = vor.u32 %v5865_v40, %v4871_v38  ;;  %3084 = vmatpush.bf16.msra.mxu3 %v4616_v44 }
 0x975   :  { %v4599_v21 = vld [vmem:[#allocation2 + $0x100] sm:$0xf]  ;;  %v5797_v46 = vld [vmem:[#allocation2 + $0x10c] sm:$0xf0]  ;;  %v4472_v1 = vor.u32 %v5765_v43, %v4471_v42  ;;  %3097 = vmatpush.bf16.msra.mxu0 %v4744_v45 }
 0x976   :  { %v4727_v15 = vld [vmem:[#allocation2 + $0x200] sm:$0xf]  ;;  %v5829_v31 = vld [vmem:[#allocation2 + $0x20c] sm:$0xf0]  ;;  %v4600_v58 = vor.u32 %v5797_v46, %v4599_v21  ;;  %3110 = vmatpush.bf16.msra.mxu2 %v4872_v47 }
 0x977   :  { %v4855_v49 = vld [vmem:[#allocation2 + $0x300] sm:$0xf]  ;;  %v5861_v50 = vld [vmem:[#allocation2 + $0x30c] sm:$0xf0]  ;;  %v4728_v37 = vor.u32 %v5829_v31, %v4727_v15  ;;  %3072 = vmatpush.bf16.msra.mxu1 %v4472_v1 }
 0x978   :  { %v5095_v51 = vld [vmem:[#allocation2 + $0x4e0] sm:$0xf]  ;;  %v5921_v52 = vld [vmem:[#allocation2 + $0x4ec] sm:$0xf0]  ;;  %v4856_v60 = vor.u32 %v5861_v50, %v4855_v49  ;;  %3085 = vmatpush.bf16.msra.mxu3 %v4600_v58 }
 0x979   :  { %v5223_v53 = vld [vmem:[#allocation2 + $0x5e0] sm:$0xf]  ;;  %v5953_v54 = vld [vmem:[#allocation2 + $0x5ec] sm:$0xf0]  ;;  %v5096_v56 = vor.u32 %v5921_v52, %v5095_v51  ;;  %3098 = vmatpush.bf16.msra.mxu0 %v4728_v37 }
 0x97a   :  { %v5351_v55 = vld [vmem:[#allocation2 + $0x6e0] sm:$0xf]  ;;  %v5985_v57 = vld [vmem:[#allocation2 + $0x6ec] sm:$0xf0]  ;;  %v5224_v61 = vor.u32 %v5953_v54, %v5223_v53  ;;  %3111 = vmatpush.bf16.msra.mxu2 %v4856_v60 }
 0x97b   :  { %v5479_v59 = vld [vmem:[#allocation2 + $0x7e0] sm:$0xf]  ;;  %v6017_v39 = vld [vmem:[#allocation2 + $0x7ec] sm:$0xf0]  ;;  %v5352_v62 = vor.u32 %v5985_v57, %v5351_v55  ;;  %3117 = vmatpush.bf16.msrb.mxu1 %v5096_v56 }
 0x97c   :  { %v5079_v63 = vld [vmem:[#allocation2 + $0x4c0] sm:$0xf]  ;;  %v5917_v0 = vld [vmem:[#allocation2 + $0x4cc] sm:$0xf0]  ;;  %v5480_v4 = vor.u32 %v6017_v39, %v5479_v59  ;;  %3130 = vmatpush.bf16.msrb.mxu3 %v5224_v61 }
 0x97d   :  { %v5207_v3 = vld [vmem:[#allocation2 + $0x5c0] sm:$0xf]  ;;  %v5949_v5 = vld [vmem:[#allocation2 + $0x5cc] sm:$0xf0]  ;;  %v5080_v11 = vor.u32 %v5917_v0, %v5079_v63  ;;  %3143 = vmatpush.bf16.msrb.mxu0 %v5352_v62 }
 0x97e   :  { %v5335_v7 = vld [vmem:[#allocation2 + $0x6c0] sm:$0xf]  ;;  %v5981_v8 = vld [vmem:[#allocation2 + $0x6cc] sm:$0xf0]  ;;  %v5208_v13 = vor.u32 %v5949_v5, %v5207_v3  ;;  %3156 = vmatpush.bf16.msrb.mxu2 %v5480_v4 }
 0x97f   :  { %v5463_v9 = vld [vmem:[#allocation2 + $0x7c0] sm:$0xf]  ;;  %v6013_v10 = vld [vmem:[#allocation2 + $0x7cc] sm:$0xf0]  ;;  %v5336_v14 = vor.u32 %v5981_v8, %v5335_v7  ;;  %3118 = vmatpush.bf16.msrb.mxu1 %v5080_v11 }
 0x980   :  { %v5063_v16 = vld [vmem:[#allocation2 + $0x4a0] sm:$0xf]  ;;  %v5913_v12 = vld [vmem:[#allocation2 + $0x4ac] sm:$0xf0]  ;;  %v5464_v22 = vor.u32 %v6013_v10, %v5463_v9  ;;  %3131 = vmatpush.bf16.msrb.mxu3 %v5208_v13 }
 0x981   :  { %v5191_v17 = vld [vmem:[#allocation2 + $0x5a0] sm:$0xf]  ;;  %v5945_v18 = vld [vmem:[#allocation2 + $0x5ac] sm:$0xf0]  ;;  %v5064_v30 = vor.u32 %v5913_v12, %v5063_v16  ;;  %3144 = vmatpush.bf16.msrb.mxu0 %v5336_v14 }
 0x982   :  { %v5319_v23 = vld [vmem:[#allocation2 + $0x6a0] sm:$0xf]  ;;  %v5977_v24 = vld [vmem:[#allocation2 + $0x6ac] sm:$0xf0]  ;;  %v5192_v34 = vor.u32 %v5945_v18, %v5191_v17  ;;  %3157 = vmatpush.bf16.msrb.mxu2 %v5464_v22 }
 0x983   :  { %v5447_v27 = vld [vmem:[#allocation2 + $0x7a0] sm:$0xf]  ;;  %v6009_v29 = vld [vmem:[#allocation2 + $0x7ac] sm:$0xf0]  ;;  %v5320_v35 = vor.u32 %v5977_v24, %v5319_v23  ;;  %3119 = vmatpush.bf16.msrb.mxu1 %v5064_v30 }
 0x984   :  { %v5047_v33 = vld [vmem:[#allocation2 + $0x480] sm:$0xf]  ;;  %v5909_v36 = vld [vmem:[#allocation2 + $0x48c] sm:$0xf0]  ;;  %v5448_v41 = vor.u32 %v6009_v29, %v5447_v27  ;;  %3132 = vmatpush.bf16.msrb.mxu3 %v5192_v34 }
 0x985   :  { %v5175_v38 = vld [vmem:[#allocation2 + $0x580] sm:$0xf]  ;;  %v5941_v40 = vld [vmem:[#allocation2 + $0x58c] sm:$0xf0]  ;;  %v5048_v15 = vor.u32 %v5909_v36, %v5047_v33  ;;  %3145 = vmatpush.bf16.msrb.mxu0 %v5320_v35 }
 0x986   :  { %v5303_v42 = vld [vmem:[#allocation2 + $0x680] sm:$0xf]  ;;  %v5973_v43 = vld [vmem:[#allocation2 + $0x68c] sm:$0xf0]  ;;  %v5176_v51 = vor.u32 %v5941_v40, %v5175_v38  ;;  %3158 = vmatpush.bf16.msrb.mxu2 %v5448_v41 }
 0x987   :  { %v5431_v44 = vld [vmem:[#allocation2 + $0x780] sm:$0xf]  ;;  %v6005_v45 = vld [vmem:[#allocation2 + $0x78c] sm:$0xf0]  ;;  %v5304_v52 = vor.u32 %v5973_v43, %v5303_v42  ;;  %3120 = vmatpush.bf16.msrb.mxu1 %v5048_v15  ;;  %v4585_v15 = vld [vmem:[#allocation2 + $0xf0] sm:$0xf0] }
 0x988   :  { %v5031_v21 = vld [vmem:[#allocation2 + $0x460] sm:$0xf]  ;;  %v5905_v46 = vld [vmem:[#allocation2 + $0x46c] sm:$0xf0]  ;;  %v5432_v54 = vor.u32 %v6005_v45, %v5431_v44  ;;  %3133 = vmatpush.bf16.msrb.mxu3 %v5176_v51  ;;  %v4841_v51 = vld [vmem:[#allocation2 + $0x2f0] sm:$0xf0] }
 0x989   :  { %v5159_v47 = vld [vmem:[#allocation2 + $0x560] sm:$0xf]  ;;  %v5937_v31 = vld [vmem:[#allocation2 + $0x56c] sm:$0xf0]  ;;  %v5032_v61 = vor.u32 %v5905_v46, %v5031_v21  ;;  %3146 = vmatpush.bf16.msrb.mxu0 %v5304_v52  ;;  %v5791_v46 = vld [vmem:[#allocation2 + $0xe4] sm:$0xf] }
 0x98a   :  { %v5287_v49 = vld [vmem:[#allocation2 + $0x660] sm:$0xf]  ;;  %v5969_v50 = vld [vmem:[#allocation2 + $0x66c] sm:$0xf0]  ;;  %v5160_v62 = vor.u32 %v5937_v31, %v5159_v47  ;;  %3159 = vmatpush.bf16.msrb.mxu2 %v5432_v54  ;;  %v5823_v47 = vld [vmem:[#allocation2 + $0x1e4] sm:$0xf] }
 0x98b   :  { %v1495_v53 = vld.sshfl [vmem:[#allocation1 + $0x8] sm:$0xff pattern:$0x73625140]  ;;  %v1494_v1 = vld.sshfl [vmem:[#allocation1] sm:$0xff pattern:$0x73625140]  ;;  %v5288_v63 = vor.u32 %v5969_v50, %v5287_v49  ;;  %3121 = vmatpush.bf16.msrb.mxu1 %v5032_v61  ;;  %v4588_v61 = vor.u32 %v5791_v46, %v4585_v15 }
 0x98c   :  { %v7379_v55 = vpack.c.bf16 %v1495_v53, %v1495_v53  ;;  %v7381_v57 = vpack.c.bf16 %v1494_v1, %v1494_v1  ;;  %v1497_v58 = vld.sshfl [vmem:[#allocation1 + $0x18] sm:$0xff pattern:$0x73625140]  ;;  %v1496_v37 = vld.sshfl [vmem:[#allocation1 + $0x10] sm:$0xff pattern:$0x73625140]  ;;  %3134 = vmatpush.bf16.msrb.mxu3 %v5160_v62 }
 0x98d   :  { %v5415_v59 = vld [vmem:[#allocation2 + $0x760] sm:$0xf]  ;;  %v6001_v39 = vld [vmem:[#allocation2 + $0x76c] sm:$0xf0]  ;;  %v7383_v60 = vpack.c.bf16 %v1497_v58, %v1497_v58  ;;  %v7385_v56 = vpack.c.bf16 %v1496_v37, %v1496_v37  ;;  %3147 = vmatpush.bf16.msrb.mxu0 %v5288_v63  ;;  %v4713_v31 = vld [vmem:[#allocation2 + $0x1f0] sm:$0xf0] }
 0x98e   :  { %3086 = vmatmul.bf16.vlgmr.msra.gmra.mxu3 %v7379_v55  ;;  %v5015_v0 = vld [vmem:[#allocation2 + $0x440] sm:$0xf]  ;;  %v5901_v3 = vld [vmem:[#allocation2 + $0x44c] sm:$0xf0]  ;;  %v5416_v5 = vor.u32 %v6001_v39, %v5415_v59  ;;  %3073 = vmatmul.bf16.vlgmr.msra.gmra.mxu1 %v7381_v57  ;;  %v5855_v49 = vld [vmem:[#allocation2 + $0x2e4] sm:$0xf] }
 0x98f   :  { %v5143_v4 = vld [vmem:[#allocation2 + $0x540] sm:$0xf]  ;;  %v5933_v7 = vld [vmem:[#allocation2 + $0x54c] sm:$0xf0]  ;;  %3112 = vmatmul.bf16.vlgmr.msra.gmra.mxu2 %v7383_v60  ;;  %3099 = vmatmul.bf16.vlgmr.msra.gmra.mxu0 %v7385_v56  ;;  %v5016_v16 = vor.u32 %v5901_v3, %v5015_v0  ;;  %v5887_v52 = vld [vmem:[#allocation2 + $0x3e4] sm:$0xf]  ;;  %v4716_v0 = vor.u32 %v5823_v47, %v4713_v31  ;;  %v4844_v3 = vor.u32 %v5855_v49, %v4841_v51 }
 0x990   :  { %v5271_v8 = vld [vmem:[#allocation2 + $0x640] sm:$0xf]  ;;  %v5965_v9 = vld [vmem:[#allocation2 + $0x64c] sm:$0xf0]  ;;  %v5144_v14 = vor.u32 %v5933_v7, %v5143_v4  ;;  %3160 = vmatpush.bf16.msrb.mxu2 %v5416_v5  ;;  %v4969_v53 = vld [vmem:[#allocation2 + $0x3f0] sm:$0xf0] }
 0x991   :  { %v5399_v10 = vld [vmem:[#allocation2 + $0x740] sm:$0xf]  ;;  %v5997_v11 = vld [vmem:[#allocation2 + $0x74c] sm:$0xf0]  ;;  %v5272_v17 = vor.u32 %v5965_v9, %v5271_v8  ;;  %3122 = vmatpush.bf16.msrb.mxu1 %v5016_v16  ;;  %v5787_v58 = vld [vmem:[#allocation2 + $0xc4] sm:$0xf]  ;;  %v4972_v7 = vor.u32 %v5887_v52, %v4969_v53 }
 0x992   :  { %v4999_v12 = vld [vmem:[#allocation2 + $0x420] sm:$0xf]  ;;  %v5897_v13 = vld [vmem:[#allocation2 + $0x42c] sm:$0xf0]  ;;  %v5400_v23 = vor.u32 %v5997_v11, %v5399_v10  ;;  %3135 = vmatpush.bf16.msrb.mxu3 %v5144_v14  ;;  %v4569_v37 = vld [vmem:[#allocation2 + $0xd0] sm:$0xf0] }
 0x993   :  { %v5127_v18 = vld [vmem:[#allocation2 + $0x520] sm:$0xf]  ;;  %v5929_v20 = vld [vmem:[#allocation2 + $0x52c] sm:$0xf0]  ;;  %v5000_v34 = vor.u32 %v5897_v13, %v4999_v12  ;;  %3148 = vmatpush.bf16.msrb.mxu0 %v5272_v17  ;;  %v5819_v4 = vld [vmem:[#allocation2 + $0x1c4] sm:$0xf]  ;;  %v4572_v17 = vor.u32 %v5787_v58, %v4569_v37 }
 0x994   :  { %v1488_v22 = vld [vmem:[%s7758_s1 + $0x8] sm:$0xff]  ;;  %v5961_v27 = vld [vmem:[#allocation2 + $0x62c] sm:$0xf0]  ;;  %v5128_v40 = vor.u32 %v5929_v20, %v5127_v18  ;;  %3161 = vmatpush.bf16.msrb.mxu2 %v5400_v23  ;;  %v4697_v8 = vld [vmem:[#allocation2 + $0x1d0] sm:$0xf0] }
 0x995   :  { %v5255_v24 = vld [vmem:[#allocation2 + $0x620] sm:$0xf]  ;;  %1493 = vst [vmem:[#allocation1 + $0x20] ss:$4 sm:$0xff] %v1488_v22  ;;  %v5993_v30 = vld [vmem:[#allocation2 + $0x72c] sm:$0xf0]  ;;  %3123 = vmatpush.bf16.msrb.mxu1 %v5000_v34  ;;  %v4700_v20 = vor.u32 %v5819_v4, %v4697_v8 }
 0x996   :  { %v5383_v29 = vld [vmem:[#allocation2 + $0x720] sm:$0xf]  ;;  %v5893_v35 = vld [vmem:[#allocation2 + $0x40c] sm:$0xf0]  ;;  %v5256_v41 = vor.u32 %v5961_v27, %v5255_v24  ;;  %3136 = vmatpush.bf16.msrb.mxu3 %v5128_v40  ;;  %v5851_v9 = vld [vmem:[#allocation2 + $0x2c4] sm:$0xf] }
 0x997   :  { %v4983_v33 = vld [vmem:[#allocation2 + $0x400] sm:$0xf]  ;;  %v5925_v38 = vld [vmem:[#allocation2 + $0x50c] sm:$0xf0]  ;;  %v5384_v45 = vor.u32 %v5993_v30, %v5383_v29  ;;  %v4825_v10 = vld [vmem:[#allocation2 + $0x2d0] sm:$0xf0] }
 0x998   :  { %v5111_v36 = vld [vmem:[#allocation2 + $0x500] sm:$0xf]  ;;  %v5957_v43 = vld [vmem:[#allocation2 + $0x60c] sm:$0xf0]  ;;  %v4984_v50 = vor.u32 %v5893_v35, %v4983_v33  ;;  %3149 = vmatpush.bf16.msrb.mxu0 %v5256_v41  ;;  %v5883_v16 = vld [vmem:[#allocation2 + $0x3c4] sm:$0xf]  ;;  %v4828_v22 = vor.u32 %v5851_v9, %v4825_v10 }
 0x999   :  { %v5239_v42 = vld [vmem:[#allocation2 + $0x600] sm:$0xf]  ;;  %v5989_v21 = vld [vmem:[#allocation2 + $0x70c] sm:$0xf0]  ;;  %v5112_v1 = vor.u32 %v5925_v38, %v5111_v36  ;;  %3162 = vmatpush.bf16.msrb.mxu2 %v5384_v45  ;;  %v4953_v12 = vld [vmem:[#allocation2 + $0x3d0] sm:$0xf0] }
 0x99a   :  { %v5367_v44 = vld [vmem:[#allocation2 + $0x700] sm:$0xf]  ;;  %v5240_v54 = vor.u32 %v5957_v43, %v5239_v42  ;;  %3124 = vmatpush.bf16.msrb.mxu1 %v4984_v50  ;;  %v5783_v23 = vld [vmem:[#allocation2 + $0xa4] sm:$0xf]  ;;  %v4553_v24 = vld [vmem:[#allocation2 + $0xb0] sm:$0xf0]  ;;  %v4956_v29 = vor.u32 %v5883_v16, %v4953_v12 }
 0x99b   :  { %v5368_v39 = vor.u32 %v5989_v21, %v5367_v44  ;;  %3137 = vmatpush.bf16.msrb.mxu3 %v5112_v1  ;;  %v5815_v27 = vld [vmem:[#allocation2 + $0x1a4] sm:$0xf]  ;;  %v4681_v30 = vld [vmem:[#allocation2 + $0x1b0] sm:$0xf0]  ;;  %v4556_v38 = vor.u32 %v5783_v23, %v4553_v24 }
 0x99c   :  { %v1499_v59 = vld.sshfl [vmem:[#allocation1 + $0x28] sm:$0xff pattern:$0x73625140]  ;;  %v1498_v62 = vld.sshfl [vmem:[#allocation1 + $0x20] sm:$0xff pattern:$0x73625140]  ;;  %3150 = vmatpush.bf16.msrb.mxu0 %v5240_v54  ;;  %v4684_v40 = vor.u32 %v5815_v27, %v4681_v30 }
 0x99d   :  { %v1501_v63 = vld.sshfl [vmem:[#allocation1 + $0x38] sm:$0xff pattern:$0x73625140]  ;;  %v1500_v5 = vld.sshfl [vmem:[#allocation1 + $0x30] sm:$0xff pattern:$0x73625140]  ;;  %v7394_v11 = vpack.c.bf16 %v1499_v59, %v1499_v59  ;;  %v7396_v13 = vpack.c.bf16 %v1498_v62, %v1498_v62  ;;  %3163 = vmatpush.bf16.msrb.mxu2 %v5368_v39 }
 0x99e   :  { %v7398_v14 = vpack.c.bf16 %v1501_v63, %v1501_v63  ;;  %3169 = vmatpush.bf16.msra.mxu1 %v4588_v61  ;;  %v7400_v18 = vpack.c.bf16 %v1500_v5, %v1500_v5  ;;  %v5847_v33 = vld [vmem:[#allocation2 + $0x2a4] sm:$0xf]  ;;  %v4809_v34 = vld [vmem:[#allocation2 + $0x2b0] sm:$0xf0] }
 0x99f   :  { %3182 = vmatpush.bf16.msra.mxu3 %v4716_v0  ;;  %v5879_v35 = vld [vmem:[#allocation2 + $0x3a4] sm:$0xf]  ;;  %v4937_v36 = vld [vmem:[#allocation2 + $0x3b0] sm:$0xf0]  ;;  %3125 = vmatmul.bf16.vlgmr.msrb.gmra.mxu1 %v7396_v13  ;;  %v4812_v41 = vor.u32 %v5847_v33, %v4809_v34 }
 0x9a0   :  { %3195 = vmatpush.bf16.msra.mxu0 %v4844_v3  ;;  %3138 = vmatmul.bf16.vlgmr.msrb.gmra.mxu3 %v7394_v11  ;;  %v5779_v42 = vld [vmem:[#allocation2 + $0x84] sm:$0xf]  ;;  %v4537_v43 = vld [vmem:[#allocation2 + $0x90] sm:$0xf0]  ;;  %v4940_v45 = vor.u32 %v5879_v35, %v4937_v36 }
 0x9a1   :  { %3208 = vmatpush.bf16.msra.mxu2 %v4972_v7  ;;  %3151 = vmatmul.bf16.vlgmr.msrb.gmra.mxu0 %v7400_v18  ;;  %v5811_v44 = vld [vmem:[#allocation2 + $0x184] sm:$0xf]  ;;  %v4665_v21 = vld [vmem:[#allocation2 + $0x190] sm:$0xf0]  ;;  %v4540_v49 = vor.u32 %v5779_v42, %v4537_v43 }
 0x9a2   :  { %3164 = vmatmul.bf16.vlgmr.msrb.gmra.mxu2 %v7398_v14  ;;  %3170 = vmatpush.bf16.msra.mxu1 %v4572_v17  ;;  %v5843_v46 = vld [vmem:[#allocation2 + $0x284] sm:$0xf]  ;;  %v4793_v15 = vld [vmem:[#allocation2 + $0x290] sm:$0xf0]  ;;  %v4668_v50 = vor.u32 %v5811_v44, %v4665_v21 }
 0x9a3   :  { %3183 = vmatpush.bf16.msra.mxu3 %v4700_v20  ;;  %v5875_v47 = vld [vmem:[#allocation2 + $0x384] sm:$0xf]  ;;  %v4921_v31 = vld [vmem:[#allocation2 + $0x390] sm:$0xf0]  ;;  %v4796_v51 = vor.u32 %v5843_v46, %v4793_v15 }
 0x9a4   :  { %3196 = vmatpush.bf16.msra.mxu0 %v4828_v22  ;;  %v5775_v52 = vld [vmem:[#allocation2 + $0x64] sm:$0xf]  ;;  %v4521_v53 = vld [vmem:[#allocation2 + $0x70] sm:$0xf0]  ;;  %v4924_v54 = vor.u32 %v5875_v47, %v4921_v31 }
 0x9a5   :  { %3209 = vmatpush.bf16.msra.mxu2 %v4956_v29  ;;  %v5807_v1 = vld [vmem:[#allocation2 + $0x164] sm:$0xf]  ;;  %v4649_v58 = vld [vmem:[#allocation2 + $0x170] sm:$0xf0]  ;;  %v4524_v62 = vor.u32 %v5775_v52, %v4521_v53 }
 0x9a6   :  { %3171 = vmatpush.bf16.msra.mxu1 %v4556_v38  ;;  %v5839_v37 = vld [vmem:[#allocation2 + $0x264] sm:$0xf]  ;;  %v4777_v59 = vld [vmem:[#allocation2 + $0x270] sm:$0xf0]  ;;  %v4652_v63 = vor.u32 %v5807_v1, %v4649_v58 }
 0x9a7   :  { %3184 = vmatpush.bf16.msra.mxu3 %v4684_v40  ;;  %v5871_v39 = vld [vmem:[#allocation2 + $0x364] sm:$0xf]  ;;  %v4905_v61 = vld [vmem:[#allocation2 + $0x370] sm:$0xf0]  ;;  %v4780_v0 = vor.u32 %v5839_v37, %v4777_v59 }
 0x9a8   :  { %3197 = vmatpush.bf16.msra.mxu0 %v4812_v41  ;;  %v5771_v3 = vld [vmem:[#allocation2 + $0x44] sm:$0xf]  ;;  %v4505_v4 = vld [vmem:[#allocation2 + $0x50] sm:$0xf0]  ;;  %v4908_v7 = vor.u32 %v5871_v39, %v4905_v61 }
 0x9a9   :  { %3210 = vmatpush.bf16.msra.mxu2 %v4940_v45  ;;  %v5803_v5 = vld [vmem:[#allocation2 + $0x144] sm:$0xf]  ;;  %v4633_v8 = vld [vmem:[#allocation2 + $0x150] sm:$0xf0]  ;;  %v4508_v17 = vor.u32 %v5771_v3, %v4505_v4 }
 0x9aa   :  { %3172 = vmatpush.bf16.msra.mxu1 %v4540_v49  ;;  %v5835_v9 = vld [vmem:[#allocation2 + $0x244] sm:$0xf]  ;;  %v4761_v10 = vld [vmem:[#allocation2 + $0x250] sm:$0xf0]  ;;  %v4636_v20 = vor.u32 %v5803_v5, %v4633_v8 }
 0x9ab   :  { %3185 = vmatpush.bf16.msra.mxu3 %v4668_v50  ;;  %v5867_v16 = vld [vmem:[#allocation2 + $0x344] sm:$0xf]  ;;  %v4889_v12 = vld [vmem:[#allocation2 + $0x350] sm:$0xf0]  ;;  %v4764_v22 = vor.u32 %v5835_v9, %v4761_v10 }
 0x9ac   :  { %3198 = vmatpush.bf16.msra.mxu0 %v4796_v51  ;;  %v5767_v23 = vld [vmem:[#allocation2 + $0x24] sm:$0xf]  ;;  %v4489_v24 = vld [vmem:[#allocation2 + $0x30] sm:$0xf0]  ;;  %v4892_v29 = vor.u32 %v5867_v16, %v4889_v12 }
 0x9ad   :  { %3211 = vmatpush.bf16.msra.mxu2 %v4924_v54  ;;  %v5799_v27 = vld [vmem:[#allocation2 + $0x124] sm:$0xf]  ;;  %v4617_v30 = vld [vmem:[#allocation2 + $0x130] sm:$0xf0]  ;;  %v4492_v38 = vor.u32 %v5767_v23, %v4489_v24 }
 0x9ae   :  { %3173 = vmatpush.bf16.msra.mxu1 %v4524_v62  ;;  %v5831_v33 = vld [vmem:[#allocation2 + $0x224] sm:$0xf]  ;;  %v4745_v34 = vld [vmem:[#allocation2 + $0x230] sm:$0xf0]  ;;  %v4620_v42 = vor.u32 %v5799_v27, %v4617_v30 }
 0x9af   :  { %3186 = vmatpush.bf16.msra.mxu3 %v4652_v63  ;;  %v5863_v35 = vld [vmem:[#allocation2 + $0x324] sm:$0xf]  ;;  %v4873_v36 = vld [vmem:[#allocation2 + $0x330] sm:$0xf0]  ;;  %v4748_v43 = vor.u32 %v5831_v33, %v4745_v34 }
 0x9b0   :  { %3199 = vmatpush.bf16.msra.mxu0 %v4780_v0  ;;  %v5763_v40 = vld [vmem:[#allocation2 + $0x4] sm:$0xf]  ;;  %v4473_v41 = vld [vmem:[#allocation2 + $0x10] sm:$0xf0]  ;;  %v4876_v46 = vor.u32 %v5863_v35, %v4873_v36 }
 0x9b1   :  { %3212 = vmatpush.bf16.msra.mxu2 %v4908_v7  ;;  %v5795_v44 = vld [vmem:[#allocation2 + $0x104] sm:$0xf]  ;;  %v4601_v45 = vld [vmem:[#allocation2 + $0x110] sm:$0xf0]  ;;  %v4476_v52 = vor.u32 %v5763_v40, %v4473_v41 }
 0x9b2   :  { %3174 = vmatpush.bf16.msra.mxu1 %v4508_v17  ;;  %v5827_v21 = vld [vmem:[#allocation2 + $0x204] sm:$0xf]  ;;  %v4729_v15 = vld [vmem:[#allocation2 + $0x210] sm:$0xf0]  ;;  %v4604_v58 = vor.u32 %v5795_v44, %v4601_v45 }
 0x9b3   :  { %3187 = vmatpush.bf16.msra.mxu3 %v4636_v20  ;;  %v5859_v47 = vld [vmem:[#allocation2 + $0x304] sm:$0xf]  ;;  %v4857_v31 = vld [vmem:[#allocation2 + $0x310] sm:$0xf0]  ;;  %v4732_v37 = vor.u32 %v5827_v21, %v4729_v15 }
 0x9b4   :  { %3200 = vmatpush.bf16.msra.mxu0 %v4764_v22  ;;  %v5919_v49 = vld [vmem:[#allocation2 + $0x4e4] sm:$0xf]  ;;  %v5097_v50 = vld [vmem:[#allocation2 + $0x4f0] sm:$0xf0]  ;;  %v4860_v61 = vor.u32 %v5859_v47, %v4857_v31 }
 0x9b5   :  { %3213 = vmatpush.bf16.msra.mxu2 %v4892_v29  ;;  %v5951_v51 = vld [vmem:[#allocation2 + $0x5e4] sm:$0xf]  ;;  %v5225_v53 = vld [vmem:[#allocation2 + $0x5f0] sm:$0xf0]  ;;  %v5100_v62 = vor.u32 %v5919_v49, %v5097_v50 }
 0x9b6   :  { %3175 = vmatpush.bf16.msra.mxu1 %v4492_v38  ;;  %v5983_v1 = vld [vmem:[#allocation2 + $0x6e4] sm:$0xf]  ;;  %v5353_v54 = vld [vmem:[#allocation2 + $0x6f0] sm:$0xf0]  ;;  %v5228_v63 = vor.u32 %v5951_v51, %v5225_v53 }
 0x9b7   :  { %3188 = vmatpush.bf16.msra.mxu3 %v4620_v42  ;;  %v6015_v59 = vld [vmem:[#allocation2 + $0x7e4] sm:$0xf]  ;;  %v5481_v39 = vld [vmem:[#allocation2 + $0x7f0] sm:$0xf0]  ;;  %v5356_v0 = vor.u32 %v5983_v1, %v5353_v54 }
 0x9b8   :  { %3201 = vmatpush.bf16.msra.mxu0 %v4748_v43  ;;  %v5915_v3 = vld [vmem:[#allocation2 + $0x4c4] sm:$0xf]  ;;  %v5081_v4 = vld [vmem:[#allocation2 + $0x4d0] sm:$0xf0]  ;;  %v5484_v7 = vor.u32 %v6015_v59, %v5481_v39 }
 0x9b9   :  { %3214 = vmatpush.bf16.msra.mxu2 %v4876_v46  ;;  %v5947_v5 = vld [vmem:[#allocation2 + $0x5c4] sm:$0xf]  ;;  %v5209_v8 = vld [vmem:[#allocation2 + $0x5d0] sm:$0xf0]  ;;  %v5084_v17 = vor.u32 %v5915_v3, %v5081_v4 }
 0x9ba   :  { %3176 = vmatpush.bf16.msra.mxu1 %v4476_v52  ;;  %v5979_v9 = vld [vmem:[#allocation2 + $0x6c4] sm:$0xf]  ;;  %v5337_v10 = vld [vmem:[#allocation2 + $0x6d0] sm:$0xf0]  ;;  %v5212_v20 = vor.u32 %v5947_v5, %v5209_v8 }
 0x9bb   :  { %3189 = vmatpush.bf16.msra.mxu3 %v4604_v58  ;;  %v6011_v16 = vld [vmem:[#allocation2 + $0x7c4] sm:$0xf]  ;;  %v5465_v12 = vld [vmem:[#allocation2 + $0x7d0] sm:$0xf0]  ;;  %v5340_v22 = vor.u32 %v5979_v9, %v5337_v10 }
 0x9bc   :  { %3202 = vmatpush.bf16.msra.mxu0 %v4732_v37  ;;  %v5911_v23 = vld [vmem:[#allocation2 + $0x4a4] sm:$0xf]  ;;  %v5065_v24 = vld [vmem:[#allocation2 + $0x4b0] sm:$0xf0]  ;;  %v5468_v29 = vor.u32 %v6011_v16, %v5465_v12 }
 0x9bd   :  { %3215 = vmatpush.bf16.msra.mxu2 %v4860_v61  ;;  %v5943_v27 = vld [vmem:[#allocation2 + $0x5a4] sm:$0xf]  ;;  %v5193_v30 = vld [vmem:[#allocation2 + $0x5b0] sm:$0xf0]  ;;  %3177 = vmatmul.bf16.vlgmr.msra.gmra.mxu1 %v7381_v57  ;;  %v5068_v38 = vor.u32 %v5911_v23, %v5065_v24 }
 0x9be   :  { %3221 = vmatpush.bf16.msrb.mxu1 %v5100_v62  ;;  %v5975_v33 = vld [vmem:[#allocation2 + $0x6a4] sm:$0xf]  ;;  %v5321_v34 = vld [vmem:[#allocation2 + $0x6b0] sm:$0xf0]  ;;  %3190 = vmatmul.bf16.vlgmr.msra.gmra.mxu3 %v7379_v55  ;;  %v5196_v40 = vor.u32 %v5943_v27, %v5193_v30 }
 0x9bf   :  { %3234 = vmatpush.bf16.msrb.mxu3 %v5228_v63  ;;  %v6007_v35 = vld [vmem:[#allocation2 + $0x7a4] sm:$0xf]  ;;  %v5449_v36 = vld [vmem:[#allocation2 + $0x7b0] sm:$0xf0]  ;;  %3203 = vmatmul.bf16.vlgmr.msra.gmra.mxu0 %v7385_v56  ;;  %v5324_v41 = vor.u32 %v5975_v33, %v5321_v34 }
 0x9c0   :  { %3247 = vmatpush.bf16.msrb.mxu0 %v5356_v0  ;;  %3216 = vmatmul.bf16.vlgmr.msra.gmra.mxu2 %v7383_v60  ;;  %v5907_v42 = vld [vmem:[#allocation2 + $0x484] sm:$0xf]  ;;  %v5049_v43 = vld [vmem:[#allocation2 + $0x490] sm:$0xf0]  ;;  %v5452_v45 = vor.u32 %v6007_v35, %v5449_v36 }
 0x9c1   :  { %3260 = vmatpush.bf16.msrb.mxu2 %v5484_v7  ;;  %v5939_v44 = vld [vmem:[#allocation2 + $0x584] sm:$0xf]  ;;  %v5177_v21 = vld [vmem:[#allocation2 + $0x590] sm:$0xf0]  ;;  %v5052_v49 = vor.u32 %v5907_v42, %v5049_v43 }
 0x9c2   :  { %3222 = vmatpush.bf16.msrb.mxu1 %v5084_v17  ;;  %v5971_v46 = vld [vmem:[#allocation2 + $0x684] sm:$0xf]  ;;  %v5305_v15 = vld [vmem:[#allocation2 + $0x690] sm:$0xf0]  ;;  %v5180_v50 = vor.u32 %v5939_v44, %v5177_v21 }
 0x9c3   :  { %3235 = vmatpush.bf16.msrb.mxu3 %v5212_v20  ;;  %v6003_v47 = vld [vmem:[#allocation2 + $0x784] sm:$0xf]  ;;  %v5433_v31 = vld [vmem:[#allocation2 + $0x790] sm:$0xf0]  ;;  %v5308_v51 = vor.u32 %v5971_v46, %v5305_v15 }
 0x9c4   :  { %3248 = vmatpush.bf16.msrb.mxu0 %v5340_v22  ;;  %v5903_v52 = vld [vmem:[#allocation2 + $0x464] sm:$0xf]  ;;  %v5033_v53 = vld [vmem:[#allocation2 + $0x470] sm:$0xf0]  ;;  %v5436_v54 = vor.u32 %v6003_v47, %v5433_v31 }
 0x9c5   :  { %3261 = vmatpush.bf16.msrb.mxu2 %v5468_v29  ;;  %v5935_v1 = vld [vmem:[#allocation2 + $0x564] sm:$0xf]  ;;  %v5161_v58 = vld [vmem:[#allocation2 + $0x570] sm:$0xf0]  ;;  %v5036_v62 = vor.u32 %v5903_v52, %v5033_v53  ;;  %v5826_v53 = vld [vmem:[#allocation2 + $0x1f4] sm:$0xf0] }
 0x9c6   :  { %3223 = vmatpush.bf16.msrb.mxu1 %v5068_v38  ;;  %v5967_v37 = vld [vmem:[#allocation2 + $0x664] sm:$0xf]  ;;  %v5289_v59 = vld [vmem:[#allocation2 + $0x670] sm:$0xf0]  ;;  %v5164_v63 = vor.u32 %v5935_v1, %v5161_v58  ;;  %v4847_v1 = vld [vmem:[#allocation2 + $0x2e8] sm:$0xf] }
 0x9c7   :  { %3236 = vmatpush.bf16.msrb.mxu3 %v5196_v40  ;;  %v5999_v39 = vld [vmem:[#allocation2 + $0x764] sm:$0xf]  ;;  %v5417_v61 = vld [vmem:[#allocation2 + $0x770] sm:$0xf0]  ;;  %v5292_v0 = vor.u32 %v5967_v37, %v5289_v59  ;;  %v4975_v59 = vld [vmem:[#allocation2 + $0x3e8] sm:$0xf] }
 0x9c8   :  { %3249 = vmatpush.bf16.msrb.mxu0 %v5324_v41  ;;  %v5899_v3 = vld [vmem:[#allocation2 + $0x444] sm:$0xf]  ;;  %v5017_v4 = vld [vmem:[#allocation2 + $0x450] sm:$0xf0]  ;;  %v5420_v7 = vor.u32 %v5999_v39, %v5417_v61  ;;  %v5890_v39 = vld [vmem:[#allocation2 + $0x3f4] sm:$0xf0] }
 0x9c9   :  { %3262 = vmatpush.bf16.msrb.mxu2 %v5452_v45  ;;  %v5931_v5 = vld [vmem:[#allocation2 + $0x544] sm:$0xf]  ;;  %v5145_v8 = vld [vmem:[#allocation2 + $0x550] sm:$0xf0]  ;;  %v5020_v17 = vor.u32 %v5899_v3, %v5017_v4  ;;  %v4575_v3 = vld [vmem:[#allocation2 + $0xc8] sm:$0xf] }
 0x9ca   :  { %3224 = vmatpush.bf16.msrb.mxu1 %v5052_v49  ;;  %v5963_v9 = vld [vmem:[#allocation2 + $0x644] sm:$0xf]  ;;  %v5273_v10 = vld [vmem:[#allocation2 + $0x650] sm:$0xf0]  ;;  %v5148_v20 = vor.u32 %v5931_v5, %v5145_v8  ;;  %v4591_v49 = vld [vmem:[#allocation2 + $0xe8] sm:$0xf] }
 0x9cb   :  { %3237 = vmatpush.bf16.msrb.mxu3 %v5180_v50  ;;  %v5995_v16 = vld [vmem:[#allocation2 + $0x744] sm:$0xf]  ;;  %v5401_v12 = vld [vmem:[#allocation2 + $0x750] sm:$0xf0]  ;;  %v5276_v22 = vor.u32 %v5963_v9, %v5273_v10  ;;  %v5794_v50 = vld [vmem:[#allocation2 + $0xf4] sm:$0xf0] }
 0x9cc   :  { %3250 = vmatpush.bf16.msrb.mxu0 %v5308_v51  ;;  %v5895_v23 = vld [vmem:[#allocation2 + $0x424] sm:$0xf]  ;;  %v5001_v24 = vld [vmem:[#allocation2 + $0x430] sm:$0xf0]  ;;  %v5404_v29 = vor.u32 %v5995_v16, %v5401_v12  ;;  %v4719_v51 = vld [vmem:[#allocation2 + $0x1e8] sm:$0xf] }
 0x9cd   :  { %3263 = vmatpush.bf16.msrb.mxu2 %v5436_v54  ;;  %v5927_v27 = vld [vmem:[#allocation2 + $0x524] sm:$0xf]  ;;  %v5129_v30 = vld [vmem:[#allocation2 + $0x530] sm:$0xf0]  ;;  %v5004_v38 = vor.u32 %v5895_v23, %v5001_v24  ;;  %v5858_v54 = vld [vmem:[#allocation2 + $0x2f4] sm:$0xf0] }
 0x9ce   :  { %3225 = vmatpush.bf16.msrb.mxu1 %v5036_v62  ;;  %v5959_v33 = vld [vmem:[#allocation2 + $0x624] sm:$0xf]  ;;  %v5257_v34 = vld [vmem:[#allocation2 + $0x630] sm:$0xf0]  ;;  %v5132_v42 = vor.u32 %v5927_v27, %v5129_v30  ;;  %v4592_v62 = vor.u32 %v5794_v50, %v4591_v49  ;;  %v5790_v4 = vld [vmem:[#allocation2 + $0xd4] sm:$0xf0] }
 0x9cf   :  { %3238 = vmatpush.bf16.msrb.mxu3 %v5164_v63  ;;  %v5991_v35 = vld [vmem:[#allocation2 + $0x724] sm:$0xf]  ;;  %v5385_v36 = vld [vmem:[#allocation2 + $0x730] sm:$0xf0]  ;;  %v5260_v43 = vor.u32 %v5959_v33, %v5257_v34  ;;  %v4720_v63 = vor.u32 %v5826_v53, %v4719_v51  ;;  %v4703_v5 = vld [vmem:[#allocation2 + $0x1c8] sm:$0xf] }
 0x9d0   :  { %3251 = vmatpush.bf16.msrb.mxu0 %v5292_v0  ;;  %v5891_v40 = vld [vmem:[#allocation2 + $0x404] sm:$0xf]  ;;  %v4985_v41 = vld [vmem:[#allocation2 + $0x410] sm:$0xf0]  ;;  %v5388_v46 = vor.u32 %v5991_v35, %v5385_v36  ;;  %v4848_v0 = vor.u32 %v5858_v54, %v4847_v1  ;;  %v5822_v8 = vld [vmem:[#allocation2 + $0x1d4] sm:$0xf0] }
 0x9d1   :  { %3264 = vmatpush.bf16.msrb.mxu2 %v5420_v7  ;;  %v5923_v44 = vld [vmem:[#allocation2 + $0x504] sm:$0xf]  ;;  %v5113_v45 = vld [vmem:[#allocation2 + $0x510] sm:$0xf0]  ;;  %v4988_v52 = vor.u32 %v5891_v40, %v4985_v41  ;;  %v4976_v7 = vor.u32 %v5890_v39, %v4975_v59  ;;  %v4831_v9 = vld [vmem:[#allocation2 + $0x2c8] sm:$0xf] }
 0x9d2   :  { %3226 = vmatpush.bf16.msrb.mxu1 %v5020_v17  ;;  %v5955_v21 = vld [vmem:[#allocation2 + $0x604] sm:$0xf]  ;;  %v5241_v15 = vld [vmem:[#allocation2 + $0x610] sm:$0xf0]  ;;  %v5116_v58 = vor.u32 %v5923_v44, %v5113_v45  ;;  %v5854_v10 = vld [vmem:[#allocation2 + $0x2d4] sm:$0xf0]  ;;  %v4576_v17 = vor.u32 %v5790_v4, %v4575_v3 }
 0x9d3   :  { %3239 = vmatpush.bf16.msrb.mxu3 %v5148_v20  ;;  %v5987_v47 = vld [vmem:[#allocation2 + $0x704] sm:$0xf]  ;;  %v5369_v31 = vld [vmem:[#allocation2 + $0x710] sm:$0xf0]  ;;  %v5244_v37 = vor.u32 %v5955_v21, %v5241_v15  ;;  %v4959_v16 = vld [vmem:[#allocation2 + $0x3c8] sm:$0xf]  ;;  %v4704_v20 = vor.u32 %v5822_v8, %v4703_v5 }
 0x9d4   :  { %3252 = vmatpush.bf16.msrb.mxu0 %v5276_v22  ;;  %v5372_v61 = vor.u32 %v5987_v47, %v5369_v31  ;;  %v5886_v12 = vld [vmem:[#allocation2 + $0x3d4] sm:$0xf0]  ;;  %v4832_v22 = vor.u32 %v5854_v10, %v4831_v9  ;;  %v4559_v23 = vld [vmem:[#allocation2 + $0xa8] sm:$0xf] }
 0x9d5   :  { %3265 = vmatpush.bf16.msrb.mxu2 %v5404_v29  ;;  %v5786_v24 = vld [vmem:[#allocation2 + $0xb4] sm:$0xf0]  ;;  %v4687_v27 = vld [vmem:[#allocation2 + $0x1a8] sm:$0xf]  ;;  %v4960_v29 = vor.u32 %v5886_v12, %v4959_v16 }
 0x9d6   :  { %3227 = vmatpush.bf16.msrb.mxu1 %v5004_v38  ;;  %v5818_v30 = vld [vmem:[#allocation2 + $0x1b4] sm:$0xf0]  ;;  %v4815_v33 = vld [vmem:[#allocation2 + $0x2a8] sm:$0xf]  ;;  %v4560_v38 = vor.u32 %v5786_v24, %v4559_v23 }
 0x9d7   :  { %3240 = vmatpush.bf16.msrb.mxu3 %v5132_v42  ;;  %v5850_v34 = vld [vmem:[#allocation2 + $0x2b4] sm:$0xf0]  ;;  %v4943_v35 = vld [vmem:[#allocation2 + $0x3a8] sm:$0xf]  ;;  %v4688_v40 = vor.u32 %v5818_v30, %v4687_v27 }
 0x9d8   :  { %3253 = vmatpush.bf16.msrb.mxu0 %v5260_v43  ;;  %v5882_v36 = vld [vmem:[#allocation2 + $0x3b4] sm:$0xf0]  ;;  %v4816_v41 = vor.u32 %v5850_v34, %v4815_v33  ;;  %v4543_v42 = vld [vmem:[#allocation2 + $0x88] sm:$0xf] }
 0x9d9   :  { %3266 = vmatpush.bf16.msrb.mxu2 %v5388_v46  ;;  %v5782_v43 = vld [vmem:[#allocation2 + $0x94] sm:$0xf0]  ;;  %v4671_v44 = vld [vmem:[#allocation2 + $0x188] sm:$0xf]  ;;  %v4944_v45 = vor.u32 %v5882_v36, %v4943_v35 }
 0x9da   :  { %3228 = vmatpush.bf16.msrb.mxu1 %v4988_v52  ;;  %v5814_v21 = vld [vmem:[#allocation2 + $0x194] sm:$0xf0]  ;;  %v4799_v46 = vld [vmem:[#allocation2 + $0x288] sm:$0xf]  ;;  %v4544_v49 = vor.u32 %v5782_v43, %v4543_v42 }
 0x9db   :  { %3241 = vmatpush.bf16.msrb.mxu3 %v5116_v58  ;;  %v5846_v15 = vld [vmem:[#allocation2 + $0x294] sm:$0xf0]  ;;  %v4927_v47 = vld [vmem:[#allocation2 + $0x388] sm:$0xf]  ;;  %v4672_v50 = vor.u32 %v5814_v21, %v4671_v44 }
 0x9dc   :  { %3254 = vmatpush.bf16.msrb.mxu0 %v5244_v37  ;;  %v5878_v31 = vld [vmem:[#allocation2 + $0x394] sm:$0xf0]  ;;  %v4800_v51 = vor.u32 %v5846_v15, %v4799_v46  ;;  %v4527_v52 = vld [vmem:[#allocation2 + $0x68] sm:$0xf] }
 0x9dd   :  { %3267 = vmatpush.bf16.msrb.mxu2 %v5372_v61  ;;  %3229 = vmatmul.bf16.vlgmr.msrb.gmra.mxu1 %v7396_v13  ;;  %v5778_v53 = vld [vmem:[#allocation2 + $0x74] sm:$0xf0]  ;;  %v4655_v1 = vld [vmem:[#allocation2 + $0x168] sm:$0xf]  ;;  %v4928_v54 = vor.u32 %v5878_v31, %v4927_v47 }
 0x9de   :  { %3273 = vmatpush.bf16.msra.mxu1 %v4592_v62  ;;  %3242 = vmatmul.bf16.vlgmr.msrb.gmra.mxu3 %v7394_v11  ;;  %v5810_v58 = vld [vmem:[#allocation2 + $0x174] sm:$0xf0]  ;;  %v4783_v37 = vld [vmem:[#allocation2 + $0x268] sm:$0xf]  ;;  %v4528_v62 = vor.u32 %v5778_v53, %v4527_v52 }
 0x9df   :  { %3286 = vmatpush.bf16.msra.mxu3 %v4720_v63  ;;  %3255 = vmatmul.bf16.vlgmr.msrb.gmra.mxu0 %v7400_v18  ;;  %v5842_v59 = vld [vmem:[#allocation2 + $0x274] sm:$0xf0]  ;;  %v4911_v39 = vld [vmem:[#allocation2 + $0x368] sm:$0xf]  ;;  %v4656_v63 = vor.u32 %v5810_v58, %v4655_v1 }
 0x9e0   :  { %3299 = vmatpush.bf16.msra.mxu0 %v4848_v0  ;;  %3268 = vmatmul.bf16.vlgmr.msrb.gmra.mxu2 %v7398_v14  ;;  %v5874_v61 = vld [vmem:[#allocation2 + $0x374] sm:$0xf0]  ;;  %v4784_v0 = vor.u32 %v5842_v59, %v4783_v37  ;;  %v4511_v3 = vld [vmem:[#allocation2 + $0x48] sm:$0xf] }
 0x9e1   :  { %3312 = vmatpush.bf16.msra.mxu2 %v4976_v7  ;;  %v5774_v4 = vld [vmem:[#allocation2 + $0x54] sm:$0xf0]  ;;  %v4639_v5 = vld [vmem:[#allocation2 + $0x148] sm:$0xf]  ;;  %v4912_v7 = vor.u32 %v5874_v61, %v4911_v39 }
 0x9e2   :  { %3274 = vmatpush.bf16.msra.mxu1 %v4576_v17  ;;  %v5806_v8 = vld [vmem:[#allocation2 + $0x154] sm:$0xf0]  ;;  %v4767_v9 = vld [vmem:[#allocation2 + $0x248] sm:$0xf]  ;;  %v4512_v17 = vor.u32 %v5774_v4, %v4511_v3 }
 0x9e3   :  { %3287 = vmatpush.bf16.msra.mxu3 %v4704_v20  ;;  %v5838_v10 = vld [vmem:[#allocation2 + $0x254] sm:$0xf0]  ;;  %v4895_v16 = vld [vmem:[#allocation2 + $0x348] sm:$0xf]  ;;  %v4640_v20 = vor.u32 %v5806_v8, %v4639_v5 }
 0x9e4   :  { %3300 = vmatpush.bf16.msra.mxu0 %v4832_v22  ;;  %v5870_v12 = vld [vmem:[#allocation2 + $0x354] sm:$0xf0]  ;;  %v4768_v22 = vor.u32 %v5838_v10, %v4767_v9  ;;  %v4495_v23 = vld [vmem:[#allocation2 + $0x28] sm:$0xf] }
 0x9e5   :  { %3313 = vmatpush.bf16.msra.mxu2 %v4960_v29  ;;  %v5770_v24 = vld [vmem:[#allocation2 + $0x34] sm:$0xf0]  ;;  %v4623_v27 = vld [vmem:[#allocation2 + $0x128] sm:$0xf]  ;;  %v4896_v29 = vor.u32 %v5870_v12, %v4895_v16 }
 0x9e6   :  { %3275 = vmatpush.bf16.msra.mxu1 %v4560_v38  ;;  %v5802_v30 = vld [vmem:[#allocation2 + $0x134] sm:$0xf0]  ;;  %v4751_v33 = vld [vmem:[#allocation2 + $0x228] sm:$0xf]  ;;  %v4496_v38 = vor.u32 %v5770_v24, %v4495_v23 }
 0x9e7   :  { %3288 = vmatpush.bf16.msra.mxu3 %v4688_v40  ;;  %v5834_v34 = vld [vmem:[#allocation2 + $0x234] sm:$0xf0]  ;;  %v4879_v35 = vld [vmem:[#allocation2 + $0x328] sm:$0xf]  ;;  %v4624_v42 = vor.u32 %v5802_v30, %v4623_v27 }
 0x9e8   :  { %3301 = vmatpush.bf16.msra.mxu0 %v4816_v41  ;;  %v5866_v36 = vld [vmem:[#allocation2 + $0x334] sm:$0xf0]  ;;  %v4479_v40 = vld [vmem:[#allocation2 + $0x8] sm:$0xf]  ;;  %v4752_v43 = vor.u32 %v5834_v34, %v4751_v33 }
 0x9e9   :  { %3314 = vmatpush.bf16.msra.mxu2 %v4944_v45  ;;  %v5766_v41 = vld [vmem:[#allocation2 + $0x14] sm:$0xf0]  ;;  %v4607_v44 = vld [vmem:[#allocation2 + $0x108] sm:$0xf]  ;;  %v4880_v46 = vor.u32 %v5866_v36, %v4879_v35 }
 0x9ea   :  { %3276 = vmatpush.bf16.msra.mxu1 %v4544_v49  ;;  %v5798_v45 = vld [vmem:[#allocation2 + $0x114] sm:$0xf0]  ;;  %v4735_v21 = vld [vmem:[#allocation2 + $0x208] sm:$0xf]  ;;  %v4480_v52 = vor.u32 %v5766_v41, %v4479_v40 }
 0x9eb   :  { %3289 = vmatpush.bf16.msra.mxu3 %v4672_v50  ;;  %v5830_v15 = vld [vmem:[#allocation2 + $0x214] sm:$0xf0]  ;;  %v4863_v47 = vld [vmem:[#allocation2 + $0x308] sm:$0xf]  ;;  %v4608_v58 = vor.u32 %v5798_v45, %v4607_v44 }
 0x9ec   :  { %3302 = vmatpush.bf16.msra.mxu0 %v4800_v51  ;;  %v5862_v31 = vld [vmem:[#allocation2 + $0x314] sm:$0xf0]  ;;  %v5103_v49 = vld [vmem:[#allocation2 + $0x4e8] sm:$0xf]  ;;  %v4736_v37 = vor.u32 %v5830_v15, %v4735_v21 }
 0x9ed   :  { %3315 = vmatpush.bf16.msra.mxu2 %v4928_v54  ;;  %v5922_v50 = vld [vmem:[#allocation2 + $0x4f4] sm:$0xf0]  ;;  %v5231_v51 = vld [vmem:[#allocation2 + $0x5e8] sm:$0xf]  ;;  %v4864_v61 = vor.u32 %v5862_v31, %v4863_v47 }
 0x9ee   :  { %3277 = vmatpush.bf16.msra.mxu1 %v4528_v62  ;;  %v5954_v53 = vld [vmem:[#allocation2 + $0x5f4] sm:$0xf0]  ;;  %v5359_v1 = vld [vmem:[#allocation2 + $0x6e8] sm:$0xf]  ;;  %v5104_v62 = vor.u32 %v5922_v50, %v5103_v49 }
 0x9ef   :  { %3290 = vmatpush.bf16.msra.mxu3 %v4656_v63  ;;  %v5986_v54 = vld [vmem:[#allocation2 + $0x6f4] sm:$0xf0]  ;;  %v5487_v59 = vld [vmem:[#allocation2 + $0x7e8] sm:$0xf]  ;;  %v5232_v63 = vor.u32 %v5954_v53, %v5231_v51 }
 0x9f0   :  { %3303 = vmatpush.bf16.msra.mxu0 %v4784_v0  ;;  %v6018_v39 = vld [vmem:[#allocation2 + $0x7f4] sm:$0xf0]  ;;  %v5360_v0 = vor.u32 %v5986_v54, %v5359_v1  ;;  %v5087_v3 = vld [vmem:[#allocation2 + $0x4c8] sm:$0xf] }
 0x9f1   :  { %3316 = vmatpush.bf16.msra.mxu2 %v4912_v7  ;;  %v5918_v4 = vld [vmem:[#allocation2 + $0x4d4] sm:$0xf0]  ;;  %v5215_v5 = vld [vmem:[#allocation2 + $0x5c8] sm:$0xf]  ;;  %v5488_v7 = vor.u32 %v6018_v39, %v5487_v59 }
 0x9f2   :  { %3278 = vmatpush.bf16.msra.mxu1 %v4512_v17  ;;  %v5950_v8 = vld [vmem:[#allocation2 + $0x5d4] sm:$0xf0]  ;;  %v5343_v9 = vld [vmem:[#allocation2 + $0x6c8] sm:$0xf]  ;;  %v5088_v17 = vor.u32 %v5918_v4, %v5087_v3 }
 0x9f3   :  { %3291 = vmatpush.bf16.msra.mxu3 %v4640_v20  ;;  %v5982_v10 = vld [vmem:[#allocation2 + $0x6d4] sm:$0xf0]  ;;  %v5471_v16 = vld [vmem:[#allocation2 + $0x7c8] sm:$0xf]  ;;  %v5216_v20 = vor.u32 %v5950_v8, %v5215_v5 }
 0x9f4   :  { %3304 = vmatpush.bf16.msra.mxu0 %v4768_v22  ;;  %v6014_v12 = vld [vmem:[#allocation2 + $0x7d4] sm:$0xf0]  ;;  %v5344_v22 = vor.u32 %v5982_v10, %v5343_v9  ;;  %v5071_v23 = vld [vmem:[#allocation2 + $0x4a8] sm:$0xf] }
 0x9f5   :  { %3317 = vmatpush.bf16.msra.mxu2 %v4896_v29  ;;  %v5914_v24 = vld [vmem:[#allocation2 + $0x4b4] sm:$0xf0]  ;;  %v5199_v27 = vld [vmem:[#allocation2 + $0x5a8] sm:$0xf]  ;;  %v5472_v29 = vor.u32 %v6014_v12, %v5471_v16 }
 0x9f6   :  { %3279 = vmatpush.bf16.msra.mxu1 %v4496_v38  ;;  %v5946_v30 = vld [vmem:[#allocation2 + $0x5b4] sm:$0xf0]  ;;  %v5327_v33 = vld [vmem:[#allocation2 + $0x6a8] sm:$0xf]  ;;  %v5072_v38 = vor.u32 %v5914_v24, %v5071_v23 }
 0x9f7   :  { %3292 = vmatpush.bf16.msra.mxu3 %v4624_v42  ;;  %v5978_v34 = vld [vmem:[#allocation2 + $0x6b4] sm:$0xf0]  ;;  %v5455_v35 = vld [vmem:[#allocation2 + $0x7a8] sm:$0xf]  ;;  %v5200_v40 = vor.u32 %v5946_v30, %v5199_v27 }
 0x9f8   :  { %3305 = vmatpush.bf16.msra.mxu0 %v4752_v43  ;;  %v6010_v36 = vld [vmem:[#allocation2 + $0x7b4] sm:$0xf0]  ;;  %v5328_v41 = vor.u32 %v5978_v34, %v5327_v33  ;;  %v5055_v42 = vld [vmem:[#allocation2 + $0x488] sm:$0xf] }
 0x9f9   :  { %3318 = vmatpush.bf16.msra.mxu2 %v4880_v46  ;;  %v5910_v43 = vld [vmem:[#allocation2 + $0x494] sm:$0xf0]  ;;  %v5183_v44 = vld [vmem:[#allocation2 + $0x588] sm:$0xf]  ;;  %v5456_v45 = vor.u32 %v6010_v36, %v5455_v35 }
 0x9fa   :  { %3280 = vmatpush.bf16.msra.mxu1 %v4480_v52  ;;  %v5942_v21 = vld [vmem:[#allocation2 + $0x594] sm:$0xf0]  ;;  %v5311_v46 = vld [vmem:[#allocation2 + $0x688] sm:$0xf]  ;;  %v5056_v49 = vor.u32 %v5910_v43, %v5055_v42 }
 0x9fb   :  { %3293 = vmatpush.bf16.msra.mxu3 %v4608_v58  ;;  %v5974_v15 = vld [vmem:[#allocation2 + $0x694] sm:$0xf0]  ;;  %v5439_v47 = vld [vmem:[#allocation2 + $0x788] sm:$0xf]  ;;  %v5184_v50 = vor.u32 %v5942_v21, %v5183_v44 }
 0x9fc   :  { %3306 = vmatpush.bf16.msra.mxu0 %v4736_v37  ;;  %v6006_v31 = vld [vmem:[#allocation2 + $0x794] sm:$0xf0]  ;;  %v5312_v51 = vor.u32 %v5974_v15, %v5311_v46  ;;  %v5039_v52 = vld [vmem:[#allocation2 + $0x468] sm:$0xf] }
 0x9fd   :  { %3319 = vmatpush.bf16.msra.mxu2 %v4864_v61  ;;  %3281 = vmatmul.bf16.vlgmr.msra.gmra.mxu1 %v7381_v57  ;;  %v5906_v53 = vld [vmem:[#allocation2 + $0x474] sm:$0xf0]  ;;  %v5167_v1 = vld [vmem:[#allocation2 + $0x568] sm:$0xf]  ;;  %v5440_v54 = vor.u32 %v6006_v31, %v5439_v47 }
 0x9fe   :  { %3325 = vmatpush.bf16.msrb.mxu1 %v5104_v62  ;;  %3294 = vmatmul.bf16.vlgmr.msra.gmra.mxu3 %v7379_v55  ;;  %v5938_v58 = vld [vmem:[#allocation2 + $0x574] sm:$0xf0]  ;;  %v5295_v37 = vld [vmem:[#allocation2 + $0x668] sm:$0xf]  ;;  %v5040_v62 = vor.u32 %v5906_v53, %v5039_v52 }
 0x9ff   :  { %3338 = vmatpush.bf16.msrb.mxu3 %v5232_v63  ;;  %3307 = vmatmul.bf16.vlgmr.msra.gmra.mxu0 %v7385_v56  ;;  %v5970_v59 = vld [vmem:[#allocation2 + $0x674] sm:$0xf0]  ;;  %v5423_v39 = vld [vmem:[#allocation2 + $0x768] sm:$0xf]  ;;  %v5168_v3 = vor.u32 %v5938_v58, %v5167_v1  ;;  %v5792_v1 = vld [vmem:[#allocation2 + $0xec] sm:$0xf] }
 0xa00   :  { %3351 = vmatpush.bf16.msrb.mxu0 %v5360_v0  ;;  %3320 = vmatmul.bf16.vlgmr.msra.gmra.mxu2 %v7383_v60  ;;  %v6002_v61 = vld [vmem:[#allocation2 + $0x774] sm:$0xf0]  ;;  %v5023_v63 = vld [vmem:[#allocation2 + $0x448] sm:$0xf]  ;;  %v5296_v4 = vor.u32 %v5970_v59, %v5295_v37  ;;  %v5824_v58 = vld [vmem:[#allocation2 + $0x1ec] sm:$0xf] }
 0xa01   :  { %3364 = vmatpush.bf16.msrb.mxu2 %v5488_v7  ;;  %v5902_v0 = vld [vmem:[#allocation2 + $0x454] sm:$0xf0]  ;;  %v5151_v5 = vld [vmem:[#allocation2 + $0x548] sm:$0xf]  ;;  %v5424_v8 = vor.u32 %v6002_v61, %v5423_v39  ;;  %v4721_v39 = vld [vmem:[#allocation2 + $0x1f8] sm:$0xf0] }
 0xa02   :  { %3326 = vmatpush.bf16.msrb.mxu1 %v5088_v17  ;;  %v7421_v7 = vld [vmem:[%s7766_s9 + $0x2] ss:$8 sm:$0xf]  ;;  %v5856_v61 = vld [vmem:[#allocation2 + $0x2ec] sm:$0xf] }
 0xa03   :  { %3339 = vmatpush.bf16.msrb.mxu3 %v5216_v20  ;;  %v5934_v9 = vld [vmem:[#allocation2 + $0x554] sm:$0xf0]  ;;  %v5279_v10 = vld [vmem:[#allocation2 + $0x648] sm:$0xf]  ;;  %v5024_v20 = vor.u32 %v5902_v0, %v5023_v63 }
 0xa04   :  { %3352 = vmatpush.bf16.msrb.mxu0 %v5344_v22  ;;  %v5966_v16 = vld [vmem:[#allocation2 + $0x654] sm:$0xf0]  ;;  %v5407_v12 = vld [vmem:[#allocation2 + $0x748] sm:$0xf]  ;;  %v1777_v22 = vperm.slane %v7421_v7, 0  ;;  %v5152_v23 = vor.u32 %v5934_v9, %v5151_v5 }
 0xa05   :  { %3365 = vmatpush.bf16.msrb.mxu2 %v5472_v29  ;;  %v5998_v17 = vld [vmem:[#allocation2 + $0x754] sm:$0xf0]  ;;  %v5280_v24 = vor.u32 %v5966_v16, %v5279_v10  ;;  %v5007_v27 = vld [vmem:[#allocation2 + $0x428] sm:$0xf]  ;;  %v4977_v5 = vld [vmem:[#allocation2 + $0x3f8] sm:$0xf0] }
 0xa06   :  { %3327 = vmatpush.bf16.msrb.mxu1 %v5072_v38  ;;  %v5898_v29 = vld [vmem:[#allocation2 + $0x434] sm:$0xf0]  ;;  %v5135_v30 = vld [vmem:[#allocation2 + $0x528] sm:$0xf]  ;;  %v5408_v33 = vor.u32 %v5998_v17, %v5407_v12  ;;  %v4724_v12 = vor.u32 %v5824_v58, %v4721_v39  ;;  %v4545_v58 = vld [vmem:[#allocation2 + $0x98] sm:$0xf0] }
 0xa07   :  { %3340 = vmatpush.bf16.msrb.mxu3 %v5200_v40  ;;  %v5930_v34 = vld [vmem:[#allocation2 + $0x534] sm:$0xf0]  ;;  %v5263_v35 = vld [vmem:[#allocation2 + $0x628] sm:$0xf]  ;;  %v5008_v42 = vor.u32 %v5898_v29, %v5007_v27  ;;  %v4705_v29 = vld [vmem:[#allocation2 + $0x1d8] sm:$0xf0] }
 0xa08   :  { %3353 = vmatpush.bf16.msrb.mxu0 %v5328_v41  ;;  %v5962_v36 = vld [vmem:[#allocation2 + $0x634] sm:$0xf0]  ;;  %v5391_v38 = vld [vmem:[#allocation2 + $0x728] sm:$0xf]  ;;  %v5136_v46 = vor.u32 %v5930_v34, %v5135_v30  ;;  %v5852_v30 = vld [vmem:[#allocation2 + $0x2cc] sm:$0xf] }
 0xa09   :  { %3366 = vmatpush.bf16.msrb.mxu2 %v5456_v45  ;;  %v5994_v40 = vld [vmem:[#allocation2 + $0x734] sm:$0xf0]  ;;  %v4991_v43 = vld [vmem:[#allocation2 + $0x408] sm:$0xf]  ;;  %v5264_v15 = vor.u32 %v5962_v36, %v5263_v35  ;;  %v5884_v36 = vld [vmem:[#allocation2 + $0x3cc] sm:$0xf] }
 0xa0a   :  { %3328 = vmatpush.bf16.msrb.mxu1 %v5056_v49  ;;  %v5894_v44 = vld [vmem:[#allocation2 + $0x414] sm:$0xf0]  ;;  %v5119_v47 = vld [vmem:[#allocation2 + $0x508] sm:$0xf]  ;;  %v4673_v39 = vld [vmem:[#allocation2 + $0x198] sm:$0xf0] }
 0xa0b   :  { %3341 = vmatpush.bf16.msrb.mxu3 %v5184_v50  ;;  %v3074_v41 = vpop.f32.mrf.mxu1  ;;  %v5926_v31 = vld [vmem:[#allocation2 + $0x514] sm:$0xf0]  ;;  %v5247_v49 = vld [vmem:[#allocation2 + $0x608] sm:$0xf]  ;;  %v5392_v50 = vor.u32 %v5994_v40, %v5391_v38  ;;  %v4992_v59 = vor.u32 %v5894_v44, %v4991_v43  ;;  %v4961_v38 = vld [vmem:[#allocation2 + $0x3d8] sm:$0xf0] }
 0xa0c   :  { %3354 = vmatpush.bf16.msrb.mxu0 %v5312_v51  ;;  %v3075_v45 = vadd.f32 %v3074_v41, %v1777_v22  ;;  %v3100_v21 = vpop.f32.mrf.mxu0  ;;  %v5958_v51 = vld [vmem:[#allocation2 + $0x614] sm:$0xf0]  ;;  %v5375_v52 = vld [vmem:[#allocation2 + $0x708] sm:$0xf]  ;;  %v5120_v0 = vor.u32 %v5926_v31, %v5119_v47  ;;  %v4577_v22 = vld [vmem:[#allocation2 + $0xd8] sm:$0xf0] }
 0xa0d   :  { %3367 = vmatpush.bf16.msrb.mxu2 %v5440_v54  ;;  %v5990_v53 = vld [vmem:[#allocation2 + $0x714] sm:$0xf0]  ;;  %v4593_v54 = vld [vmem:[#allocation2 + $0xf8] sm:$0xf0]  ;;  %v5784_v43 = vld [vmem:[#allocation2 + $0xac] sm:$0xf] }
 0xa0e   :  { %3329 = vmatpush.bf16.msrb.mxu1 %v5040_v62  ;;  %v4849_v62 = vld [vmem:[#allocation2 + $0x2f8] sm:$0xf0]  ;;  %v4596_v9 = vor.u32 %v5792_v1, %v4593_v54  ;;  %v5848_v47 = vld [vmem:[#allocation2 + $0x2ac] sm:$0xf] }
 0xa0f   :  { %3342 = vmatpush.bf16.msrb.mxu3 %v5168_v3  ;;  %v5248_v3 = vor.u32 %v5958_v51, %v5247_v49  ;;  %v4852_v17 = vor.u32 %v5856_v61, %v4849_v62  ;;  %v4561_v44 = vld [vmem:[#allocation2 + $0xb8] sm:$0xf0]  ;;  %v5880_v49 = vld [vmem:[#allocation2 + $0x3ac] sm:$0xf] }
 0xa10   :  { %3355 = vmatpush.bf16.msrb.mxu0 %v5296_v4  ;;  %v5888_v4 = vld [vmem:[#allocation2 + $0x3ec] sm:$0xf]  ;;  %v4817_v31 = vld [vmem:[#allocation2 + $0x2b8] sm:$0xf0]  ;;  %v4564_v51 = vor.u32 %v5784_v43, %v4561_v44 }
 0xa11   :  { %3368 = vmatpush.bf16.msrb.mxu2 %v5424_v8  ;;  %v3087_v37 = vpop.f32.mrf.mxu3  ;;  %v5376_v8 = vor.u32 %v5990_v53, %v5375_v52  ;;  %v4980_v27 = vor.u32 %v5888_v4, %v4977_v5  ;;  %v4820_v1 = vor.u32 %v5848_v47, %v4817_v31  ;;  %v5780_v54 = vld [vmem:[#allocation2 + $0x8c] sm:$0xf]  ;;  %v4801_v62 = vld [vmem:[#allocation2 + $0x298] sm:$0xf0] }
 0xa12   :  { %3330 = vmatpush.bf16.msrb.mxu1 %v5024_v20  ;;  %v3088_v63 = vadd.f32 %v3087_v37, %v3075_v45  ;;  %v3113_v16 = vpop.f32.mrf.mxu2  ;;  %v5788_v20 = vld [vmem:[#allocation2 + $0xcc] sm:$0xf]  ;;  %v4769_v44 = vld [vmem:[#allocation2 + $0x258] sm:$0xf0] }
 0xa13   :  { %3343 = vmatpush.bf16.msrb.mxu3 %v5152_v23  ;;  %v5820_v23 = vld [vmem:[#allocation2 + $0x1cc] sm:$0xf]  ;;  %v4580_v40 = vor.u32 %v5788_v20, %v4577_v22  ;;  %v4657_v22 = vld [vmem:[#allocation2 + $0x178] sm:$0xf0] }
 0xa14   :  { %3356 = vmatpush.bf16.msrb.mxu0 %v5280_v24  ;;  %v3101_v10 = vadd.f32 %v3100_v21, %v3088_v63  ;;  %v3076_v24 = vpop.f32.mrf.mxu1  ;;  %v3102_v35 = vpop.f32.mrf.mxu0  ;;  %v4708_v41 = vor.u32 %v5820_v23, %v4705_v29  ;;  %v5816_v45 = vld [vmem:[#allocation2 + $0x1ac] sm:$0xf]  ;;  %v4913_v29 = vld [vmem:[#allocation2 + $0x378] sm:$0xf0] }
 0xa15   :  { %3369 = vmatpush.bf16.msrb.mxu2 %v5408_v33  ;;  %v4833_v33 = vld [vmem:[#allocation2 + $0x2d8] sm:$0xf0]  ;;  %v5812_v37 = vld [vmem:[#allocation2 + $0x18c] sm:$0xf] }
 0xa16   :  { %3331 = vmatpush.bf16.msrb.mxu1 %v5008_v42  ;;  %v3114_v34 = vadd.f32 %v3113_v16, %v3101_v10  ;;  %v4836_v42 = vor.u32 %v5852_v30, %v4833_v33  ;;  %v5844_v61 = vld [vmem:[#allocation2 + $0x28c] sm:$0xf]  ;;  %v4676_v5 = vor.u32 %v5812_v37, %v4673_v39  ;;  %v4529_v10 = vld [vmem:[#allocation2 + $0x78] sm:$0xf0] }
 0xa17   :  { %3344 = vmatpush.bf16.msrb.mxu3 %v5136_v46  ;;  %v4964_v46 = vor.u32 %v5884_v36, %v4961_v38  ;;  %v5876_v63 = vld [vmem:[#allocation2 + $0x38c] sm:$0xf]  ;;  %v4785_v24 = vld [vmem:[#allocation2 + $0x278] sm:$0xf0] }
 0xa18   :  { %3357 = vmatpush.bf16.msrb.mxu0 %v5264_v15  ;;  %v4689_v15 = vld [vmem:[#allocation2 + $0x1b8] sm:$0xf0]  ;;  %v5808_v16 = vld [vmem:[#allocation2 + $0x16c] sm:$0xf] }
 0xa19   :  { %3370 = vmatpush.bf16.msrb.mxu2 %v5392_v50  ;;  %v3089_v21 = vpop.f32.mrf.mxu3  ;;  %v4945_v50 = vld [vmem:[#allocation2 + $0x3b8] sm:$0xf0]  ;;  %v4692_v53 = vor.u32 %v5816_v45, %v4689_v15  ;;  %v5840_v23 = vld [vmem:[#allocation2 + $0x26c] sm:$0xf]  ;;  %v4660_v33 = vor.u32 %v5808_v16, %v4657_v22 }
 0xa1a   :  { %3332 = vmatpush.bf16.msrb.mxu1 %v4992_v59  ;;  %v3115_v52 = vpop.f32.mrf.mxu2  ;;  %v4948_v59 = vor.u32 %v5880_v49, %v4945_v50  ;;  %v4788_v35 = vor.u32 %v5840_v23, %v4785_v24  ;;  %v5772_v36 = vld [vmem:[#allocation2 + $0x4c] sm:$0xf]  ;;  %v4513_v38 = vld [vmem:[#allocation2 + $0x58] sm:$0xf0] }
 0xa1b   :  { %3345 = vmatpush.bf16.msrb.mxu3 %v5120_v0  ;;  %v4929_v0 = vld [vmem:[#allocation2 + $0x398] sm:$0xf0]  ;;  %v5836_v43 = vld [vmem:[#allocation2 + $0x24c] sm:$0xf]  ;;  %v4516_v47 = vor.u32 %v5772_v36, %v4513_v38 }
 0xa1c   :  { %3358 = vmatpush.bf16.msrb.mxu0 %v5248_v3  ;;  %v4548_v3 = vor.u32 %v5780_v54, %v4545_v58  ;;  %v3126_v4 = vpop.f32.mrf.mxu1  ;;  %v4932_v20 = vor.u32 %v5876_v63, %v4929_v0  ;;  %v4897_v15 = vld [vmem:[#allocation2 + $0x358] sm:$0xf0]  ;;  %v5768_v52 = vld [vmem:[#allocation2 + $0x2c] sm:$0xf] }
 0xa1d   :  { %3371 = vmatpush.bf16.msrb.mxu2 %v5376_v8  ;;  %3333 = vmatmul.bf16.vlgmr.msrb.gmra.mxu1 %v7396_v13  ;;  %v4804_v8 = vor.u32 %v5844_v61, %v4801_v62  ;;  %v4625_v37 = vld [vmem:[#allocation2 + $0x138] sm:$0xf0]  ;;  %v5864_v62 = vld [vmem:[#allocation2 + $0x32c] sm:$0xf] }
 0xa1e   :  { %3377 = vmatpush.bf16.msra.mxu1 %v4596_v9  ;;  %3346 = vmatmul.bf16.vlgmr.msrb.gmra.mxu3 %v7394_v11  ;;  %v5776_v9 = vld [vmem:[#allocation2 + $0x6c] sm:$0xf]  ;;  %v4753_v39 = vld [vmem:[#allocation2 + $0x238] sm:$0xf0] }
 0xa1f   :  { %3390 = vmatpush.bf16.msra.mxu3 %v4724_v12  ;;  %3359 = vmatmul.bf16.vlgmr.msrb.gmra.mxu0 %v7400_v18  ;;  %v3127_v12 = vadd.f32 %v3126_v4, %v3114_v34  ;;  %v4532_v30 = vor.u32 %v5776_v9, %v4529_v10  ;;  %v4881_v63 = vld [vmem:[#allocation2 + $0x338] sm:$0xf0]  ;;  %v5796_v9 = vld [vmem:[#allocation2 + $0x10c] sm:$0xf] }
 0xa20   :  { %3403 = vmatpush.bf16.msra.mxu0 %v4852_v17  ;;  %3372 = vmatmul.bf16.vlgmr.msrb.gmra.mxu2 %v7398_v14  ;;  %v3152_v17 = vpop.f32.mrf.mxu0  ;;  %v4481_v4 = vld [vmem:[#allocation2 + $0x18] sm:$0xf0]  ;;  %v5828_v16 = vld [vmem:[#allocation2 + $0x20c] sm:$0xf] }
 0xa21   :  { %3416 = vmatpush.bf16.msra.mxu2 %v4980_v27  ;;  %v5872_v27 = vld [vmem:[#allocation2 + $0x36c] sm:$0xf]  ;;  %v4609_v10 = vld [vmem:[#allocation2 + $0x118] sm:$0xf0] }
 0xa22   :  { %3378 = vmatpush.bf16.msra.mxu1 %v4580_v40  ;;  %v5804_v40 = vld [vmem:[#allocation2 + $0x14c] sm:$0xf]  ;;  %v4916_v34 = vor.u32 %v5872_v27, %v4913_v29  ;;  %v4865_v23 = vld [vmem:[#allocation2 + $0x318] sm:$0xf0] }
 0xa23   :  { %3391 = vmatpush.bf16.msra.mxu3 %v4708_v41  ;;  %v3139_v41 = vpop.f32.mrf.mxu3  ;;  %v5860_v22 = vld [vmem:[#allocation2 + $0x30c] sm:$0xf]  ;;  %v5105_v29 = vld [vmem:[#allocation2 + $0x4f8] sm:$0xf0] }
 0xa24   :  { %3404 = vmatpush.bf16.msra.mxu0 %v4836_v42  ;;  %v4641_v42 = vld [vmem:[#allocation2 + $0x158] sm:$0xf0]  ;;  %v3140_v45 = vadd.f32 %v3139_v41, %v3127_v12  ;;  %v3128_v49 = vpop.f32.mrf.mxu1  ;;  %v5920_v27 = vld [vmem:[#allocation2 + $0x4ec] sm:$0xf] }
 0xa25   :  { %3417 = vmatpush.bf16.msra.mxu2 %v4964_v46  ;;  %v3165_v21 = vpop.f32.mrf.mxu2  ;;  %v5868_v46 = vld [vmem:[#allocation2 + $0x34c] sm:$0xf]  ;;  %v4644_v50 = vor.u32 %v5804_v40, %v4641_v42  ;;  %v5361_v38 = vld [vmem:[#allocation2 + $0x6f8] sm:$0xf0]  ;;  %v4612_v40 = vor.u32 %v5796_v9, %v4609_v10 }
 0xa26   :  { %3379 = vmatpush.bf16.msra.mxu1 %v4564_v51  ;;  %v3153_v31 = vadd.f32 %v3152_v17, %v3140_v45  ;;  %v4772_v51 = vor.u32 %v5836_v43, %v4769_v44  ;;  %v4900_v58 = vor.u32 %v5868_v46, %v4897_v15  ;;  %v4884_v17 = vor.u32 %v5864_v62, %v4881_v63  ;;  %v5984_v36 = vld [vmem:[#allocation2 + $0x6ec] sm:$0xf]  ;;  %v5489_v42 = vld [vmem:[#allocation2 + $0x7f8] sm:$0xf0] }
 0xa27   :  { %3392 = vmatpush.bf16.msra.mxu3 %v4692_v53  ;;  %v4497_v53 = vld [vmem:[#allocation2 + $0x38] sm:$0xf0]  ;;  %v4868_v43 = vor.u32 %v5860_v22, %v4865_v23  ;;  %v5108_v44 = vor.u32 %v5920_v27, %v5105_v29  ;;  %v5916_v46 = vld [vmem:[#allocation2 + $0x4cc] sm:$0xf] }
 0xa28   :  { %3405 = vmatpush.bf16.msra.mxu0 %v4820_v1  ;;  %v5800_v1 = vld [vmem:[#allocation2 + $0x12c] sm:$0xf]  ;;  %v3154_v54 = vpop.f32.mrf.mxu0  ;;  %v7428_v61 = vadd.f32 %v3165_v21, %v3153_v31  ;;  %v4500_v0 = vor.u32 %v5768_v52, %v4497_v53  ;;  %v5364_v21 = vor.u32 %v5984_v36, %v5361_v38  ;;  %v5089_v15 = vld [vmem:[#allocation2 + $0x4d8] sm:$0xf0] }
 0xa29   :  { %3418 = vmatpush.bf16.msra.mxu2 %v4948_v59  ;;  %v5832_v59 = vld [vmem:[#allocation2 + $0x22c] sm:$0xf]  ;;  %v5217_v49 = vld [vmem:[#allocation2 + $0x5d8] sm:$0xf0] }
 0xa2a   :  { %3380 = vmatpush.bf16.msra.mxu1 %v4548_v3  ;;  %v5764_v3 = vld [vmem:[#allocation2 + $0xc] sm:$0xf]  ;;  %v5473_v53 = vld [vmem:[#allocation2 + $0x7d8] sm:$0xf0] }
 0xa2b   :  { %3393 = vmatpush.bf16.msra.mxu3 %v4676_v5  ;;  %v4628_v5 = vor.u32 %v5800_v1, %v4625_v37  ;;  %v3141_v12 = vpop.f32.mrf.mxu3  ;;  %v6012_v52 = vld [vmem:[#allocation2 + $0x7cc] sm:$0xf]  ;;  %v5092_v1 = vor.u32 %v5916_v46, %v5089_v15  ;;  %v5201_v63 = vld [vmem:[#allocation2 + $0x5b8] sm:$0xf0] }
 0xa2c   :  { %3406 = vmatpush.bf16.msra.mxu0 %v4804_v8  ;;  %v4756_v8 = vor.u32 %v5832_v59, %v4753_v39  ;;  %v5912_v37 = vld [vmem:[#allocation2 + $0x4ac] sm:$0xf]  ;;  %v5073_v59 = vld [vmem:[#allocation2 + $0x4b8] sm:$0xf0]  ;;  %v5476_v62 = vor.u32 %v6012_v52, %v5473_v53 }
 0xa2d   :  { %3419 = vmatpush.bf16.msra.mxu2 %v4932_v20  ;;  %v4737_v20 = vld [vmem:[#allocation2 + $0x218] sm:$0xf0]  ;;  %v3167_v24 = vpop.f32.mrf.mxu2  ;;  %v5944_v39 = vld [vmem:[#allocation2 + $0x5ac] sm:$0xf] }
 0xa2e   :  { %3381 = vmatpush.bf16.msra.mxu1 %v4532_v30  ;;  %v5952_v30 = vld [vmem:[#allocation2 + $0x5ec] sm:$0xf]  ;;  %v4740_v41 = vor.u32 %v5828_v16, %v4737_v20  ;;  %v5204_v9 = vor.u32 %v5944_v39, %v5201_v63  ;;  %v5057_v12 = vld [vmem:[#allocation2 + $0x498] sm:$0xf0] }
 0xa2f   :  { %3394 = vmatpush.bf16.msra.mxu3 %v4660_v33  ;;  %v4484_v33 = vor.u32 %v5764_v3, %v4481_v4  ;;  %v5329_v3 = vld [vmem:[#allocation2 + $0x6b8] sm:$0xf0]  ;;  %v6008_v4 = vld [vmem:[#allocation2 + $0x7ac] sm:$0xf] }
 0xa30   :  { %3407 = vmatpush.bf16.msra.mxu0 %v4788_v35  ;;  %v5233_v35 = vld [vmem:[#allocation2 + $0x5f8] sm:$0xf0]  ;;  %v5908_v16 = vld [vmem:[#allocation2 + $0x48c] sm:$0xf] }
 0xa31   :  { %3420 = vmatpush.bf16.msra.mxu2 %v4916_v34  ;;  %v6016_v34 = vld [vmem:[#allocation2 + $0x7ec] sm:$0xf]  ;;  %v5236_v45 = vor.u32 %v5952_v30, %v5233_v35  ;;  %v5185_v20 = vld [vmem:[#allocation2 + $0x598] sm:$0xf0] }
 0xa32   :  { %3382 = vmatpush.bf16.msra.mxu1 %v4516_v47  ;;  %v5948_v47 = vld [vmem:[#allocation2 + $0x5cc] sm:$0xf]  ;;  %v5492_v31 = vor.u32 %v6016_v34, %v5489_v42  ;;  %v5313_v23 = vld [vmem:[#allocation2 + $0x698] sm:$0xf0] }
 0xa33   :  { %3395 = vmatpush.bf16.msra.mxu3 %v4644_v50  ;;  %v5980_v50 = vld [vmem:[#allocation2 + $0x6cc] sm:$0xf]  ;;  %v5220_v54 = vor.u32 %v5948_v47, %v5217_v49  ;;  %v5297_v34 = vld [vmem:[#allocation2 + $0x678] sm:$0xf0] }
 0xa34   :  { %3408 = vmatpush.bf16.msra.mxu0 %v4772_v51  ;;  %v5345_v51 = vld [vmem:[#allocation2 + $0x6d8] sm:$0xf0]  ;;  %v5972_v22 = vld [vmem:[#allocation2 + $0x68c] sm:$0xf] }
 0xa35   :  { %3421 = vmatpush.bf16.msra.mxu2 %v4900_v58  ;;  %v5348_v58 = vor.u32 %v5980_v50, %v5345_v51  ;;  %v6004_v24 = vld [vmem:[#allocation2 + $0x78c] sm:$0xf]  ;;  %v5316_v29 = vor.u32 %v5972_v22, %v5313_v23  ;;  %v5025_v15 = vld [vmem:[#allocation2 + $0x458] sm:$0xf0] }
 0xa36   :  { %3383 = vmatpush.bf16.msra.mxu1 %v4500_v0  ;;  %v5976_v0 = vld [vmem:[#allocation2 + $0x6ac] sm:$0xf]  ;;  %v5153_v50 = vld [vmem:[#allocation2 + $0x558] sm:$0xf0] }
 0xa37   :  { %3396 = vmatpush.bf16.msra.mxu3 %v4628_v5  ;;  %v5457_v5 = vld [vmem:[#allocation2 + $0x7b8] sm:$0xf0]  ;;  %v5332_v10 = vor.u32 %v5976_v0, %v5329_v3  ;;  %v5904_v30 = vld [vmem:[#allocation2 + $0x46c] sm:$0xf] }
 0xa38   :  { %3409 = vmatpush.bf16.msra.mxu0 %v4756_v8  ;;  %v5076_v8 = vor.u32 %v5912_v37, %v5073_v59  ;;  %v5936_v35 = vld [vmem:[#allocation2 + $0x56c] sm:$0xf]  ;;  %v5281_v52 = vld [vmem:[#allocation2 + $0x658] sm:$0xf0] }
 0xa39   :  { %3422 = vmatpush.bf16.msra.mxu2 %v4884_v17  ;;  %v5460_v17 = vor.u32 %v6008_v4, %v5457_v5  ;;  %v6000_v42 = vld [vmem:[#allocation2 + $0x76c] sm:$0xf]  ;;  %v5009_v63 = vld [vmem:[#allocation2 + $0x438] sm:$0xf0] }
 0xa3a   :  { %3384 = vmatpush.bf16.msra.mxu1 %v4484_v33  ;;  %v7434_v27 = vpop.f32.mrf.mxu1  ;;  %v5041_v33 = vld [vmem:[#allocation2 + $0x478] sm:$0xf0]  ;;  %v5900_v46 = vld [vmem:[#allocation2 + $0x44c] sm:$0xf] }
 0xa3b   :  { %3397 = vmatpush.bf16.msra.mxu3 %v4612_v40  ;;  %v5169_v40 = vld [vmem:[#allocation2 + $0x578] sm:$0xf0]  ;;  %v5932_v47 = vld [vmem:[#allocation2 + $0x54c] sm:$0xf] }
 0xa3c   :  { %3410 = vmatpush.bf16.msra.mxu0 %v4740_v41  ;;  %v7436_v36 = vpop.f32.mrf.mxu0  ;;  %v5968_v41 = vld [vmem:[#allocation2 + $0x66c] sm:$0xf]  ;;  %v5156_v59 = vor.u32 %v5932_v47, %v5153_v50  ;;  %v5137_v5 = vld [vmem:[#allocation2 + $0x538] sm:$0xf0]  ;;  %v5544_v47 = vld [vmem:[#allocation3 + $0x60] sm:$0xf] }
 0xa3d   :  { %3423 = vmatpush.bf16.msra.mxu2 %v4868_v43  ;;  %3385 = vmatmul.bf16.vlgmr.msra.gmra.mxu1 %v7381_v57  ;;  %v5441_v57 = vld [vmem:[#allocation2 + $0x798] sm:$0xf0]  ;;  %v5964_v51 = vld [vmem:[#allocation2 + $0x64c] sm:$0xf] }
 0xa3e   :  { %3429 = vmatpush.bf16.msrb.mxu1 %v5108_v44  ;;  %3398 = vmatmul.bf16.vlgmr.msra.gmra.mxu3 %v7379_v55  ;;  %v5940_v55 = vld [vmem:[#allocation2 + $0x58c] sm:$0xf]  ;;  %v5444_v38 = vor.u32 %v6004_v24, %v5441_v57  ;;  %v5425_v43 = vld [vmem:[#allocation2 + $0x778] sm:$0xf0]  ;;  %v5044_v44 = vor.u32 %v5904_v30, %v5041_v33  ;;  %v5284_v39 = vor.u32 %v5964_v51, %v5281_v52  ;;  %v5608_v51 = vld [vmem:[#allocation3 + $0xe0] sm:$0xf] }
 0xa3f   :  { %3442 = vmatpush.bf16.msrb.mxu3 %v5236_v45  ;;  %3411 = vmatmul.bf16.vlgmr.msra.gmra.mxu0 %v7385_v56  ;;  %v5188_v56 = vor.u32 %v5940_v55, %v5185_v20  ;;  %v5172_v45 = vor.u32 %v5936_v35, %v5169_v40  ;;  %v5428_v49 = vor.u32 %v6000_v42, %v5425_v43  ;;  %v5928_v0 = vld [vmem:[#allocation2 + $0x52c] sm:$0xf]  ;;  %v4993_v23 = vld [vmem:[#allocation2 + $0x418] sm:$0xf0]  ;;  %v5552_v40 = vld [vmem:[#allocation3 + $0x70] sm:$0xf] }
 0xa40   :  { %3455 = vmatpush.bf16.msrb.mxu0 %v5364_v21  ;;  %3424 = vmatmul.bf16.vlgmr.msra.gmra.mxu2 %v7383_v60  ;;  %v5060_v60 = vor.u32 %v5908_v16, %v5057_v12  ;;  %v5300_v21 = vor.u32 %v5968_v41, %v5297_v34  ;;  %v5393_v16 = vld [vmem:[#allocation2 + $0x738] sm:$0xf0]  ;;  %v5892_v55 = vld [vmem:[#allocation2 + $0x40c] sm:$0xf]  ;;  %v5140_v20 = vor.u32 %v5928_v0, %v5137_v5  ;;  %v6034_v41 = vld [vmem:[#allocation3 + $0x74] sm:$0xf0] }
 0xa41   :  { %3468 = vmatpush.bf16.msrb.mxu2 %v5492_v31  ;;  %v7438_v31 = vpop.f32.mrf.mxu3  ;;  %v5924_v24 = vld [vmem:[#allocation2 + $0x50c] sm:$0xf]  ;;  %v5121_v57 = vld [vmem:[#allocation2 + $0x518] sm:$0xf0]  ;;  %v4996_v34 = vor.u32 %v5892_v55, %v4993_v23  ;;  %v5616_v42 = vld [vmem:[#allocation3 + $0xf0] sm:$0xf] }
 0xa42   :  { %3430 = vmatpush.bf16.msrb.mxu1 %v5092_v1  ;;  %v5996_v1 = vld [vmem:[#allocation2 + $0x74c] sm:$0xf]  ;;  %v3180_v37 = vpop.f32.mrf.mxu1  ;;  %v5249_v30 = vld [vmem:[#allocation2 + $0x618] sm:$0xf0]  ;;  %v6050_v43 = vld [vmem:[#allocation3 + $0xf4] sm:$0xf0] }
 0xa43   :  { %3443 = vmatpush.bf16.msrb.mxu3 %v5220_v54  ;;  %v7440_v53 = vpop.f32.mrf.mxu2  ;;  %v5409_v54 = vld [vmem:[#allocation2 + $0x758] sm:$0xf0]  ;;  %v5988_v33 = vld [vmem:[#allocation2 + $0x70c] sm:$0xf]  ;;  %v6048_v52 = vld [vmem:[#allocation3 + $0xe4] sm:$0xf0] }
 0xa44   :  { %3456 = vmatpush.bf16.msrb.mxu0 %v5348_v58  ;;  %v5028_v58 = vor.u32 %v5900_v46, %v5025_v15  ;;  %v3206_v3 = vpop.f32.mrf.mxu0  ;;  %v5412_v4 = vor.u32 %v5996_v1, %v5409_v54  ;;  %v5553_v46 = vor.u32 %v6034_v41, %v5552_v40  ;;  %v5617_v15 = vor.u32 %v6050_v43, %v5616_v42  ;;  %v5536_v54 = vld [vmem:[#allocation3 + $0x50] sm:$0xf]  ;;  %v6028_v0 = vld [vmem:[#allocation3 + $0x44] sm:$0xf0]  ;;  %v6066_v55 = vld [vmem:[#allocation3 + $0x174] sm:$0xf0] }
 0xa45   :  { %3469 = vmatpush.bf16.msrb.mxu2 %v5476_v62  ;;  %v5896_v62 = vld [vmem:[#allocation2 + $0x42c] sm:$0xf]  ;;  %v5609_v1 = vor.u32 %v6048_v52, %v5608_v51  ;;  %v5592_v3 = vld [vmem:[#allocation3 + $0xc0] sm:$0xf]  ;;  %v6022_v42 = vld [vmem:[#allocation3 + $0x14] sm:$0xf0] }
 0xa46   :  { %3431 = vmatpush.bf16.msrb.mxu1 %v5076_v8  ;;  %v5960_v8 = vld [vmem:[#allocation2 + $0x62c] sm:$0xf]  ;;  %v5012_v12 = vor.u32 %v5896_v62, %v5009_v63  ;;  %v5528_v63 = vld [vmem:[#allocation3 + $0x40] sm:$0xf]  ;;  %v5568_v43 = vld [vmem:[#allocation3 + $0x90] sm:$0xf] }
 0xa47   :  { %3444 = vmatpush.bf16.msrb.mxu3 %v5204_v9  ;;  %v5265_v9 = vld [vmem:[#allocation2 + $0x638] sm:$0xf0]  ;;  %v5512_v23 = vld [vmem:[#allocation3 + $0x20] sm:$0xf] }
 0xa48   :  { %3457 = vmatpush.bf16.msrb.mxu0 %v5332_v10  ;;  %v5992_v10 = vld [vmem:[#allocation2 + $0x72c] sm:$0xf]  ;;  %v5268_v22 = vor.u32 %v5960_v8, %v5265_v9  ;;  %v6026_v8 = vld [vmem:[#allocation3 + $0x34] sm:$0xf0]  ;;  %v5584_v9 = vld [vmem:[#allocation3 + $0xb0] sm:$0xf] }
 0xa49   :  { %3470 = vmatpush.bf16.msrb.mxu2 %v5460_v17  ;;  %v1778_v17 = vperm.slane %v7421_v7, 1  ;;  %v5496_v52 = vld [vmem:[#allocation3] sm:$0xf] }
 0xa4a   :  { %3432 = vmatpush.bf16.msrb.mxu1 %v5060_v60  ;;  %v3193_v60 = vpop.f32.mrf.mxu3 }
 0xa4b   :  { %3445 = vmatpush.bf16.msrb.mxu3 %v5188_v56  ;;  %v5396_v56 = vor.u32 %v5992_v10, %v5393_v16  ;;  %v3219_v35 = vpop.f32.mrf.mxu2  ;;  %v3179_v7 = vadd.f32 %v7434_v27, %v1778_v17  ;;  %v6042_v16 = vld [vmem:[#allocation3 + $0xb4] sm:$0xf0] }
 0xa4c   :  { %3458 = vmatpush.bf16.msrb.mxu0 %v5316_v29  ;;  %v5956_v29 = vld [vmem:[#allocation2 + $0x60c] sm:$0xf] }
 0xa4d   :  { %3471 = vmatpush.bf16.msrb.mxu2 %v5444_v38  ;;  %v5377_v38 = vld [vmem:[#allocation2 + $0x718] sm:$0xf0]  ;;  %v3192_v50 = vadd.f32 %v7438_v31, %v3179_v7  ;;  %v5600_v31 = vld [vmem:[#allocation3 + $0xd0] sm:$0xf] }
 0xa4e   :  { %3433 = vmatpush.bf16.msrb.mxu1 %v5044_v44  ;;  %v5124_v44 = vor.u32 %v5924_v24, %v5121_v57  ;;  %v6024_v24 = vld [vmem:[#allocation3 + $0x24] sm:$0xf0]  ;;  %v5576_v57 = vld [vmem:[#allocation3 + $0xa0] sm:$0xf]  ;;  %v5504_v7 = vld [vmem:[#allocation3 + $0x10] sm:$0xf] }
 0xa4f   :  { %3446 = vmatpush.bf16.msrb.mxu3 %v5172_v45  ;;  %v5252_v45 = vor.u32 %v5956_v29, %v5249_v30  ;;  %v3205_v37 = vadd.f32 %v7436_v36, %v3192_v50  ;;  %v5520_v36 = vld [vmem:[#allocation3 + $0x30] sm:$0xf]  ;;  %v5672_v30 = vld [vmem:[#allocation3 + $0x160] sm:$0xf]  ;;  %v5513_v40 = vor.u32 %v6024_v24, %v5512_v23  ;;  %v5505_v51 = vor.u32 %v6022_v42, %v5504_v7  ;;  %v6056_v23 = vld [vmem:[#allocation3 + $0x124] sm:$0xf0] }
 0xa50   :  { %3459 = vmatpush.bf16.msrb.mxu0 %v5300_v21  ;;  %v5380_v21 = vor.u32 %v5988_v33, %v5377_v38  ;;  %v6064_v33 = vld [vmem:[#allocation3 + $0x164] sm:$0xf0]  ;;  %v6043_v7 = vld [vmem:[#allocation3 + $0xc4] sm:$0xf] }
 0xa51   :  { %3472 = vmatpush.bf16.msrb.mxu2 %v5428_v49  ;;  %v6032_v49 = vld [vmem:[#allocation3 + $0x64] sm:$0xf0]  ;;  %v5673_v35 = vor.u32 %v6064_v33, %v5672_v30  ;;  %v5602_v30 = vld [vmem:[#allocation3 + $0xd8] sm:$0xf0]  ;;  %v5632_v33 = vld [vmem:[#allocation3 + $0x110] sm:$0xf] }
 0xa52   :  { %3434 = vmatpush.bf16.msrb.mxu1 %v5028_v58  ;;  %v5545_v27 = vor.u32 %v6032_v49, %v5544_v47  ;;  %v6030_v58 = vld [vmem:[#allocation3 + $0x54] sm:$0xf0]  ;;  %v3481_v47 = vmul.f32 0.01, %v7428_v61 }
 0xa53   :  { %3447 = vmatpush.bf16.msrb.mxu3 %v5156_v59  ;;  %v6046_v59 = vld [vmem:[#allocation3 + $0xd4] sm:$0xf0] }
 0xa54   :  { %3460 = vmatpush.bf16.msrb.mxu0 %v5284_v39  ;;  %v5537_v39 = vor.u32 %v6030_v58, %v5536_v54  ;;  %v5601_v62 = vor.u32 %v6046_v59, %v5600_v31  ;;  %v5560_v54 = vld [vmem:[#allocation3 + $0x80] sm:$0xf]  ;;  %v6036_v58 = vld [vmem:[#allocation3 + $0x84] sm:$0xf0]  ;;  %v5554_v59 = vld [vmem:[#allocation3 + $0x78] sm:$0xf0] }
 0xa55   :  { %3473 = vmatpush.bf16.msrb.mxu2 %v5412_v4  ;;  %v6044_v4 = vld [vmem:[#allocation3 + $0xc4] sm:$0xf0] }
 0xa56   :  { %3435 = vmatpush.bf16.msrb.mxu1 %v5012_v12  ;;  %v5680_v12 = vld [vmem:[#allocation3 + $0x170] sm:$0xf] }
 0xa57   :  { %3448 = vmatpush.bf16.msrb.mxu3 %v5140_v20  ;;  %v5681_v17 = vor.u32 %v6066_v55, %v5680_v12  ;;  %v5521_v20 = vor.u32 %v6026_v8, %v5520_v36  ;;  %v6031_v8 = vld [vmem:[#allocation3 + $0x64] sm:$0xf]  ;;  %v5610_v55 = vld [vmem:[#allocation3 + $0xe8] sm:$0xf0] }
 0xa58   :  { %3461 = vmatpush.bf16.msrb.mxu0 %v5268_v22  ;;  %v6047_v12 = vld [vmem:[#allocation3 + $0xe4] sm:$0xf] }
 0xa59   :  { %3474 = vmatpush.bf16.msrb.mxu2 %v5396_v56  ;;  %v6040_v56 = vld [vmem:[#allocation3 + $0xa4] sm:$0xf0]  ;;  %v5613_v24 = vor.u32 %v6047_v12, %v5610_v55  ;;  %v6061_v12 = vld [vmem:[#allocation3 + $0x154] sm:$0xf]  ;;  %v5666_v55 = vld [vmem:[#allocation3 + $0x158] sm:$0xf0] }
 0xa5a   :  { %3436 = vmatpush.bf16.msrb.mxu1 %v4996_v34  ;;  %v3230_v5 = vpop.f32.mrf.mxu1  ;;  %v5577_v34 = vor.u32 %v6040_v56, %v5576_v57  ;;  %v6029_v57 = vld [vmem:[#allocation3 + $0x54] sm:$0xf] }
 0xa5b   :  { %3449 = vmatpush.bf16.msrb.mxu3 %v5124_v44  ;;  %v6045_v56 = vld [vmem:[#allocation3 + $0xd4] sm:$0xf] }
 0xa5c   :  { %3462 = vmatpush.bf16.msrb.mxu0 %v5252_v45  ;;  %v3256_v10 = vpop.f32.mrf.mxu0 }
 0xa5d   :  { %3475 = vmatpush.bf16.msrb.mxu2 %v5380_v21  ;;  %3437 = vmatmul.bf16.vlgmr.msrb.gmra.mxu1 %v7396_v13  ;;  %v3218_v13 = vadd.f32 %v7440_v53, %v3205_v37  ;;  %v5585_v53 = vor.u32 %v6042_v16, %v5584_v9  ;;  %v6038_v21 = vld [vmem:[#allocation3 + $0x94] sm:$0xf0]  ;;  %v6033_v37 = vld [vmem:[#allocation3 + $0x74] sm:$0xf] }
 0xa5e   :  { %3884 = vmatpush.bf16.msra.mxu1 %v5553_v46  ;;  %3450 = vmatmul.bf16.vlgmr.msrb.gmra.mxu3 %v7394_v11  ;;  %v5529_v11 = vor.u32 %v6028_v0, %v5528_v63  ;;  %v5664_v46 = vld [vmem:[#allocation3 + $0x150] sm:$0xf]  ;;  %v6060_v63 = vld [vmem:[#allocation3 + $0x144] sm:$0xf0]  ;;  %v6049_v0 = vld [vmem:[#allocation3 + $0xf4] sm:$0xf]  ;;  %v5557_v36 = vor.u32 %v6033_v37, %v5554_v59 }
 0xa5f   :  { %3897 = vmatpush.bf16.msra.mxu3 %v5617_v15  ;;  %3463 = vmatmul.bf16.vlgmr.msrb.gmra.mxu0 %v7400_v18  ;;  %v5593_v18 = vor.u32 %v6044_v4, %v5592_v3  ;;  %v6062_v15 = vld [vmem:[#allocation3 + $0x154] sm:$0xf0]  ;;  %v6023_v59 = vld [vmem:[#allocation3 + $0x24] sm:$0xf] }
 0xa60   :  { %3476 = vmatmul.bf16.vlgmr.msrb.gmra.mxu2 %v7398_v14  ;;  %v3231_v14 = vadd.f32 %v3230_v5, %v3218_v13  ;;  %3910 = vmatpush.bf16.msra.mxu0 %v5681_v17  ;;  %v5665_v49 = vor.u32 %v6062_v15, %v5664_v46  ;;  %v5618_v13 = vld [vmem:[#allocation3 + $0xf8] sm:$0xf0]  ;;  %v3485_v5 = vmax.f32 %v7428_v61, %v3481_v47  ;;  %v6058_v16 = vld [vmem:[#allocation3 + $0x134] sm:$0xf0]  ;;  %v6065_v46 = vld [vmem:[#allocation3 + $0x174] sm:$0xf] }
 0xa61   :  { %v3243_v22 = vpop.f32.mrf.mxu3  ;;  %v5621_v9 = vor.u32 %v6049_v0, %v5618_v13  ;;  %v5682_v15 = vld [vmem:[#allocation3 + $0x178] sm:$0xf0]  ;;  %v6063_v13 = vld [vmem:[#allocation3 + $0x164] sm:$0xf] }
 0xa62   :  { %3885 = vmatpush.bf16.msra.mxu1 %v5545_v27  ;;  %v3244_v60 = vadd.f32 %v3243_v22, %v3231_v14  ;;  %v3232_v41 = vpop.f32.mrf.mxu1  ;;  %v6020_v27 = vld [vmem:[#allocation3 + $0x4] sm:$0xf0]  ;;  %v5648_v14 = vld [vmem:[#allocation3 + $0x130] sm:$0xf]  ;;  %v5640_v22 = vld [vmem:[#allocation3 + $0x120] sm:$0xf] }
 0xa63   :  { %3898 = vmatpush.bf16.msra.mxu3 %v5609_v1  ;;  %v3269_v29 = vpop.f32.mrf.mxu2  ;;  %v5569_v1 = vor.u32 %v6038_v21, %v5568_v43  ;;  %v5649_v17 = vor.u32 %v6058_v16, %v5648_v14  ;;  %v6027_v41 = vld [vmem:[#allocation3 + $0x44] sm:$0xf]  ;;  %v5594_v43 = vld [vmem:[#allocation3 + $0xc8] sm:$0xf0]  ;;  %v5570_v14 = vld [vmem:[#allocation3 + $0x98] sm:$0xf0] }
 0xa64   :  { %v3257_v38 = vadd.f32 %v3256_v10, %v3244_v60  ;;  %v3258_v44 = vpop.f32.mrf.mxu0  ;;  %3911 = vmatpush.bf16.msra.mxu0 %v5673_v35  ;;  %v5546_v10 = vld [vmem:[#allocation3 + $0x68] sm:$0xf0]  ;;  %v5538_v60 = vld [vmem:[#allocation3 + $0x58] sm:$0xf0]  ;;  %v6054_v35 = vld [vmem:[#allocation3 + $0x114] sm:$0xf0]  ;;  %v5597_v47 = vor.u32 %v6043_v7, %v5594_v43 }
 0xa65   :  { %v5549_v61 = vor.u32 %v6031_v8, %v5546_v10  ;;  %v5633_v42 = vor.u32 %v6054_v35, %v5632_v33  ;;  %v5624_v44 = vld [vmem:[#allocation3 + $0x100] sm:$0xf]  ;;  %v5506_v8 = vld [vmem:[#allocation3 + $0x18] sm:$0xf0]  ;;  %v6059_v33 = vld [vmem:[#allocation3 + $0x144] sm:$0xf] }
 0xa66   :  { %3886 = vmatpush.bf16.msra.mxu1 %v5537_v39  ;;  %v3270_v45 = vadd.f32 %v3269_v29, %v3257_v38  ;;  %v5641_v29 = vor.u32 %v6056_v23, %v5640_v22  ;;  %v5541_v38 = vor.u32 %v6029_v57, %v5538_v60  ;;  %v7464_v22 = vld [vmem:[%s7766_s9 + $0x2] ss:$8 sm:$0xf]  ;;  %v6019_v57 = vld [vmem:[#allocation3 + $0x4] sm:$0xf] }
 0xa67   :  { %3899 = vmatpush.bf16.msra.mxu3 %v5601_v62  ;;  %v5656_v62 = vld [vmem:[#allocation3 + $0x140] sm:$0xf]  ;;  %v1779_v23 = vperm.slane %v7464_v22, 2  ;;  %v5498_v60 = vld [vmem:[#allocation3 + $0x8] sm:$0xf0] }
 0xa68   :  { %v3482_v50 = vmul.f32 0.01, %v3270_v45  ;;  %3912 = vmatpush.bf16.msra.mxu0 %v5665_v49  ;;  %v5657_v3 = vor.u32 %v6060_v63, %v5656_v62  ;;  %v6025_v49 = vld [vmem:[#allocation3 + $0x34] sm:$0xf]  ;;  %v6039_v62 = vld [vmem:[#allocation3 + $0xa4] sm:$0xf] }
 0xa69   :  { %v3245_v31 = vpop.f32.mrf.mxu3  ;;  %v5578_v63 = vld [vmem:[#allocation3 + $0xa8] sm:$0xf0]  ;;  %v5650_v43 = vld [vmem:[#allocation3 + $0x138] sm:$0xf0] }
 0xa6a   :  { %3887 = vmatpush.bf16.msra.mxu1 %v5529_v11  ;;  %v3486_v4 = vmax.f32 %v3270_v45, %v3482_v50  ;;  %v5497_v11 = vor.u32 %v6020_v27, %v5496_v52  ;;  %v6052_v45 = vld [vmem:[#allocation3 + $0x104] sm:$0xf0]  ;;  %v5522_v50 = vld [vmem:[#allocation3 + $0x38] sm:$0xf0]  ;;  %v6041_v27 = vld [vmem:[#allocation3 + $0xb4] sm:$0xf] }
 0xa6b   :  { %3900 = vmatpush.bf16.msra.mxu3 %v5593_v18  ;;  %v3271_v39 = vpop.f32.mrf.mxu2  ;;  %v5561_v18 = vor.u32 %v6036_v58, %v5560_v54  ;;  %v5625_v52 = vor.u32 %v6052_v45, %v5624_v44  ;;  %v5685_v58 = vor.u32 %v6065_v46, %v5682_v15  ;;  %v5525_v37 = vor.u32 %v6025_v49, %v5522_v50  ;;  %v5658_v35 = vld [vmem:[#allocation3 + $0x148] sm:$0xf0]  ;;  %v6055_v45 = vld [vmem:[#allocation3 + $0x124] sm:$0xf]  ;;  %v5744_v46 = vld [vmem:[#allocation3 + $0x1f0] sm:$0xf] }
 0xa6c   :  { %3913 = vmatpush.bf16.msra.mxu0 %v5657_v3  ;;  %v5514_v39 = vld [vmem:[#allocation3 + $0x28] sm:$0xf0]  ;;  %v6082_v15 = vld [vmem:[#allocation3 + $0x1f4] sm:$0xf0] }
 0xa6d   :  { %v5674_v3 = vld [vmem:[#allocation3 + $0x168] sm:$0xf0]  ;;  %v5745_v49 = vor.u32 %v6082_v15, %v5744_v46 }
 0xa6e   :  { %3888 = vmatpush.bf16.msra.mxu1 %v5521_v20  ;;  %v7453_v20 = vpack.c.bf16 %v3486_v4, %v3486_v4  ;;  %v5738_v46 = vld [vmem:[#allocation3 + $0x1e8] sm:$0xf0] }
 0xa6f   :  { %3901 = vmatpush.bf16.msra.mxu3 %v5585_v53  ;;  %v7455_v53 = vpack.c.bf16 %v3485_v5, %v3485_v5  ;;  %v5517_v5 = vor.u32 %v6023_v59, %v5514_v39  ;;  %3923 = vmatpush.bf16.msra.mxu2 %v5745_v49 }
 0xa70   :  { %3914 = vmatpush.bf16.msra.mxu0 %v5649_v17  ;;  %v5669_v17 = vor.u32 %v6061_v12, %v5666_v55  ;;  %v5712_v12 = vld [vmem:[#allocation3 + $0x1b0] sm:$0xf]  ;;  %v6074_v55 = vld [vmem:[#allocation3 + $0x1b4] sm:$0xf0] }
 0xa72   :  { %3889 = vmatpush.bf16.msra.mxu1 %v5513_v40  ;;  %v5605_v40 = vor.u32 %v6045_v56, %v5602_v30  ;;  %v6035_v56 = vld [vmem:[#allocation3 + $0x84] sm:$0xf] }
 0xa73   :  { %3902 = vmatpush.bf16.msra.mxu3 %v5577_v34  ;;  %v5530_v34 = vld [vmem:[#allocation3 + $0x48] sm:$0xf0] }
 0xa74   :  { %3915 = vmatpush.bf16.msra.mxu0 %v5641_v29  ;;  %v5533_v21 = vor.u32 %v6027_v41, %v5530_v34  ;;  %v5562_v29 = vld [vmem:[#allocation3 + $0x88] sm:$0xf0]  ;;  %v5501_v41 = vor.u32 %v6019_v57, %v5498_v60  ;;  %v5704_v60 = vld [vmem:[#allocation3 + $0x1a0] sm:$0xf] }
 0xa75   :  { %v5565_v7 = vor.u32 %v6035_v56, %v5562_v29  ;;  %v6072_v56 = vld [vmem:[#allocation3 + $0x1a4] sm:$0xf0] }
 0xa76   :  { %3890 = vmatpush.bf16.msra.mxu1 %v5505_v51 }
 0xa77   :  { %3903 = vmatpush.bf16.msra.mxu3 %v5569_v1  ;;  %v5586_v1 = vld [vmem:[#allocation3 + $0xb8] sm:$0xf0] }
 0xa78   :  { %3916 = vmatpush.bf16.msra.mxu0 %v5633_v42  ;;  %v5589_v31 = vor.u32 %v6041_v27, %v5586_v1  ;;  %v6057_v42 = vld [vmem:[#allocation3 + $0x134] sm:$0xf]  ;;  %v5634_v27 = vld [vmem:[#allocation3 + $0x118] sm:$0xf0] }
 0xa79   :  { %v5653_v44 = vor.u32 %v6057_v42, %v5650_v43  ;;  %v5746_v42 = vld [vmem:[#allocation3 + $0x1f8] sm:$0xf0] }
 0xa7a   :  { %3891 = vmatpush.bf16.msra.mxu1 %v5497_v11  ;;  %v3282_v51 = vpop.f32.mrf.mxu1  ;;  %v5677_v11 = vor.u32 %v6063_v13, %v5674_v3  ;;  %v6080_v13 = vld [vmem:[#allocation3 + $0x1e4] sm:$0xf0]  ;;  %v5728_v3 = vld [vmem:[#allocation3 + $0x1d0] sm:$0xf] }
 0xa7b   :  { %3904 = vmatpush.bf16.msra.mxu3 %v5561_v18  ;;  %v5581_v18 = vor.u32 %v6039_v62, %v5578_v63  ;;  %v3283_v34 = vadd.f32 %v3282_v51, %v1779_v23  ;;  %v5713_v23 = vor.u32 %v6074_v55, %v5712_v12 }
 0xa7c   :  { %v7459_v54 = vpop.f32.mrf.mxu0  ;;  %3917 = vmatpush.bf16.msra.mxu0 %v5625_v52  ;;  %v6053_v52 = vld [vmem:[#allocation3 + $0x114] sm:$0xf] }
 0xa7d   :  { %3892 = vmatmul.bf16.vlgmr.msra.gmra.mxu1 %v7455_v53  ;;  %v5637_v1 = vor.u32 %v6053_v52, %v5634_v27  ;;  %v5730_v52 = vld [vmem:[#allocation3 + $0x1d8] sm:$0xf0] }
 0xa7e   :  { %3936 = vmatpush.bf16.msrb.mxu1 %v5557_v36  ;;  %3905 = vmatmul.bf16.vlgmr.msra.gmra.mxu3 %v7453_v20  ;;  %v6021_v36 = vld [vmem:[#allocation3 + $0x14] sm:$0xf] }
 0xa7f   :  { %3949 = vmatpush.bf16.msrb.mxu3 %v5621_v9  ;;  %v6037_v9 = vld [vmem:[#allocation3 + $0x94] sm:$0xf] }
 0xa80   :  { %3962 = vmatpush.bf16.msrb.mxu0 %v5685_v58  ;;  %v6051_v58 = vld [vmem:[#allocation3 + $0x104] sm:$0xf] }
 0xa81   :  { %v3295_v0 = vpop.f32.mrf.mxu3 }
 0xa82   :  { %3937 = vmatpush.bf16.msrb.mxu1 %v5549_v61  ;;  %v3284_v10 = vpop.f32.mrf.mxu1  ;;  %v5509_v61 = vor.u32 %v6021_v36, %v5506_v8 }
 0xa83   :  { %3950 = vmatpush.bf16.msrb.mxu3 %v5613_v24  ;;  %v3321_v4 = vpop.f32.mrf.mxu2  ;;  %v5573_v24 = vor.u32 %v6037_v9, %v5570_v14  ;;  %v5720_v9 = vld [vmem:[#allocation3 + $0x1c0] sm:$0xf] }
 0xa84   :  { %v3310_v16 = vpop.f32.mrf.mxu0  ;;  %3963 = vmatpush.bf16.msrb.mxu0 %v5677_v11  ;;  %v6078_v11 = vld [vmem:[#allocation3 + $0x1d4] sm:$0xf0] }
 0xa86   :  { %3938 = vmatpush.bf16.msrb.mxu1 %v5541_v38 }
 0xa87   :  { %3951 = vmatpush.bf16.msrb.mxu3 %v5605_v40  ;;  %v5661_v40 = vor.u32 %v6059_v33, %v5658_v35  ;;  %v5696_v33 = vld [vmem:[#allocation3 + $0x190] sm:$0xf]  ;;  %v6070_v35 = vld [vmem:[#allocation3 + $0x194] sm:$0xf0] }
 0xa88   :  { %3964 = vmatpush.bf16.msrb.mxu0 %v5669_v17 }
 0xa89   :  { %v3297_v30 = vpop.f32.mrf.mxu3 }
 0xa8a   :  { %3939 = vmatpush.bf16.msrb.mxu1 %v5533_v21  ;;  %v5642_v21 = vld [vmem:[#allocation3 + $0x128] sm:$0xf0]  ;;  %v5705_v30 = vor.u32 %v6072_v56, %v5704_v60 }
 0xa8b   :  { %3952 = vmatpush.bf16.msrb.mxu3 %v5597_v47  ;;  %v3323_v38 = vpop.f32.mrf.mxu2  ;;  %v3296_v47 = vadd.f32 %v3295_v0, %v3283_v34  ;;  %v5645_v50 = vor.u32 %v6055_v45, %v5642_v21  ;;  %v5736_v0 = vld [vmem:[#allocation3 + $0x1e0] sm:$0xf]  ;;  %v6081_v34 = vld [vmem:[#allocation3 + $0x1f4] sm:$0xf]  ;;  %v6079_v21 = vld [vmem:[#allocation3 + $0x1e4] sm:$0xf] }
 0xa8c   :  { %3965 = vmatpush.bf16.msrb.mxu0 %v5661_v40  ;;  %v5697_v38 = vor.u32 %v6070_v35, %v5696_v33  ;;  %v5688_v40 = vld [vmem:[#allocation3 + $0x180] sm:$0xf]  ;;  %v5749_v43 = vor.u32 %v6081_v34, %v5746_v42  ;;  %v5741_v15 = vor.u32 %v6079_v21, %v5738_v46 }
 0xa8d   :  { %v3309_v51 = vadd.f32 %v7459_v54, %v3296_v47 }
 0xa8e   :  { %3940 = vmatpush.bf16.msrb.mxu1 %v5525_v37  ;;  %v5626_v37 = vld [vmem:[#allocation3 + $0x108] sm:$0xf0] }
 0xa8f   :  { %3953 = vmatpush.bf16.msrb.mxu3 %v5589_v31  ;;  %v3322_v31 = vadd.f32 %v3321_v4, %v3309_v51  ;;  %v5629_v59 = vor.u32 %v6051_v58, %v5626_v37  ;;  %v6076_v4 = vld [vmem:[#allocation3 + $0x1c4] sm:$0xf0]  ;;  %v6075_v58 = vld [vmem:[#allocation3 + $0x1c4] sm:$0xf]  ;;  %v5722_v37 = vld [vmem:[#allocation3 + $0x1c8] sm:$0xf0] }
 0xa90   :  { %3966 = vmatpush.bf16.msrb.mxu0 %v5653_v44  ;;  %v5721_v14 = vor.u32 %v6076_v4, %v5720_v9  ;;  %v5690_v9 = vld [vmem:[#allocation3 + $0x188] sm:$0xf0] }
 0xa92   :  { %3941 = vmatpush.bf16.msrb.mxu1 %v5517_v5 }
 0xa93   :  { %3954 = vmatpush.bf16.msrb.mxu3 %v5581_v18 }
 0xa94   :  { %3967 = vmatpush.bf16.msrb.mxu0 %v5645_v50  ;;  %v6077_v50 = vld [vmem:[#allocation3 + $0x1d4] sm:$0xf] }
 0xa95   :  { %v5733_v51 = vor.u32 %v6077_v50, %v5730_v52  ;;  %v4007_v52 = vld [vmem:[%s7765_s8 + $0x280] sm:$0xff] }
 0xa96   :  { %3942 = vmatpush.bf16.msrb.mxu1 %v5509_v61 }
 0xa97   :  { %3955 = vmatpush.bf16.msrb.mxu3 %v5573_v24 }
 0xa98   :  { %3968 = vmatpush.bf16.msrb.mxu0 %v5637_v1 }
 0xa9a   :  { %3943 = vmatpush.bf16.msrb.mxu1 %v5501_v41  ;;  %v3334_v39 = vpop.f32.mrf.mxu1  ;;  %v6068_v41 = vld [vmem:[#allocation3 + $0x184] sm:$0xf0] }
 0xa9b   :  { %3956 = vmatpush.bf16.msrb.mxu3 %v5565_v7  ;;  %v3335_v63 = vadd.f32 %v3334_v39, %v3322_v31  ;;  %v5689_v7 = vor.u32 %v6068_v41, %v5688_v40  ;;  %v5725_v31 = vor.u32 %v6075_v58, %v5722_v37  ;;  %v4003_v58 = vld [vmem:[%s7765_s8 + $0x240] sm:$0xff] }
 0xa9c   :  { %v3360_v62 = vpop.f32.mrf.mxu0  ;;  %3969 = vmatpush.bf16.msrb.mxu0 %v5629_v59 }
 0xa9d   :  { %3944 = vmatmul.bf16.vlgmr.msrb.gmra.mxu1 %v7455_v53  ;;  %v5737_v53 = vor.u32 %v6080_v13, %v5736_v0  ;;  %v1780_v0 = vperm.slane %v7464_v22, 3 }
 0xa9e   :  { %3957 = vmatmul.bf16.vlgmr.msrb.gmra.mxu3 %v7453_v20  ;;  %v5729_v20 = vor.u32 %v6078_v11, %v5728_v3  ;;  %v5706_v3 = vld [vmem:[#allocation3 + $0x1a8] sm:$0xf0] }
 0xa9f   :  { %3924 = vmatpush.bf16.msra.mxu2 %v5737_v53  ;;  %v6071_v53 = vld [vmem:[#allocation3 + $0x1a4] sm:$0xf]  ;;  %4045 = vmatpush.msra.mxu3 %v4007_v52 }
 0xaa0   :  { %v5709_v11 = vor.u32 %v6071_v53, %v5706_v3  ;;  %v3997_v53 = vld [vmem:[%s7765_s8 + $0x1e0] sm:$0xff]  ;;  %v3996_v3 = vld [vmem:[%s7765_s8 + $0x1d0] sm:$0xff]  ;;  %v4196_v52 = vld [vmem:[%s7765_s8 + $0x3c8] sm:$0xff] }
 0xaa1   :  { %v3347_v5 = vpop.f32.mrf.mxu3 }
 0xaa2   :  { %v3348_v54 = vadd.f32 %v3347_v5, %v3335_v63  ;;  %v3336_v8 = vpop.f32.mrf.mxu1  ;;  %v5714_v63 = vld [vmem:[#allocation3 + $0x1b8] sm:$0xf0]  ;;  %v6069_v5 = vld [vmem:[#allocation3 + $0x194] sm:$0xf] }
 0xaa3   :  { %v3373_v18 = vpop.f32.mrf.mxu2  ;;  %3925 = vmatpush.bf16.msra.mxu2 %v5729_v20  ;;  %v5698_v20 = vld [vmem:[#allocation3 + $0x198] sm:$0xf0]  ;;  %v6067_v8 = vld [vmem:[#allocation3 + $0x184] sm:$0xf] }
 0xaa4   :  { %v3361_v36 = vadd.f32 %v3360_v62, %v3348_v54  ;;  %v3362_v10 = vpop.f32.mrf.mxu0  ;;  %v6073_v62 = vld [vmem:[#allocation3 + $0x1b4] sm:$0xf] }
 0xaa5   :  { %v5717_v13 = vor.u32 %v6073_v62, %v5714_v63  ;;  %v4000_v62 = vld [vmem:[%s7765_s8 + $0x210] sm:$0xff]  ;;  %v3999_v63 = vld [vmem:[%s7765_s8 + $0x200] sm:$0xff] }
 0xaa6   :  { %v3374_v16 = vadd.f32 %v3373_v18, %v3361_v36  ;;  %v5701_v18 = vor.u32 %v6069_v5, %v5698_v20 }
 0xaa7   :  { %3926 = vmatpush.bf16.msra.mxu2 %v5721_v14  ;;  %v5693_v14 = vor.u32 %v6067_v8, %v5690_v9  ;;  %v4086_v8 = vld [vmem:[%s7765_s8 + $0x340] sm:$0xff] }
 0xaa8   :  { %v3483_v17 = vmul.f32 0.01, %v3374_v16  ;;  %v4017_v9 = vld [vmem:[%s7765_s8 + $0x320] sm:$0xff] }
 0xaa9   :  { %v3349_v61 = vpop.f32.mrf.mxu3  ;;  %4035 = vmatpush.msra.mxu1 %v4017_v9 }
 0xaaa   :  { %v3487_v24 = vmax.f32 %v3374_v16, %v3483_v17 }
 0xaab   :  { %v3375_v57 = vpop.f32.mrf.mxu2  ;;  %3927 = vmatpush.bf16.msra.mxu2 %v5713_v23 }
 0xaac   :  { %v3491_v29 = vpack.c.bf16 %v3487_v24, %v3487_v24 }
 0xaae   :  { %3918 = vmatmul.bf16.vlgmr.msra.gmra.mxu0 %v3491_v29 }
 0xaaf   :  { %3928 = vmatpush.bf16.msra.mxu2 %v5705_v30 }
 0xab3   :  { %3929 = vmatpush.bf16.msra.mxu2 %v5697_v38  ;;  %v5493_v38 = vld [vmem:[%s7766_s9 + $0x3] ss:$8 sm:$0x3] }
 0xab4   :  { %v3560_v41 = vperm.slane %v5493_v38, 0  ;;  %v3561_v21 = vperm.slane %v5493_v38, 1 }
 0xab7   :  { %3930 = vmatpush.bf16.msra.mxu2 %v5689_v7 }
 0xaba   :  { %v3386_v44 = vpop.f32.mrf.mxu1 }
 0xabb   :  { %3975 = vmatpush.bf16.msrb.mxu2 %v5749_v43  ;;  %v3387_v54 = vadd.f32 %v3386_v44, %v1780_v0 }
 0xabc   :  { %v3412_v45 = vpop.f32.mrf.mxu0 }
 0xabe   :  { %3970 = vmatmul.bf16.vlgmr.msrb.gmra.mxu0 %v3491_v29 }
 0xabf   :  { %3976 = vmatpush.bf16.msrb.mxu2 %v5741_v15 }
 0xac1   :  { %v3399_v47 = vpop.f32.mrf.mxu3 }
 0xac2   :  { %v3388_v27 = vpop.f32.mrf.mxu1  ;;  %v3400_v36 = vadd.f32 %v3399_v47, %v3387_v54  ;;  %v3995_v54 = vld [vmem:[%s7765_s8 + $0x1c0] sm:$0xff] }
 0xac3   :  { %v3425_v49 = vpop.f32.mrf.mxu2  ;;  %3977 = vmatpush.bf16.msrb.mxu2 %v5733_v51  ;;  %v4006_v27 = vld [vmem:[%s7765_s8 + $0x270] sm:$0xff]  ;;  %v4005_v51 = vld [vmem:[%s7765_s8 + $0x260] sm:$0xff] }
 0xac4   :  { %v3414_v1 = vpop.f32.mrf.mxu0  ;;  %v3413_v4 = vadd.f32 %v3412_v45, %v3400_v36  ;;  %4046 = vmatpush.msra.mxu3 %v4006_v27  ;;  %v3993_v36 = vld [vmem:[%s7765_s8 + $0x1a0] sm:$0xff]  ;;  %v4193_v27 = vld [vmem:[%s7765_s8 + $0x3b0] sm:$0xff] }
 0xac5   :  { %v4004_v1 = vld [vmem:[%s7765_s8 + $0x250] sm:$0xff] }
 0xac6   :  { %v3426_v22 = vadd.f32 %v3425_v49, %v3413_v4  ;;  %4047 = vmatpush.msra.mxu3 %v4005_v51  ;;  %v3992_v4 = vld [vmem:[%s7765_s8 + $0x190] sm:$0xff]  ;;  %v4194_v51 = vld [vmem:[%s7765_s8 + $0x3b8] sm:$0xff] }
 0xac7   :  { %3978 = vmatpush.bf16.msrb.mxu2 %v5725_v31  ;;  %v4002_v31 = vld [vmem:[%s7765_s8 + $0x230] sm:$0xff] }
 0xac8   :  { %4048 = vmatpush.msra.mxu3 %v4004_v1  ;;  %v4278_v1 = vld [vmem:[%s7765_s8 + $0x520] sm:$0xff] }
 0xac9   :  { %v3401_v59 = vpop.f32.mrf.mxu3 }
 0xaca   :  { %4049 = vmatpush.msra.mxu3 %v4003_v58  ;;  %v4277_v58 = vld [vmem:[%s7765_s8 + $0x510] sm:$0xff] }
 0xacb   :  { %v3427_v39 = vpop.f32.mrf.mxu2  ;;  %3979 = vmatpush.bf16.msrb.mxu2 %v5717_v13  ;;  %v3998_v13 = vld [vmem:[%s7765_s8 + $0x1f0] sm:$0xff] }
 0xacc   :  { %v4001_v39 = vld [vmem:[%s7765_s8 + $0x220] sm:$0xff]  ;;  %4050 = vmatpush.msra.mxu3 %v4002_v31 }
 0xacd   :  { %v4286_v31 = vld [vmem:[%s7765_s8 + $0x5a0] sm:$0xff] }
 0xace   :  { %4051 = vmatpush.msra.mxu3 %v4001_v39  ;;  %v4275_v39 = vld [vmem:[%s7765_s8 + $0x4f0] sm:$0xff] }
 0xacf   :  { %3980 = vmatpush.bf16.msrb.mxu2 %v5709_v11 }
 0xad0   :  { %4052 = vmatpush.msra.mxu3 %v4000_v62  ;;  %v4284_v62 = vld [vmem:[%s7765_s8 + $0x580] sm:$0xff] }
 0xad2   :  { %4053 = vmatpush.msra.mxu3 %v3999_v63  ;;  %v4274_v63 = vld [vmem:[%s7765_s8 + $0x4e0] sm:$0xff] }
 0xad3   :  { %3981 = vmatpush.bf16.msrb.mxu2 %v5701_v18  ;;  %v3994_v18 = vld [vmem:[%s7765_s8 + $0x1b0] sm:$0xff] }
 0xad4   :  { %4054 = vmatpush.msra.mxu3 %v3998_v13  ;;  %v4273_v13 = vld [vmem:[%s7765_s8 + $0x4d0] sm:$0xff] }
 0xad6   :  { %4055 = vmatpush.msra.mxu3 %v3997_v53 }
 0xad7   :  { %3982 = vmatpush.bf16.msrb.mxu2 %v5693_v14  ;;  %v4014_v14 = vld [vmem:[%s7765_s8 + $0x2f0] sm:$0xff] }
 0xad8   :  { %4056 = vmatpush.msra.mxu3 %v3996_v3 }
 0xada   :  { %v3438_v10 = vpop.f32.mrf.mxu1  ;;  %4057 = vmatpush.msra.mxu3 %v3995_v54  ;;  %v4271_v54 = vld [vmem:[%s7765_s8 + $0x4b0] sm:$0xff] }
 0xadb   :  { %v3439_v12 = vadd.f32 %v3438_v10, %v3426_v22  ;;  %v4015_v10 = vld [vmem:[%s7765_s8 + $0x300] sm:$0xff] }
 0xadc   :  { %v3464_v16 = vpop.f32.mrf.mxu0  ;;  %4058 = vmatpush.msra.mxu3 %v3994_v18  ;;  %4073 = vmatpush.msra.mxu0 %v4015_v10  ;;  %v4013_v22 = vld [vmem:[%s7765_s8 + $0x2e0] sm:$0xff] }
 0xade   :  { %4059 = vmatpush.msra.mxu3 %v3993_v36  ;;  %4074 = vmatpush.msra.mxu0 %v4014_v14  ;;  %v4268_v14 = vld [vmem:[%s7765_s8 + $0x480] sm:$0xff] }
 0xae0   :  { %4060 = vmatpush.msra.mxu3 %v3992_v4  ;;  %4075 = vmatpush.msra.mxu0 %v4013_v22  ;;  %v4269_v4 = vld [vmem:[%s7765_s8 + $0x490] sm:$0xff] }
 0xae1   :  { %v3451_v55 = vpop.f32.mrf.mxu3  ;;  %v4267_v22 = vld [vmem:[%s7765_s8 + $0x470] sm:$0xff] }
 0xae2   :  { %v3452_v17 = vadd.f32 %v3451_v55, %v3439_v12  ;;  %v3440_v23 = vpop.f32.mrf.mxu1  ;;  %v4016_v12 = vld [vmem:[%s7765_s8 + $0x310] sm:$0xff]  ;;  %4319 = vmatpush.msrb.mxu3 %v4286_v31 }
 0xae3   :  { %v3477_v61 = vpop.f32.mrf.mxu2  ;;  %4036 = vmatpush.msra.mxu1 %v4016_v12  ;;  %v4012_v55 = vld [vmem:[%s7765_s8 + $0x2d0] sm:$0xff]  ;;  %v4138_v23 = vld [vmem:[%s7765_s8 + $0x380] sm:$0xff] }
 0xae4   :  { %v3466_v24 = vpop.f32.mrf.mxu0  ;;  %v3465_v57 = vadd.f32 %v3464_v16, %v3452_v17  ;;  %v4085_v16 = vld [vmem:[%s7765_s8 + $0x330] sm:$0xff]  ;;  %5750 = vmatmul.msk.f32.vlgmr.msra.gmra.mxu1 %vm736_vm1, %v761_v28  ;;  %v4011_v17 = vld [vmem:[%s7765_s8 + $0x2c0] sm:$0xff]  ;;  %4076 = vmatpush.msra.mxu0 %v4012_v55 }
 0xae5   :  { %v4164_v28 = vld [vmem:[%s7765_s8 + $0x3a0] sm:$0xff]  ;;  %v4163_v24 = vld [vmem:[%s7765_s8 + $0x390] sm:$0xff] }
 0xae6   :  { %v3478_v60 = vadd.f32 %v3477_v61, %v3465_v57  ;;  %4077 = vmatpush.msra.mxu0 %v4011_v17  ;;  %v4112_v61 = vld [vmem:[%s7765_s8 + $0x360] sm:$0xff]  ;;  %v4111_v57 = vld [vmem:[%s7765_s8 + $0x350] sm:$0xff] }
 0xae7   :  { %4130 = vmatpush.msrb.mxu1 %v4112_v61 }
 0xae8   :  { %v3484_v56 = vmul.f32 0.01, %v3478_v60  ;;  %4078 = vmatpush.msra.mxu0 %v4010_v25  ;;  %v4189_v25 = vld [vmem:[%s7766_s9 + $0x40] ss:$0 sm:$0xff] }
 0xae9   :  { %v3453_v29 = vpop.f32.mrf.mxu3  ;;  %4131 = vmatpush.msrb.mxu1 %v4111_v57  ;;  %v4265_v57 = vld [vmem:[%s7765_s8 + $0x450] sm:$0xff] }
 0xaea   :  { %v3488_v30 = vmax.f32 %v3478_v60, %v3484_v56  ;;  %4079 = vmatpush.msra.mxu0 %v4009_v26  ;;  %v4137_v60 = vld [vmem:[%s7765_s8 + $0x370] sm:$0xff] }
 0xaeb   :  { %v3479_v33 = vpop.f32.mrf.mxu2 }
 0xaec   :  { %v3492_v35 = vpack.c.bf16 %v3488_v30, %v3488_v30  ;;  %5753 = vmatmul.msk.f32.vlgmr.msrb.gmra.mxu1 %vm736_vm1, %v7266_v48  ;;  %v4207_v48 = vld [vmem:[%s7765_s8 + $0x420] sm:$0xff] }
 0xaed   :  { %4227 = vmatpush.msra.mxu1 %v4207_v48 }
 0xaee   :  { %3931 = vmatmul.bf16.vlgmr.msra.gmra.mxu2 %v3492_v35 }
 0xaef   :  { %4104 = vmatpush.msra.mxu2 %v4086_v8  ;;  %v4270_v8 = vld [vmem:[%s7765_s8 + $0x4a0] sm:$0xff] }
 0xaf1   :  { %4105 = vmatpush.msra.mxu2 %v4085_v16 }
 0xafa   :  { %v3893_v40 = vpop.f32.mrf.mxu1 }
 0xafb   :  { %v3894_v34 = vadd.f32 %v3893_v40, %v3560_v41 }
 0xafe   :  { %3983 = vmatmul.bf16.vlgmr.msrb.gmra.mxu2 %v3492_v35 }
 0xaff   :  { %4182 = vmatpush.msrb.mxu2 %v4164_v28 }
 0xb01   :  { %v3906_v7 = vpop.f32.mrf.mxu3  ;;  %4183 = vmatpush.msrb.mxu2 %v4163_v24  ;;  %v4282_v24 = vld [vmem:[%s7765_s8 + $0x560] sm:$0xff] }
 0xb02   :  { %v3907_v42 = vadd.f32 %v3906_v7, %v3894_v34  ;;  %v3895_v43 = vpop.f32.mrf.mxu1 }
 0xb03   :  { %v4206_v43 = vld [vmem:[%s7765_s8 + $0x418] sm:$0xff] }
 0xb09   :  { %v3908_v44 = vpop.f32.mrf.mxu3 }
 0xb0a   :  { %v4204_v44 = vld [vmem:[%s7765_s8 + $0x408] sm:$0xff] }
 0xb0e   :  { %5752 = vmatmul.msk.f32.vlgmr.msra.gmra.mxu2 %vm736_vm1, %v7317_v2  ;;  %v4008_v2 = vld [vmem:[%s7765_s8 + $0x290] sm:$0xff] }
 0xb0f   :  { %4080 = vmatpush.msra.mxu0 %v4008_v2  ;;  %4291 = vmatpush.msra.mxu2 %v4278_v1  ;;  %v4337_v1 = vld [vmem:[%s7766_s9 + $0x43] ss:$0 sm:$0xff] }
 0xb11   :  { %4156 = vmatpush.msrb.mxu0 %v4138_v23  ;;  %4292 = vmatpush.msra.mxu2 %v4277_v58  ;;  %v4266_v23 = vld [vmem:[%s7765_s8 + $0x460] sm:$0xff] }
 0xb13   :  { %4157 = vmatpush.msrb.mxu0 %v4137_v60  ;;  %v4281_v60 = vld [vmem:[%s7765_s8 + $0x550] sm:$0xff] }
 0xb16   :  { %5755 = vmatmul.msk.f32.vlgmr.msrb.gmra.mxu2 %vm736_vm1, %v7357_v32  ;;  %v4208_v32 = vld [vmem:[%s7765_s8 + $0x428] sm:$0xff] }
 0xb1a   :  { %v3945_v45 = vpop.f32.mrf.mxu1 }
 0xb1b   :  { %v3946_v46 = vadd.f32 %v3945_v45, %v3561_v21  ;;  %v4201_v45 = vld [vmem:[%s7765_s8 + $0x3f0] sm:$0xff]  ;;  %v4202_v21 = vld [vmem:[%s7765_s8 + $0x3f8] sm:$0xff] }
 0xb21   :  { %v3958_v15 = vpop.f32.mrf.mxu3 }
 0xb22   :  { %v3959_v47 = vadd.f32 %v3958_v15, %v3946_v46  ;;  %v3947_v49 = vpop.f32.mrf.mxu1  ;;  %v4199_v46 = vld [vmem:[%s7765_s8 + $0x3e0] sm:$0xff]  ;;  %v4200_v15 = vld [vmem:[%s7765_s8 + $0x3e8] sm:$0xff] }
 0xb23   :  { %v4198_v49 = vld [vmem:[%s7765_s8 + $0x3d8] sm:$0xff] }
 0xb29   :  { %v3960_v50 = vpop.f32.mrf.mxu3 }
 0xb2a   :  { %v4195_v50 = vld [vmem:[%s7765_s8 + $0x3c0] sm:$0xff] }
 0xb2b   :  { %v3919_v37 = vpop.f32.mrf.mxu0 }
 0xb2c   :  { %v7492_v59 = vadd.f32 %v3919_v37, %v3907_v42  ;;  %v4205_v42 = vld [vmem:[%s7765_s8 + $0x410] sm:$0xff]  ;;  %v4276_v37 = vld [vmem:[%s7765_s8 + $0x500] sm:$0xff] }
 0xb2d   :  { %4228 = vmatpush.msra.mxu1 %v4205_v42  ;;  %4293 = vmatpush.msra.mxu2 %v4276_v37 }
 0xb2f   :  { %4294 = vmatpush.msra.mxu2 %v4275_v39 }
 0xb31   :  { %4295 = vmatpush.msra.mxu2 %v4274_v63 }
 0xb33   :  { %v3921_v0 = vpop.f32.mrf.mxu0  ;;  %4296 = vmatpush.msra.mxu2 %v4273_v13 }
 0xb34   :  { %v4283_v0 = vld [vmem:[%s7765_s8 + $0x570] sm:$0xff] }
 0xb3b   :  { %v3971_v11 = vpop.f32.mrf.mxu0 }
 0xb3c   :  { %v3972_v5 = vadd.f32 %v3971_v11, %v3959_v47  ;;  %v4197_v47 = vld [vmem:[%s7765_s8 + $0x3d0] sm:$0xff]  ;;  %v4272_v11 = vld [vmem:[%s7765_s8 + $0x4c0] sm:$0xff] }
 0xb3d   :  { %4297 = vmatpush.msra.mxu2 %v4272_v11 }
 0xb3f   :  { %4298 = vmatpush.msra.mxu2 %v4271_v54 }
 0xb41   :  { %4299 = vmatpush.msra.mxu2 %v4270_v8 }
 0xb43   :  { %v3973_v20 = vpop.f32.mrf.mxu0  ;;  %4300 = vmatpush.msra.mxu2 %v4269_v4 }
 0xb45   :  { %4301 = vmatpush.msra.mxu2 %v4268_v14 }
 0xb47   :  { %4302 = vmatpush.msra.mxu2 %v4267_v22 }
 0xb49   :  { %4303 = vmatpush.msra.mxu2 %v4266_v23 }
 0xb4b   :  { %4304 = vmatpush.msra.mxu2 %v4265_v57 }
 0xb61   :  { %v4038_v53 = vpop.f32.mrf.mxu1 }
 0xb69   :  { %v4133_v10 = vpop.f32.mrf.mxu1 }
 0xb71   :  { %v3932_v56 = vpop.f32.mrf.mxu2 }
 0xb72   :  { %v3933_v29 = vadd.f32 %v3932_v56, %v7492_v59  ;;  %v4285_v59 = vld [vmem:[%s7765_s8 + $0x590] sm:$0xff]  ;;  %v4264_v56 = vld [vmem:[%s7765_s8 + $0x440] sm:$0xff] }
 0xb73   :  { %4320 = vmatpush.msrb.mxu3 %v4285_v59  ;;  %4305 = vmatpush.msra.mxu2 %v4264_v56 }
 0xb74   :  { %v3988_v30 = vmul.f32 0.01, %v3933_v29 }
 0xb75   :  { %4321 = vmatpush.msrb.mxu3 %v4284_v62 }
 0xb76   :  { %v3990_v33 = vmax.f32 %v3933_v29, %v3988_v30  ;;  %v4280_v29 = vld [vmem:[%s7765_s8 + $0x540] sm:$0xff]  ;;  %v4263_v30 = vld [vmem:[%s7765_s8 + $0x430] sm:$0xff] }
 0xb77   :  { %4322 = vmatpush.msrb.mxu3 %v4283_v0  ;;  %4306 = vmatpush.msra.mxu2 %v4263_v30 }
 0xb78   :  { %4061 = vmatmul.f32.vlgmr.msra.gmra.mxu3 %v3990_v33  ;;  %v4279_v33 = vld [vmem:[%s7765_s8 + $0x530] sm:$0xff] }
 0xb79   :  { %v3934_v35 = vpop.f32.mrf.mxu2  ;;  %4323 = vmatpush.msrb.mxu3 %v4282_v24 }
 0xb7a   :  { %v5756_v35 = vld [vmem:[%s7766_s9 + $0x41] ss:$8 sm:$0x3] }
 0xb7b   :  { %4324 = vmatpush.msrb.mxu3 %v4281_v60 }
 0xb7d   :  { %4325 = vmatpush.msrb.mxu3 %v4280_v29 }
 0xb7f   :  { %4326 = vmatpush.msrb.mxu3 %v4279_v33 }
 0xb81   :  { %v3984_v38 = vpop.f32.mrf.mxu2 }
 0xb82   :  { %v3985_v40 = vadd.f32 %v3984_v38, %v3972_v5  ;;  %v4212_v38 = vperm.slane %v5756_v35, 0 }
 0xb84   :  { %v3989_v41 = vmul.f32 0.01, %v3985_v40 }
 0xb86   :  { %v3991_v34 = vmax.f32 %v3985_v40, %v3989_v41  ;;  %v4213_v40 = vperm.slane %v5756_v35, 1 }
 0xb88   :  { %5751 = vmatmul.msk.f32.vlgmr.msra.gmra.mxu0 %vm4041_vm0, %v3991_v34 }
 0xb89   :  { %v3986_v7 = vpop.f32.mrf.mxu2  ;;  %4247 = vmatpush.msra.mxu0 %v4208_v32 }
 0xb8b   :  { %4248 = vmatpush.msra.mxu0 %v4206_v43 }
 0xb8d   :  { %4249 = vmatpush.msra.mxu0 %v4204_v44  ;;  %v4336_v44 = vld [vmem:[%s7765_s8 + $0x5e0] sm:$0xff] }
 0xb8f   :  { %4250 = vmatpush.msra.mxu0 %v4202_v21  ;;  %v4334_v21 = vld [vmem:[%s7765_s8 + $0x5c0] sm:$0xff] }
 0xb90   :  { %5754 = vmatmul.msk.f32.vlgmr.msrb.gmra.mxu0 %vm736_vm1, %v7374_v6  ;;  %v4203_v6 = vld [vmem:[%s7765_s8 + $0x400] sm:$0xff]  ;;  %vm4338_vm1 = vcmask 261120  }
 0xb91   :  { %4229 = vmatpush.msra.mxu1 %v4203_v6  ;;  %4251 = vmatpush.msra.mxu0 %v4200_v15  ;;  %v4107_v5 = vpop.f32.mrf.mxu2  ;;  %v4287_v15 = vld [vmem:[%s7766_s9 + $0x42] ss:$0 sm:$0xff] }
 0xb93   :  { %4230 = vmatpush.msra.mxu1 %v4201_v45  ;;  %4252 = vmatpush.msra.mxu0 %v4198_v49  ;;  %v4335_v45 = vld [vmem:[%s7765_s8 + $0x5d0] sm:$0xff] }
 0xb95   :  { %4231 = vmatpush.msra.mxu1 %v4199_v46  ;;  %4253 = vmatpush.msra.mxu0 %v4196_v52  ;;  %v4333_v46 = vld [vmem:[%s7765_s8 + $0x5b0] sm:$0xff] }
 0xb97   :  { %4232 = vmatpush.msra.mxu1 %v4197_v47  ;;  %4254 = vmatpush.msra.mxu0 %v4194_v51 }
 0xb99   :  { %4233 = vmatpush.msra.mxu1 %v4195_v50  ;;  %v4185_v55 = vpop.f32.mrf.mxu2 }
 0xb9b   :  { %4234 = vmatpush.msra.mxu1 %v4193_v27 }
 0xb9d   :  { %4354 = vmatpush.msrb.mxu1 %v4336_v44 }
 0xb9f   :  { %4355 = vmatpush.msrb.mxu1 %v4335_v45 }
 0xba1   :  { %4356 = vmatpush.msrb.mxu1 %v4334_v21 }
 0xba3   :  { %4357 = vmatpush.msrb.mxu1 %v4333_v46 }
 0xbfb   :  { %v4062_v3 = vpop.f32.mrf.mxu3 }
 0xbfc   :  { %v4063_v20 = vadd.f32 %v4062_v3, %v4038_v53 }
 0xc05   :  { %v4082_v18 = vpop.f32.mrf.mxu0 }
 0xc06   :  { %v4083_v36 = vadd.f32 %v4082_v18, %v4063_v20 }
 0xc08   :  { %v4110_v9 = vadd.f32 %v4107_v5, %v4083_v36 }
 0xc0a   :  { %v4136_v16 = vadd.f32 %v4133_v10, %v4110_v9 }
 0xc0d   :  { %v4159_v12 = vpop.f32.mrf.mxu0 }
 0xc0e   :  { %v4162_v17 = vadd.f32 %v4159_v12, %v4136_v16 }
 0xc10   :  { %v4188_v26 = vadd.f32 %v4185_v55, %v4162_v17 }
 0xc12   :  { %v4190_v28 = vadd.f32 %v4189_v25, %v4188_v26 }
 0xc14   :  { %v4191_v2 = vmul.f32 0.01, %v4190_v28 }
 0xc16   :  { %v4192_v61 = vmax.f32 %v4190_v28, %v4191_v2 }
 0xc18   :  { %5757 = vmatmul.msk.f32.vlgmr.msra.gmra.mxu1 %vm4041_vm0, %v4192_v61  ;;  %5758 = vmatmul.msk.f32.vlgmr.msra.gmra.mxu0 %vm4041_vm0, %v4192_v61 }
 0xc95   :  { %v4236_v41 = vpop.f32.mrf.mxu1  ;;  %v4256_v34 = vpop.f32.mrf.mxu0 }
 0xc96   :  { %v4237_v7 = vadd.f32 %v4236_v41, %v4212_v38  ;;  %v4257_v48 = vadd.f32 %v4256_v34, %v4213_v40 }
 0xc98   :  { %v4259_v32 = vmul.f32 0.01, %v4237_v7  ;;  %v4260_v42 = vmul.f32 0.01, %v4257_v48 }
 0xc9a   :  { %v4261_v43 = vmax.f32 %v4237_v7, %v4259_v32  ;;  %v4262_v6 = vmax.f32 %v4257_v48, %v4260_v42 }
 0xc9c   :  { %4307 = vmatmul.f32.vlgmr.msra.gmra.mxu2 %v4261_v43  ;;  %5759 = vmatmul.msk.f32.vlgmr.msrb.gmra.mxu3 %vm4041_vm0, %v4262_v6 }
 0xd1f   :  { %v4308_v47 = vpop.f32.mrf.mxu2  ;;  %v4328_v50 = vpop.f32.mrf.mxu3 }
 0xd20   :  { %v4309_v49 = vadd.f32 %v4308_v47, %v4287_v15 }
 0xd22   :  { %v4329_v52 = vadd.f32 %v4328_v50, %v4309_v49 }
 0xd24   :  { %v4331_v27 = vmul.f32 0.01, %v4329_v52 }
 0xd26   :  { %v4332_v51 = vmax.f32 %v4329_v52, %v4331_v27 }
 0xd28   :  { %5760 = vmatmul.msk.f32.vlgmr.msrb.gmra.mxu1 %vm4338_vm1, %v4332_v51 }
 0xda5   :  { %v4359_v58 = vpop.f32.mrf.mxu1 }
 0xda6   :  { %v4360_v37 = vadd.f32 %v4359_v58, %v4337_v1 }
 0xda8   :  { %v4363_v31 = vsel %vm4362_vm6, %v4360_v37, -3e+38  ;;  %v4399_v26 = vsel %vm4362_vm6, %v4360_v37, 0.0 }
 0xda9   :  { %v4364_v59 = vsel %vm905_vm5, %v4363_v31, -inf }
 0xdaa   :  { %4365 = vmax.xlane.f32.xlu0 %v4364_v59 }
 0xe1d   :  { %v4366_v39 = vpop.xlane.xlu0 %4365 }
 0xe1e   :  { %v4367_v62 = vsub.f32 %v4363_v31, %v4366_v39  ;;  %vm4377_vm9 = vcmp.ge.f32.partialorder %v4363_v31, %v4366_v39 }
 0xe1f   :  { %v4378_v63 = vsel %vm4377_vm9, %v7168_v19, 36 }
 0xe20   :  { %v4368_v0 = vmul.f32 1.442695, %v4367_v62  ;;  %v4379_v13 = vsel %vm905_vm5, %v4378_v63, 2147483647 }
 0xe21   :  { %v4381_v53 = vshra.s32 %v4379_v13, 16  ;;  %v4380_v54 = vand.u32 65535, %v4379_v13 }
 0xe22   :  { %6094 = vpow2.f32 %v4368_v0 }
 0xe23   :  { %v4383_v3 = vcvt.s32.f32 %v4381_v53  ;;  %v4382_v36 = vcvt.s32.f32 %v4380_v54 }
 0xe25   :  { %4384 = vmin.xlane.f32.xlu0 %v4383_v3 }
 0xe28   :  { %v6095_v11 = vpop.eup %6094 }
 0xe29   :  { %v4370_v5 = vsel %vm4362_vm6, %v6095_v11, 0.0 }
 0xe2a   :  { %v4371_v20 = vsel %vm905_vm5, %v4370_v5, 0.0 }
 0xe2b   :  { %4372 = vadd.xlane.f32.xlu1 %v4371_v20 }
 0xe98   :  { %v4385_v18 = vpop.xlane.xlu0 %4384 }
 0xe99   :  { %vm4386_vm10 = vcmp.eq.f32.partialorder %v4383_v3, %v4385_v18  ;;  %v4391_v10 = vcvt.f32.s32 %v4385_v18 }
 0xe9a   :  { %v4387_v8 = vsel %vm4386_vm10, %v4382_v36, inf }
 0xe9b   :  { %4388 = vmin.xlane.f32.xlu1 %v4387_v8  ;;  %v4392_v22 = vshll.u32 %v4391_v10, 16 }
 0xe9e   :  { %v4373_v9 = vpop.xlane.xlu1 %4372 }
 0xe9f   :  { %6096 = vlog2.f32 %v4373_v9 }
 0xea5   :  { %v6097_v4 = vpop.eup %6096 }
 0xea6   :  { %v4375_v14 = vmul.f32 0.6931472, %v6097_v4 }
 0xea8   :  { %v4376_v17 = vsub.f32 %v4367_v62, %v4375_v14 }
 0xf0e   :  { %v4389_v16 = vpop.xlane.xlu1 %4388 }
 0xf0f   :  { %v4390_v12 = vcvt.f32.s32 %v4389_v16 }
 0xf11   :  { %v4393_v55 = vadd.s32 %v4392_v22, %v4390_v12 }
 0xf13   :  { %v4401_v25 = vcvt.s32.f32 %v4393_v55  ;;  %vm4394_vm12 = vcmp.eq.s32.totalorder %v7168_v19, %v4393_v55 }
 0xf14   :  { %v4395_v28 = vsel %vm4394_vm12, %v4376_v17, 0.0 }
 0xf15   :  { %v4396_v2 = vsel %vm905_vm5, %v4395_v28, 0.0  ;;  %v4402_v61 = vsel %vm4400_vm11, %v4401_v25, %v4399_v26 }
 0xf16   :  { %4397 = vadd.xlane.f32.xlu2 %v4396_v2 }
 0xf89   :  { %v4398_v23 = vpop.xlane.xlu2 %4397 }
 0xf8a   :  { %v4404_v24 = vsel %vm4403_vm13, %v4398_v23, %v4402_v61 }
 0xf8b   :  { %4405 = vst [vmem:[%s7767_s10] sm:$0x3] %v4404_v24 }
 0xf8c   :  { %4410 = vsyncmov [#allocation4] }
 0xf8f   :  { %s4411_s18 = vpop.sfrf %4410 }
 0xf90   :  { %p5761_p0 = scmp.ne.s32.totalorder %s4411_s18, 0 }
 0xf92   :  { %4415 = shalt.err (%p5761_p0)  }
 0xf93   :  { %4417 = vsyncmov [#allocation4 + $0x1] }
 0xf96   :  { %s4418_s19 = vpop.sfrf %4417 }
 0xf97   :  { %p5762_p1 = scmp.ne.s32.totalorder %s4418_s19, 0 }
 0xf99   :  { %4422 = shalt.err (%p5762_p1)  }

</bundles_post_ra>
